<compile_context>
chip_gen: v7x
topology: tpu7x:2x2x1
jax: 0.10.0
libtpu: 0.0.40
codegen_flags: <defaults>
</compile_context>

<pallas_src>
import functools

import jax
import jax.numpy as jnp
from jax import lax
from jax.experimental import pallas as pl
from jax.experimental.pallas import tpu as pltpu

VMEM_SPEC = pl.BlockSpec(memory_space=pltpu.MemorySpace.VMEM)
SMEM_SPEC = pl.BlockSpec(memory_space=pltpu.MemorySpace.SMEM)
ANY_SPEC = pl.BlockSpec(memory_space=pl.ANY)


# ----------------------------------------------------------------------------
# Fused kernel: embedding gather + attention + L-layer GRU + linear2 + linear3
# ----------------------------------------------------------------------------
def _make_fused_kernel(num_layers, batch):
    L, B = num_layers, batch

    def kernel(y_ref, emb_hbm, enc_ref, hid_ref, *refs):
        # --- unpack refs: [L x (wih, whh, bih, bhh)] + [w2t,b2,w3t,b3]
        #                  + outputs (hid_out, h3_out) + scratch (emb_vmem, sem)
        idx = 0
        gru = []
        for _ in range(L):
            gru.append(refs[idx:idx + 4])
            idx += 4
        w2t_ref, b2_ref, w3t_ref, b3_ref = refs[idx:idx + 4]
        idx += 4
        hid_out, h3_out = refs[idx:idx + 2]
        idx += 2
        emb_vmem, dma_sem = refs[idx:idx + 2]

        # --- 1. embedding row gather: manual DMA (HBM -> VMEM), one row per
        #        batch element; overlapped with the attention compute below.
        copies = []
        for i in range(B):
            cp = pltpu.make_async_copy(
                emb_hbm.at[pl.ds(y_ref[i], 1), :],
                emb_vmem.at[pl.ds(i, 1), :],
                dma_sem.at[i])
            cp.start()
            copies.append(cp)

        # --- 2. attention for all L layers at once, on the MXU.
        #     scores[b,l,s] = <hid[b,l,:], enc[b,s,:]> ; softmax over s ;
        #     att[b,l,:]    = sum_s w[b,l,s] * enc[b,s,:]
        enc = enc_ref[...].astype(jnp.float32)            # [B,S,H2]
        hid = hid_ref[...].astype(jnp.float32)            # [B,L,H2]
        scores = jnp.einsum('blh,bsh->bls', hid, enc,
                            preferred_element_type=jnp.float32)   # [B,L,S]
        m = jnp.max(scores, axis=-1, keepdims=True)
        e = jnp.exp(scores - m)
        w = e * pl.reciprocal(jnp.sum(e, axis=-1, keepdims=True))  # softmax(S)
        att = jnp.einsum('bls,bsh->blh', w, enc,
                         preferred_element_type=jnp.float32)       # [B,L,H2]

        # --- 3. embedding rows are needed now.
        for cp in copies:
            cp.wait()
        x = emb_vmem[...].astype(jnp.float32)              # [B, emb_dim]
        # TODO(synk): nn.Dropout / GRU inter-layer dropout are identity in eval mode.

        # --- 4. GRU stack (seq_len == 1).  PyTorch gate order: r, z, n.
        #        Gate weights are pre-stacked on a leading axis [3, Din, H]
        #        so no lane-offset slicing is required.
        for l in range(L):
            wih_ref, whh_ref, bih_ref, bhh_ref = gru[l]
            h0 = hid[:, l, :] + att[:, l, :]               # [B,H2]
            gi_r = jnp.dot(x, wih_ref[0], preferred_element_type=jnp.float32) + bih_ref[0]
            gi_z = jnp.dot(x, wih_ref[1], preferred_element_type=jnp.float32) + bih_ref[1]
            gi_n = jnp.dot(x, wih_ref[2], preferred_element_type=jnp.float32) + bih_ref[2]
            gh_r = jnp.dot(h0, whh_ref[0], preferred_element_type=jnp.float32) + bhh_ref[0]
            gh_z = jnp.dot(h0, whh_ref[1], preferred_element_type=jnp.float32) + bhh_ref[1]
            gh_n = jnp.dot(h0, whh_ref[2], preferred_element_type=jnp.float32) + bhh_ref[2]
            r = jax.nn.sigmoid(gi_r + gh_r)
            z = jax.nn.sigmoid(gi_z + gh_z)
            n = jnp.tanh(gi_n + r * gh_n)
            h_new = (1.0 - z) * n + z * h0
            hid_out[l] = h_new.astype(hid_out.dtype)
            x = h_new

        # --- 5. linear2 -> linear3 (vocab projection runs as a tiled kernel).
        h2 = jnp.dot(x, w2t_ref[...], preferred_element_type=jnp.float32) + b2_ref[...]
        h3 = jnp.dot(h2, w3t_ref[...], preferred_element_type=jnp.float32) + b3_ref[...]
        h3_out[...] = h3.astype(h3_out.dtype)

    return kernel


def fused_decode_step(prep, y, decoder_hidden_state, encoder_output):
    L, B, H2 = decoder_hidden_state.shape
    emb_table = prep["embedding"]
    emb_dim = emb_table.shape[1]
    D3 = prep["w3_t"].shape[1]
    dtype = encoder_output.dtype

    # [L,B,H2] -> [B,L,H2] so the attention dots are plain batched matmuls.
    hid_blh = jnp.transpose(decoder_hidden_state, (1, 0, 2))

    gru_inputs = []
    for l in range(L):
        gru_inputs += [prep[f"wih_g_l{l}"], prep[f"whh_g_l{l}"],
                       prep[f"bih_g_l{l}"], prep[f"bhh_g_l{l}"]]

    n_in = 4 + 4 * L + 4
    kernel = _make_fused_kernel(L, B)
    hidden, h3 = pl.pallas_call(
        kernel,
        out_shape=(jax.ShapeDtypeStruct((L, B, H2), dtype),
                   jax.ShapeDtypeStruct((B, D3), dtype)),
        in_specs=[SMEM_SPEC, ANY_SPEC] + [VMEM_SPEC] * (n_in - 2),
        out_specs=(VMEM_SPEC, VMEM_SPEC),
        scratch_shapes=[pltpu.VMEM((B, emb_dim), emb_table.dtype),
                        pltpu.SemaphoreType.DMA((B,))],
    )(y, emb_table, encoder_output, hid_blh,
      *gru_inputs, prep["w2_t"], prep["b2_r"], prep["w3_t"], prep["b3_r"])
    return hidden, h3


# ----------------------------------------------------------------------------
# Vocab projection (linear4), tiled over the vocab dimension.
# ----------------------------------------------------------------------------
def _proj_kernel(x_ref, w4t_ref, b4_ref, o_ref):
    o_ref[...] = (jnp.dot(x_ref[...], w4t_ref[...],
                          preferred_element_type=jnp.float32)
                  + b4_ref[...]).astype(o_ref.dtype)


def vocab_projection(h3, w4_t, b4_r, *, tile_n=2048):
    B, D3 = h3.shape
    V = w4_t.shape[1]
    tn = V if V <= tile_n else tile_n           # tn is full dim or mult of 128
    grid = (pl.cdiv(V, tn),)
    return pl.pallas_call(
        _proj_kernel,
        out_shape=jax.ShapeDtypeStruct((B, V), h3.dtype),
        grid=grid,
        in_specs=[pl.BlockSpec((B, D3), lambda j: (0, 0)),
                  pl.BlockSpec((D3, tn), lambda j: (0, j)),
                  pl.BlockSpec((1, tn), lambda j: (0, j))],
        out_specs=pl.BlockSpec((B, tn), lambda j: (0, j)),
        compiler_params=pltpu.CompilerParams(
            dimension_semantics=("parallel",)),
    )(h3, w4_t, b4_r)


# ----------------------------------------------------------------------------
# Decoder forward (eval mode: dropout layers are identity).
# ----------------------------------------------------------------------------
def decoder_forward(prep, y, decoder_hidden_state, encoder_output, *, tile_n=2048):
    hidden, h3 = fused_decode_step(prep, y, decoder_hidden_state, encoder_output)
    output = vocab_projection(h3, prep["w4_t"], prep["b4_r"], tile_n=tile_n)
    return output, hidden


# ----------------------------------------------------------------------------
# Parameter prep (done ONCE at load time): transpose / gate-stack weights.
# ----------------------------------------------------------------------------
def prepare_params(params, num_layers):
    p = {"embedding": params["embedding"]}
    for l in range(num_layers):
        w_ih = params[f"w_ih_l{l}"]            # [3H, Din]  (r, z, n stacked)
        w_hh = params[f"w_hh_l{l}"]            # [3H, H]
        H = w_hh.shape[1]
        p[f"wih_g_l{l}"] = jnp.transpose(w_ih.reshape(3, H, -1), (0, 2, 1))  # [3,Din,H]
        p[f"whh_g_l{l}"] = jnp.transpose(w_hh.reshape(3, H, H), (0, 2, 1))   # [3,H,H]
        p[f"bih_g_l{l}"] = params[f"b_ih_l{l}"].reshape(3, 1, H)
        p[f"bhh_g_l{l}"] = params[f"b_hh_l{l}"].reshape(3, 1, H)
    p["w2_t"] = params["w2"].T
    p["b2_r"] = params["b2"].reshape(1, -1)
    p["w3_t"] = params["w3"].T
    p["b3_r"] = params["b3"].reshape(1, -1)
    p["w4_t"] = params["w4"].T
    p["b4_r"] = params["b4"].reshape(1, -1)
    return p


# ----------------------------------------------------------------------------
# Pure-JAX reference (mirrors the PyTorch forward exactly) for verification.
# ----------------------------------------------------------------------------
_P = lax.Precision.HIGHEST


def reference_forward(params, y, dec_h, enc):
    emb = params["embedding"][y]
    hs = jnp.transpose(dec_h, (1, 2, 0))                  # [B, H2, L]
    aw = jnp.matmul(enc, hs, precision=_P)                # [B, S, L]
    aw = jax.nn.softmax(aw, axis=1)
    aw = jnp.transpose(aw, (0, 2, 1))                     # [B, L, S]
    att = jnp.matmul(aw, enc, precision=_P)               # [B, L, H2]
    att = jnp.transpose(att, (1, 0, 2))                   # [L, B, H2]
    h0 = dec_h + att
    x = emb
    outs = []
    H = dec_h.shape[-1]
    for l in range(dec_h.shape[0]):
        gi = jnp.dot(x, params[f"w_ih_l{l}"].T, precision=_P) + params[f"b_ih_l{l}"]
        gh = jnp.dot(h0[l], params[f"w_hh_l{l}"].T, precision=_P) + params[f"b_hh_l{l}"]
        r = jax.nn.sigmoid(gi[:, :H] + gh[:, :H])
        z = jax.nn.sigmoid(gi[:, H:2 * H] + gh[:, H:2 * H])
        n = jnp.tanh(gi[:, 2 * H:] + r * gh[:, 2 * H:])
        h_new = (1 - z) * n + z * h0[l]
        outs.append(h_new)
        x = h_new
    hidden = jnp.stack(outs, 0)
    out = jnp.dot(x, params["w2"].T, precision=_P) + params["b2"]
    out = jnp.dot(out, params["w3"].T, precision=_P) + params["b3"]
    out = jnp.dot(out, params["w4"].T, precision=_P) + params["b4"]
    return out, hidden


def init_params(key, vocab, emb_dim, hid_dim, num_layers):
    H2 = hid_dim * 2
    keys = jax.random.split(key, 8 + 4 * num_layers)
    ki = iter(keys)
    p = {}
    p["embedding"] = jax.random.normal(next(ki), (vocab, emb_dim), jnp.float32) * 0.1
    for l in range(num_layers):
        in_dim = emb_dim if l == 0 else H2
        p[f"w_ih_l{l}"] = jax.random.normal(next(ki), (3 * H2, in_dim), jnp.float32) * 0.1
        p[f"w_hh_l{l}"] = jax.random.normal(next(ki), (3 * H2, H2), jnp.float32) * 0.1
        p[f"b_ih_l{l}"] = jax.random.normal(next(ki), (3 * H2,), jnp.float32) * 0.1
        p[f"b_hh_l{l}"] = jax.random.normal(next(ki), (3 * H2,), jnp.float32) * 0.1
    p["w2"] = jax.random.normal(next(ki), (hid_dim * 4, H2), jnp.float32) * 0.1
    p["b2"] = jax.random.normal(next(ki), (hid_dim * 4,), jnp.float32) * 0.1
    p["w3"] = jax.random.normal(next(ki), (hid_dim * 8, hid_dim * 4), jnp.float32) * 0.1
    p["b3"] = jax.random.normal(next(ki), (hid_dim * 8,), jnp.float32) * 0.1
    p["w4"] = jax.random.normal(next(ki), (vocab, hid_dim * 8), jnp.float32) * 0.1
    p["b4"] = jax.random.normal(next(ki), (vocab,), jnp.float32) * 0.1
    return p


if __name__ == "__main__":
    # Small, lane-friendly, forward-consistent shapes.
    B, S = 2, 8                  # batch, encoder src_len
    vocab = 512
    emb_dim = 128
    hid_dim = 64                 # GRU hidden = hid_dim * 2 = 128 (lane-aligned)
    num_layers = 2

    key = jax.random.PRNGKey(0)
    kp, ky, kh, ke = jax.random.split(key, 4)

    params = init_params(kp, vocab, emb_dim, hid_dim, num_layers)
    prep = prepare_params(params, num_layers)      # one-time weight prep

    y = jax.random.randint(ky, (B,), 0, vocab, dtype=jnp.int32)
    decoder_hidden_state = jax.random.normal(kh, (num_layers, B, hid_dim * 2), jnp.float32)
    encoder_output = jax.random.normal(ke, (B, S, hid_dim * 2), jnp.float32)

    fwd = jax.jit(functools.partial(decoder_forward, tile_n=256))
    out, hidden = fwd(prep, y, decoder_hidden_state, encoder_output)
    out = jax.block_until_ready(out)
    hidden = jax.block_until_ready(hidden)

    ref_out, ref_hidden = reference_forward(params, y, decoder_hidden_state, encoder_output)
    assert out.shape == (B, vocab) and hidden.shape == (num_layers, B, hid_dim * 2)
    assert jnp.allclose(out, ref_out, atol=5e-4, rtol=5e-4), "output mismatch"
    assert jnp.allclose(hidden, ref_hidden, atol=5e-4, rtol=5e-4), "hidden mismatch"

    print("KERNEL_OK")
</pallas_src>

<mosaic_0001>
module attributes {stable_mosaic.version = 11 : i64} {
  func.func @_proj_kernel(%arg0: i32, %arg1: memref<2x512xf32, #tpu.memory_space<vmem>>, %arg2: memref<512x256xf32, #tpu.memory_space<vmem>>, %arg3: memref<1x256xf32, #tpu.memory_space<vmem>>, %arg4: memref<2x256xf32, #tpu.memory_space<vmem>>) attributes {dimension_semantics = [#tpu.dimension_semantics<parallel>], iteration_bounds = array<i64: 2>, scalar_prefetch = 0 : i64, scratch_operands = 0 : i64, tpu.core_type = #tpu.core_type<tc>, window_params = [{pipeline_mode = #tpu.pipeline_mode<synchronous>, transform_indices = @transform_0, window_bounds = array<i64: 2, 512>}, {transform_indices = @transform_1, window_bounds = array<i64: 512, 256>}, {transform_indices = @transform_2, window_bounds = array<i64: 1, 256>}, {transform_indices = @transform_3, window_bounds = array<i64: 2, 256>}]} {
    %c0 = arith.constant 0 : index
    %c0_0 = arith.constant 0 : index
    %0 = vector.load %arg1[%c0, %c0_0] : memref<2x512xf32, #tpu.memory_space<vmem>>, vector<2x512xf32>
    %c0_1 = arith.constant 0 : index
    %c0_2 = arith.constant 0 : index
    %1 = vector.load %arg2[%c0_1, %c0_2] : memref<512x256xf32, #tpu.memory_space<vmem>>, vector<512x256xf32>
    %cst = arith.constant dense<0.000000e+00> : vector<2x256xf32>
    %2 = tpu.matmul %0, %1, %cst {dimension_numbers = #tpu.dot_dimension_numbers<[1], [0], [0], [1], [0, 0, 1, 1], [], []>} : vector<2x512xf32>, vector<512x256xf32>, vector<2x256xf32> -> vector<2x256xf32>
    %c0_3 = arith.constant 0 : index
    %c0_4 = arith.constant 0 : index
    %3 = vector.load %arg3[%c0_3, %c0_4] : memref<1x256xf32, #tpu.memory_space<vmem>>, vector<1x256xf32>
    %4 = vector.broadcast %3 : vector<1x256xf32> to vector<2x256xf32>
    %5 = arith.addf %2, %4 : vector<2x256xf32>
    %c0_5 = arith.constant 0 : index
    %c0_6 = arith.constant 0 : index
    %6 = vector.load %arg4[%c0_5, %c0_6] : memref<2x256xf32, #tpu.memory_space<vmem>>, vector<2x256xf32>
    tpu.vector_store %arg4[%c0_5, %c0_6], %5 {strides = array<i32>} : memref<2x256xf32, #tpu.memory_space<vmem>>, vector<2x256xf32>,
    return
  }
  func.func @transform_0(%arg0: i32) -> (i32, i32) {
    %c0_i32 = arith.constant 0 : i32
    %c0_i32_0 = arith.constant 0 : i32
    %c0_i32_1 = arith.constant 0 : i32
    return %c0_i32, %c0_i32_0 : i32, i32
  }
  func.func @transform_1(%arg0: i32) -> (i32, i32) {
    %c0_i32 = arith.constant 0 : i32
    %c0_i32_0 = arith.constant 0 : i32
    return %c0_i32, %arg0 : i32, i32
  }
  func.func @transform_2(%arg0: i32) -> (i32, i32) {
    %c0_i32 = arith.constant 0 : i32
    %c0_i32_0 = arith.constant 0 : i32
    return %c0_i32, %arg0 : i32, i32
  }
  func.func @transform_3(%arg0: i32) -> (i32, i32) {
    %c0_i32 = arith.constant 0 : i32
    %c0_i32_0 = arith.constant 0 : i32
    return %c0_i32, %arg0 : i32, i32
  }
}

module attributes {stable_mosaic.version = 11 : i64} {
  func.func @kernel(%arg0: memref<2xi32, #tpu.memory_space<smem>>, %arg1: memref<512x128xf32, #tpu.memory_space<any>>, %arg2: memref<2x8x128xf32, #tpu.memory_space<vmem>>, %arg3: memref<2x2x128xf32, #tpu.memory_space<vmem>>, %arg4: memref<3x128x128xf32, #tpu.memory_space<vmem>>, %arg5: memref<3x128x128xf32, #tpu.memory_space<vmem>>, %arg6: memref<3x1x128xf32, #tpu.memory_space<vmem>>, %arg7: memref<3x1x128xf32, #tpu.memory_space<vmem>>, %arg8: memref<3x128x128xf32, #tpu.memory_space<vmem>>, %arg9: memref<3x128x128xf32, #tpu.memory_space<vmem>>, %arg10: memref<3x1x128xf32, #tpu.memory_space<vmem>>, %arg11: memref<3x1x128xf32, #tpu.memory_space<vmem>>, %arg12: memref<128x256xf32, #tpu.memory_space<vmem>>, %arg13: memref<1x256xf32, #tpu.memory_space<vmem>>, %arg14: memref<256x512xf32, #tpu.memory_space<vmem>>, %arg15: memref<1x512xf32, #tpu.memory_space<vmem>>, %arg16: memref<2x2x128xf32, #tpu.memory_space<vmem>>, %arg17: memref<2x512xf32, #tpu.memory_space<vmem>>, %arg18: memref<2x128xf32, #tpu.memory_space<vmem>>, %arg19: memref<2x!tpu.dma_semaphore, #tpu.memory_space<semaphore_mem>>) attributes {dimension_semantics = [], scalar_prefetch = 0 : i64, scratch_operands = 2 : i64, tpu.core_type = #tpu.core_type<tc>} {
    %c0 = arith.constant 0 : index
    %0 = memref.load %arg0[%c0] : memref<2xi32, #tpu.memory_space<smem>>
    %c0_i32 = arith.constant 0 : i32
    %c0_i32_0 = arith.constant 0 : i32
    %1 = tpu.memref_slice %arg1[%0, %c0_i32_0] : memref<512x128xf32, #tpu.memory_space<any>> -> memref<1x128xf32, #tpu.memory_space<any>>
    %c0_i32_1 = arith.constant 0 : i32
    %c0_i32_2 = arith.constant 0 : i32
    %2 = tpu.memref_slice %arg18[%c0_i32_1, %c0_i32_2] : memref<2x128xf32, #tpu.memory_space<vmem>> -> memref<1x128xf32, #tpu.memory_space<vmem>>
    %3 = tpu.memref_slice %arg19[%c0_i32] : memref<2x!tpu.dma_semaphore, #tpu.memory_space<semaphore_mem>> -> memref<1x!tpu.dma_semaphore, #tpu.memory_space<semaphore_mem>>
    %4 = tpu.memref_squeeze %3 : memref<1x!tpu.dma_semaphore, #tpu.memory_space<semaphore_mem>> -> memref<!tpu.dma_semaphore, #tpu.memory_space<semaphore_mem>>
    tpu.enqueue_dma source(%1 : memref<1x128xf32, #tpu.memory_space<any>>) target(%2 : memref<1x128xf32, #tpu.memory_space<vmem>>) target_semaphore(%4 : memref<!tpu.dma_semaphore, #tpu.memory_space<semaphore_mem>>)
    %c1 = arith.constant 1 : index
    %5 = memref.load %arg0[%c1] : memref<2xi32, #tpu.memory_space<smem>>
    %c1_i32 = arith.constant 1 : i32
    %c0_i32_3 = arith.constant 0 : i32
    %6 = tpu.memref_slice %arg1[%5, %c0_i32_3] : memref<512x128xf32, #tpu.memory_space<any>> -> memref<1x128xf32, #tpu.memory_space<any>>
    %c1_i32_4 = arith.constant 1 : i32
    %c0_i32_5 = arith.constant 0 : i32
    %7 = tpu.memref_slice %arg18[%c1_i32_4, %c0_i32_5] : memref<2x128xf32, #tpu.memory_space<vmem>> -> memref<1x128xf32, #tpu.memory_space<vmem>>
    %8 = tpu.memref_slice %arg19[%c1_i32] : memref<2x!tpu.dma_semaphore, #tpu.memory_space<semaphore_mem>> -> memref<1x!tpu.dma_semaphore, #tpu.memory_space<semaphore_mem>>
    %9 = tpu.memref_squeeze %8 : memref<1x!tpu.dma_semaphore, #tpu.memory_space<semaphore_mem>> -> memref<!tpu.dma_semaphore, #tpu.memory_space<semaphore_mem>>
    tpu.enqueue_dma source(%6 : memref<1x128xf32, #tpu.memory_space<any>>) target(%7 : memref<1x128xf32, #tpu.memory_space<vmem>>) target_semaphore(%9 : memref<!tpu.dma_semaphore, #tpu.memory_space<semaphore_mem>>)
    %c0_6 = arith.constant 0 : index
    %c0_7 = arith.constant 0 : index
    %c0_8 = arith.constant 0 : index
    %10 = vector.load %arg2[%c0_6, %c0_7, %c0_8] : memref<2x8x128xf32, #tpu.memory_space<vmem>>, vector<2x8x128xf32>
    %c0_9 = arith.constant 0 : index
    %c0_10 = arith.constant 0 : index
    %c0_11 = arith.constant 0 : index
    %11 = vector.load %arg3[%c0_9, %c0_10, %c0_11] : memref<2x2x128xf32, #tpu.memory_space<vmem>>, vector<2x2x128xf32>
    "tpu.trace_start"() <{level = 10 : i32, message = "blh,bsh->bls"}> : () -> ()
    %cst = arith.constant dense<0.000000e+00> : vector<2x2x8xf32>
    %12 = tpu.matmul %11, %10, %cst {dimension_numbers = #tpu.dot_dimension_numbers<[2], [2], [1], [1], [0, 0, 0, 1, 1, 1], [0], [0]>} : vector<2x2x128xf32>, vector<2x8x128xf32>, vector<2x2x8xf32> -> vector<2x2x8xf32>
    "tpu.trace_stop"() : () -> ()
    %cst_12 = arith.constant dense<0xFF800000> : vector<2x2xf32>
    %13 = vector.multi_reduction <maximumf>, %12, %cst_12 [2] : vector<2x2x8xf32> to vector<2x2xf32>
    %14 = vector.shape_cast %13 : vector<2x2xf32> to vector<2x2x1xf32>
    %15 = vector.broadcast %14 : vector<2x2x1xf32> to vector<2x2x8xf32>
    %16 = arith.subf %12, %15 : vector<2x2x8xf32>
    %17 = math.exp %16 : vector<2x2x8xf32>
    %cst_13 = arith.constant dense<0.000000e+00> : vector<2x2xf32>
    %18 = vector.multi_reduction <add>, %17, %cst_13 [2] : vector<2x2x8xf32> to vector<2x2xf32>
    %19 = vector.shape_cast %18 : vector<2x2xf32> to vector<2x2x1xf32>
    %20 = tpu.reciprocal %19 : vector<2x2x1xf32> -> vector<2x2x1xf32>
    %21 = vector.broadcast %20 : vector<2x2x1xf32> to vector<2x2x8xf32>
    %22 = arith.mulf %17, %21 : vector<2x2x8xf32>
    "tpu.trace_start"() <{level = 10 : i32, message = "bls,bsh->blh"}> : () -> ()
    %cst_14 = arith.constant dense<0.000000e+00> : vector<2x2x128xf32>
    %23 = tpu.matmul %22, %10, %cst_14 {dimension_numbers = #tpu.dot_dimension_numbers<[2], [1], [1], [2], [0, 0, 0, 1, 1, 2], [0], [0]>} : vector<2x2x8xf32>, vector<2x8x128xf32>, vector<2x2x128xf32> -> vector<2x2x128xf32>
    %c0_i32_15 = arith.constant 0 : i32
    "tpu.trace_stop"() : () -> ()
    %c0_i32_16 = arith.constant 0 : i32
    %24 = tpu.memref_slice %arg1[%0, %c0_i32_16] : memref<512x128xf32, #tpu.memory_space<any>> -> memref<1x128xf32, #tpu.memory_space<any>>
    %c0_i32_17 = arith.constant 0 : i32
    %c0_i32_18 = arith.constant 0 : i32
    %25 = tpu.memref_slice %arg18[%c0_i32_17, %c0_i32_18] : memref<2x128xf32, #tpu.memory_space<vmem>> -> memref<1x128xf32, #tpu.memory_space<vmem>>
    %26 = tpu.memref_slice %arg19[%c0_i32_15] : memref<2x!tpu.dma_semaphore, #tpu.memory_space<semaphore_mem>> -> memref<1x!tpu.dma_semaphore, #tpu.memory_space<semaphore_mem>>
    %27 = tpu.memref_squeeze %26 : memref<1x!tpu.dma_semaphore, #tpu.memory_space<semaphore_mem>> -> memref<!tpu.dma_semaphore, #tpu.memory_space<semaphore_mem>>
    tpu.wait_dma2 semaphore(%27 : memref<!tpu.dma_semaphore, #tpu.memory_space<semaphore_mem>>) src(%24 : memref<1x128xf32, #tpu.memory_space<any>>) dst(%25 : memref<1x128xf32, #tpu.memory_space<vmem>>)
    %c1_i32_19 = arith.constant 1 : i32
    %c0_i32_20 = arith.constant 0 : i32
    %28 = tpu.memref_slice %arg1[%5, %c0_i32_20] : memref<512x128xf32, #tpu.memory_space<any>> -> memref<1x128xf32, #tpu.memory_space<any>>
    %c1_i32_21 = arith.constant 1 : i32
    %c0_i32_22 = arith.constant 0 : i32
    %29 = tpu.memref_slice %arg18[%c1_i32_21, %c0_i32_22] : memref<2x128xf32, #tpu.memory_space<vmem>> -> memref<1x128xf32, #tpu.memory_space<vmem>>
    %30 = tpu.memref_slice %arg19[%c1_i32_19] : memref<2x!tpu.dma_semaphore, #tpu.memory_space<semaphore_mem>> -> memref<1x!tpu.dma_semaphore, #tpu.memory_space<semaphore_mem>>
    %31 = tpu.memref_squeeze %30 : memref<1x!tpu.dma_semaphore, #tpu.memory_space<semaphore_mem>> -> memref<!tpu.dma_semaphore, #tpu.memory_space<semaphore_mem>>
    tpu.wait_dma2 semaphore(%31 : memref<!tpu.dma_semaphore, #tpu.memory_space<semaphore_mem>>) src(%28 : memref<1x128xf32, #tpu.memory_space<any>>) dst(%29 : memref<1x128xf32, #tpu.memory_space<vmem>>)
    %c0_23 = arith.constant 0 : index
    %c0_24 = arith.constant 0 : index
    %32 = vector.load %arg18[%c0_23, %c0_24] : memref<2x128xf32, #tpu.memory_space<vmem>>, vector<2x128xf32>
    %33 = vector.extract_strided_slice %11 {offsets = [0, 0, 0], sizes = [2, 1, 128], strides = [1, 1, 1]} : vector<2x2x128xf32> to vector<2x1x128xf32>
    %34 = vector.shape_cast %33 : vector<2x1x128xf32> to vector<2x128xf32>
    %35 = vector.extract_strided_slice %23 {offsets = [0, 0, 0], sizes = [2, 1, 128], strides = [1, 1, 1]} : vector<2x2x128xf32> to vector<2x1x128xf32>
    %36 = vector.shape_cast %35 : vector<2x1x128xf32> to vector<2x128xf32>
    %37 = arith.addf %34, %36 : vector<2x128xf32>
    %c0_25 = arith.constant 0 : index
    %c0_26 = arith.constant 0 : index
    %c0_27 = arith.constant 0 : index
    %38 = vector.load %arg4[%c0_25, %c0_26, %c0_27] : memref<3x128x128xf32, #tpu.memory_space<vmem>>, vector<1x128x128xf32>
    %39 = vector.shape_cast %38 : vector<1x128x128xf32> to vector<128x128xf32>
    %cst_28 = arith.constant dense<0.000000e+00> : vector<2x128xf32>
    %40 = tpu.matmul %32, %39, %cst_28 {dimension_numbers = #tpu.dot_dimension_numbers<[1], [0], [0], [1], [0, 0, 1, 1], [], []>} : vector<2x128xf32>, vector<128x128xf32>, vector<2x128xf32> -> vector<2x128xf32>
    %c0_29 = arith.constant 0 : index
    %c0_30 = arith.constant 0 : index
    %c0_31 = arith.constant 0 : index
    %41 = vector.load %arg6[%c0_29, %c0_30, %c0_31] : memref<3x1x128xf32, #tpu.memory_space<vmem>>, vector<1x1x128xf32>
    %42 = vector.shape_cast %41 : vector<1x1x128xf32> to vector<1x128xf32>
    %43 = vector.broadcast %42 : vector<1x128xf32> to vector<2x128xf32>
    %44 = arith.addf %40, %43 : vector<2x128xf32>
    %c1_32 = arith.constant 1 : index
    %c0_33 = arith.constant 0 : index
    %c0_34 = arith.constant 0 : index
    %45 = vector.load %arg4[%c1_32, %c0_33, %c0_34] : memref<3x128x128xf32, #tpu.memory_space<vmem>>, vector<1x128x128xf32>
    %46 = vector.shape_cast %45 : vector<1x128x128xf32> to vector<128x128xf32>
    %cst_35 = arith.constant dense<0.000000e+00> : vector<2x128xf32>
    %47 = tpu.matmul %32, %46, %cst_35 {dimension_numbers = #tpu.dot_dimension_numbers<[1], [0], [0], [1], [0, 0, 1, 1], [], []>} : vector<2x128xf32>, vector<128x128xf32>, vector<2x128xf32> -> vector<2x128xf32>
    %c1_36 = arith.constant 1 : index
    %c0_37 = arith.constant 0 : index
    %c0_38 = arith.constant 0 : index
    %48 = vector.load %arg6[%c1_36, %c0_37, %c0_38] : memref<3x1x128xf32, #tpu.memory_space<vmem>>, vector<1x1x128xf32>
    %49 = vector.shape_cast %48 : vector<1x1x128xf32> to vector<1x128xf32>
    %50 = vector.broadcast %49 : vector<1x128xf32> to vector<2x128xf32>
    %51 = arith.addf %47, %50 : vector<2x128xf32>
    %c2 = arith.constant 2 : index
    %c0_39 = arith.constant 0 : index
    %c0_40 = arith.constant 0 : index
    %52 = vector.load %arg4[%c2, %c0_39, %c0_40] : memref<3x128x128xf32, #tpu.memory_space<vmem>>, vector<1x128x128xf32>
    %53 = vector.shape_cast %52 : vector<1x128x128xf32> to vector<128x128xf32>
    %cst_41 = arith.constant dense<0.000000e+00> : vector<2x128xf32>
    %54 = tpu.matmul %32, %53, %cst_41 {dimension_numbers = #tpu.dot_dimension_numbers<[1], [0], [0], [1], [0, 0, 1, 1], [], []>} : vector<2x128xf32>, vector<128x128xf32>, vector<2x128xf32> -> vector<2x128xf32>
    %c2_42 = arith.constant 2 : index
    %c0_43 = arith.constant 0 : index
    %c0_44 = arith.constant 0 : index
    %55 = vector.load %arg6[%c2_42, %c0_43, %c0_44] : memref<3x1x128xf32, #tpu.memory_space<vmem>>, vector<1x1x128xf32>
    %56 = vector.shape_cast %55 : vector<1x1x128xf32> to vector<1x128xf32>
    %57 = vector.broadcast %56 : vector<1x128xf32> to vector<2x128xf32>
    %58 = arith.addf %54, %57 : vector<2x128xf32>
    %c0_45 = arith.constant 0 : index
    %c0_46 = arith.constant 0 : index
    %c0_47 = arith.constant 0 : index
    %59 = vector.load %arg5[%c0_45, %c0_46, %c0_47] : memref<3x128x128xf32, #tpu.memory_space<vmem>>, vector<1x128x128xf32>
    %60 = vector.shape_cast %59 : vector<1x128x128xf32> to vector<128x128xf32>
    %cst_48 = arith.constant dense<0.000000e+00> : vector<2x128xf32>
    %61 = tpu.matmul %37, %60, %cst_48 {dimension_numbers = #tpu.dot_dimension_numbers<[1], [0], [0], [1], [0, 0, 1, 1], [], []>} : vector<2x128xf32>, vector<128x128xf32>, vector<2x128xf32> -> vector<2x128xf32>
    %c0_49 = arith.constant 0 : index
    %c0_50 = arith.constant 0 : index
    %c0_51 = arith.constant 0 : index
    %62 = vector.load %arg7[%c0_49, %c0_50, %c0_51] : memref<3x1x128xf32, #tpu.memory_space<vmem>>, vector<1x1x128xf32>
    %63 = vector.shape_cast %62 : vector<1x1x128xf32> to vector<1x128xf32>
    %64 = vector.broadcast %63 : vector<1x128xf32> to vector<2x128xf32>
    %65 = arith.addf %61, %64 : vector<2x128xf32>
    %c1_52 = arith.constant 1 : index
    %c0_53 = arith.constant 0 : index
    %c0_54 = arith.constant 0 : index
    %66 = vector.load %arg5[%c1_52, %c0_53, %c0_54] : memref<3x128x128xf32, #tpu.memory_space<vmem>>, vector<1x128x128xf32>
    %67 = vector.shape_cast %66 : vector<1x128x128xf32> to vector<128x128xf32>
    %cst_55 = arith.constant dense<0.000000e+00> : vector<2x128xf32>
    %68 = tpu.matmul %37, %67, %cst_55 {dimension_numbers = #tpu.dot_dimension_numbers<[1], [0], [0], [1], [0, 0, 1, 1], [], []>} : vector<2x128xf32>, vector<128x128xf32>, vector<2x128xf32> -> vector<2x128xf32>
    %c1_56 = arith.constant 1 : index
    %c0_57 = arith.constant 0 : index
    %c0_58 = arith.constant 0 : index
    %69 = vector.load %arg7[%c1_56, %c0_57, %c0_58] : memref<3x1x128xf32, #tpu.memory_space<vmem>>, vector<1x1x128xf32>
    %70 = vector.shape_cast %69 : vector<1x1x128xf32> to vector<1x128xf32>
    %71 = vector.broadcast %70 : vector<1x128xf32> to vector<2x128xf32>
    %72 = arith.addf %68, %71 : vector<2x128xf32>
    %c2_59 = arith.constant 2 : index
    %c0_60 = arith.constant 0 : index
    %c0_61 = arith.constant 0 : index
    %73 = vector.load %arg5[%c2_59, %c0_60, %c0_61] : memref<3x128x128xf32, #tpu.memory_space<vmem>>, vector<1x128x128xf32>
    %74 = vector.shape_cast %73 : vector<1x128x128xf32> to vector<128x128xf32>
    %cst_62 = arith.constant dense<0.000000e+00> : vector<2x128xf32>
    %75 = tpu.matmul %37, %74, %cst_62 {dimension_numbers = #tpu.dot_dimension_numbers<[1], [0], [0], [1], [0, 0, 1, 1], [], []>} : vector<2x128xf32>, vector<128x128xf32>, vector<2x128xf32> -> vector<2x128xf32>
    %c2_63 = arith.constant 2 : index
    %c0_64 = arith.constant 0 : index
    %c0_65 = arith.constant 0 : index
    %76 = vector.load %arg7[%c2_63, %c0_64, %c0_65] : memref<3x1x128xf32, #tpu.memory_space<vmem>>, vector<1x1x128xf32>
    %77 = vector.shape_cast %76 : vector<1x1x128xf32> to vector<1x128xf32>
    %78 = vector.broadcast %77 : vector<1x128xf32> to vector<2x128xf32>
    %79 = arith.addf %75, %78 : vector<2x128xf32>
    %80 = arith.addf %44, %65 : vector<2x128xf32>
    %81 = arith.negf %80 : vector<2x128xf32>
    %82 = math.exp %81 : vector<2x128xf32>
    %cst_66 = arith.constant 1.000000e+00 : f32
    %83 = vector.broadcast %cst_66 : f32 to vector<2x128xf32>
    %84 = arith.addf %83, %82 : vector<2x128xf32>
    %85 = arith.divf %83, %84 : vector<2x128xf32>
    %86 = arith.addf %51, %72 : vector<2x128xf32>
    %87 = arith.negf %86 : vector<2x128xf32>
    %88 = math.exp %87 : vector<2x128xf32>
    %cst_67 = arith.constant 1.000000e+00 : f32
    %89 = vector.broadcast %cst_67 : f32 to vector<2x128xf32>
    %90 = arith.addf %89, %88 : vector<2x128xf32>
    %91 = arith.divf %89, %90 : vector<2x128xf32>
    %92 = arith.mulf %85, %79 : vector<2x128xf32>
    %93 = arith.addf %58, %92 : vector<2x128xf32>
    %94 = math.tanh %93 : vector<2x128xf32>
    %cst_68 = arith.constant 1.000000e+00 : f32
    %95 = vector.broadcast %cst_68 : f32 to vector<2x128xf32>
    %96 = arith.subf %95, %91 : vector<2x128xf32>
    %97 = arith.mulf %96, %94 : vector<2x128xf32>
    %98 = arith.mulf %91, %37 : vector<2x128xf32>
    %99 = arith.addf %97, %98 : vector<2x128xf32>
    %c0_69 = arith.constant 0 : index
    %c0_70 = arith.constant 0 : index
    %c0_71 = arith.constant 0 : index
    %100 = vector.load %arg16[%c0_69, %c0_70, %c0_71] : memref<2x2x128xf32, #tpu.memory_space<vmem>>, vector<1x2x128xf32>
    %101 = vector.shape_cast %100 : vector<1x2x128xf32> to vector<2x128xf32>
    %102 = vector.shape_cast %99 : vector<2x128xf32> to vector<1x2x128xf32>
    tpu.vector_store %arg16[%c0_69, %c0_70, %c0_71], %102 {strides = array<i32>} : memref<2x2x128xf32, #tpu.memory_space<vmem>>, vector<1x2x128xf32>,
    %103 = vector.extract_strided_slice %11 {offsets = [0, 1, 0], sizes = [2, 1, 128], strides = [1, 1, 1]} : vector<2x2x128xf32> to vector<2x1x128xf32>
    %104 = vector.shape_cast %103 : vector<2x1x128xf32> to vector<2x128xf32>
    %105 = vector.extract_strided_slice %23 {offsets = [0, 1, 0], sizes = [2, 1, 128], strides = [1, 1, 1]} : vector<2x2x128xf32> to vector<2x1x128xf32>
    %106 = vector.shape_cast %105 : vector<2x1x128xf32> to vector<2x128xf32>
    %107 = arith.addf %104, %106 : vector<2x128xf32>
    %c0_72 = arith.constant 0 : index
    %c0_73 = arith.constant 0 : index
    %c0_74 = arith.constant 0 : index
    %108 = vector.load %arg8[%c0_72, %c0_73, %c0_74] : memref<3x128x128xf32, #tpu.memory_space<vmem>>, vector<1x128x128xf32>
    %109 = vector.shape_cast %108 : vector<1x128x128xf32> to vector<128x128xf32>
    %cst_75 = arith.constant dense<0.000000e+00> : vector<2x128xf32>
    %110 = tpu.matmul %99, %109, %cst_75 {dimension_numbers = #tpu.dot_dimension_numbers<[1], [0], [0], [1], [0, 0, 1, 1], [], []>} : vector<2x128xf32>, vector<128x128xf32>, vector<2x128xf32> -> vector<2x128xf32>
    %c0_76 = arith.constant 0 : index
    %c0_77 = arith.constant 0 : index
    %c0_78 = arith.constant 0 : index
    %111 = vector.load %arg10[%c0_76, %c0_77, %c0_78] : memref<3x1x128xf32, #tpu.memory_space<vmem>>, vector<1x1x128xf32>
    %112 = vector.shape_cast %111 : vector<1x1x128xf32> to vector<1x128xf32>
    %113 = vector.broadcast %112 : vector<1x128xf32> to vector<2x128xf32>
    %114 = arith.addf %110, %113 : vector<2x128xf32>
    %c1_79 = arith.constant 1 : index
    %c0_80 = arith.constant 0 : index
    %c0_81 = arith.constant 0 : index
    %115 = vector.load %arg8[%c1_79, %c0_80, %c0_81] : memref<3x128x128xf32, #tpu.memory_space<vmem>>, vector<1x128x128xf32>
    %116 = vector.shape_cast %115 : vector<1x128x128xf32> to vector<128x128xf32>
    %cst_82 = arith.constant dense<0.000000e+00> : vector<2x128xf32>
    %117 = tpu.matmul %99, %116, %cst_82 {dimension_numbers = #tpu.dot_dimension_numbers<[1], [0], [0], [1], [0, 0, 1, 1], [], []>} : vector<2x128xf32>, vector<128x128xf32>, vector<2x128xf32> -> vector<2x128xf32>
    %c1_83 = arith.constant 1 : index
    %c0_84 = arith.constant 0 : index
    %c0_85 = arith.constant 0 : index
    %118 = vector.load %arg10[%c1_83, %c0_84, %c0_85] : memref<3x1x128xf32, #tpu.memory_space<vmem>>, vector<1x1x128xf32>
    %119 = vector.shape_cast %118 : vector<1x1x128xf32> to vector<1x128xf32>
    %120 = vector.broadcast %119 : vector<1x128xf32> to vector<2x128xf32>
    %121 = arith.addf %117, %120 : vector<2x128xf32>
    %c2_86 = arith.constant 2 : index
    %c0_87 = arith.constant 0 : index
    %c0_88 = arith.constant 0 : index
    %122 = vector.load %arg8[%c2_86, %c0_87, %c0_88] : memref<3x128x128xf32, #tpu.memory_space<vmem>>, vector<1x128x128xf32>
    %123 = vector.shape_cast %122 : vector<1x128x128xf32> to vector<128x128xf32>
    %cst_89 = arith.constant dense<0.000000e+00> : vector<2x128xf32>
    %124 = tpu.matmul %99, %123, %cst_89 {dimension_numbers = #tpu.dot_dimension_numbers<[1], [0], [0], [1], [0, 0, 1, 1], [], []>} : vector<2x128xf32>, vector<128x128xf32>, vector<2x128xf32> -> vector<2x128xf32>
    %c2_90 = arith.constant 2 : index
    %c0_91 = arith.constant 0 : index
    %c0_92 = arith.constant 0 : index
    %125 = vector.load %arg10[%c2_90, %c0_91, %c0_92] : memref<3x1x128xf32, #tpu.memory_space<vmem>>, vector<1x1x128xf32>
    %126 = vector.shape_cast %125 : vector<1x1x128xf32> to vector<1x128xf32>
    %127 = vector.broadcast %126 : vector<1x128xf32> to vector<2x128xf32>
    %128 = arith.addf %124, %127 : vector<2x128xf32>
    %c0_93 = arith.constant 0 : index
    %c0_94 = arith.constant 0 : index
    %c0_95 = arith.constant 0 : index
    %129 = vector.load %arg9[%c0_93, %c0_94, %c0_95] : memref<3x128x128xf32, #tpu.memory_space<vmem>>, vector<1x128x128xf32>
    %130 = vector.shape_cast %129 : vector<1x128x128xf32> to vector<128x128xf32>
    %cst_96 = arith.constant dense<0.000000e+00> : vector<2x128xf32>
    %131 = tpu.matmul %107, %130, %cst_96 {dimension_numbers = #tpu.dot_dimension_numbers<[1], [0], [0], [1], [0, 0, 1, 1], [], []>} : vector<2x128xf32>, vector<128x128xf32>, vector<2x128xf32> -> vector<2x128xf32>
    %c0_97 = arith.constant 0 : index
    %c0_98 = arith.constant 0 : index
    %c0_99 = arith.constant 0 : index
    %132 = vector.load %arg11[%c0_97, %c0_98, %c0_99] : memref<3x1x128xf32, #tpu.memory_space<vmem>>, vector<1x1x128xf32>
    %133 = vector.shape_cast %132 : vector<1x1x128xf32> to vector<1x128xf32>
    %134 = vector.broadcast %133 : vector<1x128xf32> to vector<2x128xf32>
    %135 = arith.addf %131, %134 : vector<2x128xf32>
    %c1_100 = arith.constant 1 : index
    %c0_101 = arith.constant 0 : index
    %c0_102 = arith.constant 0 : index
    %136 = vector.load %arg9[%c1_100, %c0_101, %c0_102] : memref<3x128x128xf32, #tpu.memory_space<vmem>>, vector<1x128x128xf32>
    %137 = vector.shape_cast %136 : vector<1x128x128xf32> to vector<128x128xf32>
    %cst_103 = arith.constant dense<0.000000e+00> : vector<2x128xf32>
    %138 = tpu.matmul %107, %137, %cst_103 {dimension_numbers = #tpu.dot_dimension_numbers<[1], [0], [0], [1], [0, 0, 1, 1], [], []>} : vector<2x128xf32>, vector<128x128xf32>, vector<2x128xf32> -> vector<2x128xf32>
    %c1_104 = arith.constant 1 : index
    %c0_105 = arith.constant 0 : index
    %c0_106 = arith.constant 0 : index
    %139 = vector.load %arg11[%c1_104, %c0_105, %c0_106] : memref<3x1x128xf32, #tpu.memory_space<vmem>>, vector<1x1x128xf32>
    %140 = vector.shape_cast %139 : vector<1x1x128xf32> to vector<1x128xf32>
    %141 = vector.broadcast %140 : vector<1x128xf32> to vector<2x128xf32>
    %142 = arith.addf %138, %141 : vector<2x128xf32>
    %c2_107 = arith.constant 2 : index
    %c0_108 = arith.constant 0 : index
    %c0_109 = arith.constant 0 : index
    %143 = vector.load %arg9[%c2_107, %c0_108, %c0_109] : memref<3x128x128xf32, #tpu.memory_space<vmem>>, vector<1x128x128xf32>
    %144 = vector.shape_cast %143 : vector<1x128x128xf32> to vector<128x128xf32>
    %cst_110 = arith.constant dense<0.000000e+00> : vector<2x128xf32>
    %145 = tpu.matmul %107, %144, %cst_110 {dimension_numbers = #tpu.dot_dimension_numbers<[1], [0], [0], [1], [0, 0, 1, 1], [], []>} : vector<2x128xf32>, vector<128x128xf32>, vector<2x128xf32> -> vector<2x128xf32>
    %c2_111 = arith.constant 2 : index
    %c0_112 = arith.constant 0 : index
    %c0_113 = arith.constant 0 : index
    %146 = vector.load %arg11[%c2_111, %c0_112, %c0_113] : memref<3x1x128xf32, #tpu.memory_space<vmem>>, vector<1x1x128xf32>
    %147 = vector.shape_cast %146 : vector<1x1x128xf32> to vector<1x128xf32>
    %148 = vector.broadcast %147 : vector<1x128xf32> to vector<2x128xf32>
    %149 = arith.addf %145, %148 : vector<2x128xf32>
    %150 = arith.addf %114, %135 : vector<2x128xf32>
    %151 = arith.negf %150 : vector<2x128xf32>
    %152 = math.exp %151 : vector<2x128xf32>
    %cst_114 = arith.constant 1.000000e+00 : f32
    %153 = vector.broadcast %cst_114 : f32 to vector<2x128xf32>
    %154 = arith.addf %153, %152 : vector<2x128xf32>
    %155 = arith.divf %153, %154 : vector<2x128xf32>
    %156 = arith.addf %121, %142 : vector<2x128xf32>
    %157 = arith.negf %156 : vector<2x128xf32>
    %158 = math.exp %157 : vector<2x128xf32>
    %cst_115 = arith.constant 1.000000e+00 : f32
    %159 = vector.broadcast %cst_115 : f32 to vector<2x128xf32>
    %160 = arith.addf %159, %158 : vector<2x128xf32>
    %161 = arith.divf %159, %160 : vector<2x128xf32>
    %162 = arith.mulf %155, %149 : vector<2x128xf32>
    %163 = arith.addf %128, %162 : vector<2x128xf32>
    %164 = math.tanh %163 : vector<2x128xf32>
    %cst_116 = arith.constant 1.000000e+00 : f32
    %165 = vector.broadcast %cst_116 : f32 to vector<2x128xf32>
    %166 = arith.subf %165, %161 : vector<2x128xf32>
    %167 = arith.mulf %166, %164 : vector<2x128xf32>
    %168 = arith.mulf %161, %107 : vector<2x128xf32>
    %169 = arith.addf %167, %168 : vector<2x128xf32>
    %c1_117 = arith.constant 1 : index
    %c0_118 = arith.constant 0 : index
    %c0_119 = arith.constant 0 : index
    %170 = vector.load %arg16[%c1_117, %c0_118, %c0_119] : memref<2x2x128xf32, #tpu.memory_space<vmem>>, vector<1x2x128xf32>
    %171 = vector.shape_cast %170 : vector<1x2x128xf32> to vector<2x128xf32>
    %172 = vector.shape_cast %169 : vector<2x128xf32> to vector<1x2x128xf32>
    tpu.vector_store %arg16[%c1_117, %c0_118, %c0_119], %172 {strides = array<i32>} : memref<2x2x128xf32, #tpu.memory_space<vmem>>, vector<1x2x128xf32>,
    %c0_120 = arith.constant 0 : index
    %c0_121 = arith.constant 0 : index
    %173 = vector.load %arg12[%c0_120, %c0_121] : memref<128x256xf32, #tpu.memory_space<vmem>>, vector<128x256xf32>
    %cst_122 = arith.constant dense<0.000000e+00> : vector<2x256xf32>
    %174 = tpu.matmul %169, %173, %cst_122 {dimension_numbers = #tpu.dot_dimension_numbers<[1], [0], [0], [1], [0, 0, 1, 1], [], []>} : vector<2x128xf32>, vector<128x256xf32>, vector<2x256xf32> -> vector<2x256xf32>
    %c0_123 = arith.constant 0 : index
    %c0_124 = arith.constant 0 : index
    %175 = vector.load %arg13[%c0_123, %c0_124] : memref<1x256xf32, #tpu.memory_space<vmem>>, vector<1x256xf32>
    %176 = vector.broadcast %175 : vector<1x256xf32> to vector<2x256xf32>
    %177 = arith.addf %174, %176 : vector<2x256xf32>
    %c0_125 = arith.constant 0 : index
    %c0_126 = arith.constant 0 : index
    %178 = vector.load %arg14[%c0_125, %c0_126] : memref<256x512xf32, #tpu.memory_space<vmem>>, vector<256x512xf32>
    %cst_127 = arith.constant dense<0.000000e+00> : vector<2x512xf32>
    %179 = tpu.matmul %177, %178, %cst_127 {dimension_numbers = #tpu.dot_dimension_numbers<[1], [0], [0], [1], [0, 0, 1, 1], [], []>} : vector<2x256xf32>, vector<256x512xf32>, vector<2x512xf32> -> vector<2x512xf32>
    %c0_128 = arith.constant 0 : index
    %c0_129 = arith.constant 0 : index
    %180 = vector.load %arg15[%c0_128, %c0_129] : memref<1x512xf32, #tpu.memory_space<vmem>>, vector<1x512xf32>
    %181 = vector.broadcast %180 : vector<1x512xf32> to vector<2x512xf32>
    %182 = arith.addf %179, %181 : vector<2x512xf32>
    %c0_130 = arith.constant 0 : index
    %c0_131 = arith.constant 0 : index
    %183 = vector.load %arg17[%c0_130, %c0_131] : memref<2x512xf32, #tpu.memory_space<vmem>>, vector<2x512xf32>
    tpu.vector_store %arg17[%c0_130, %c0_131], %182 {strides = array<i32>} : memref<2x512xf32, #tpu.memory_space<vmem>>, vector<2x512xf32>,
    return
  }
}

</mosaic_0001>

<bundles_post_ra>
// kernel: decoder_forward.3
= control target key start
LH: loop header
LB: loop body
LE: loop exit
PB: predicated region body
PF: predicated region fallthrough
CT: control target
= control target key end

     0   :  { %8 = vsyncpa [#allocation4], 0  ;;  %s1669_s0 = inlined_call_operand.vmem [shape: f32[2,512], index: 0, kind: input, shape index: {}]   ;;  %s1670_s1 = inlined_call_operand.vmem [shape: f32[512,512], index: 1, kind: input, shape index: {}]   ;;  %s1671_s2 = inlined_call_operand.vmem [shape: f32[1,512], index: 2, kind: input, shape index: {}]   ;;  %s1672_s3 = inlined_call_operand.hbm [shape: f32[2,512], index: 3, kind: output, shape index: {}]  }
   0x1   :  { %10 = vsyncpa [#allocation4 + $0x1], 0  ;;  %s1147_s12 = smov 0   ;;  %s1149_s13 = smov 0  }
   0x2   :  { %s1151_s14 = smov 0   ;;  %s1153_s15 = smov 0  }
   0x3 LB: > { %s1168_s16 = sadd.s32 4294967295, %s1123_s15   ;;  %s870_s17 = sadd.s32 4294967294, %s1123_s15   ;;  %s1123_s15 = sphi %s1153_s15, %s1678_s15   ;;  %s1119_s14 = sphi %s1151_s14, %s1677_s14   ;;  %s1115_s13 = sphi %s1149_s13, %s1676_s13   ;;  %s1111_s12 = sphi %s1147_s12, %s1675_s12  }
   0x4   : > { %s1172_s18 = sadd.s32 1, %s1123_s15   ;;  %s44_s19 = sadd.s32 1, %s1119_s14 }
   0x5   : > { %s41_s20 = ssub.s32 %s1123_s15, %s1172_s18  ;;  %p51_p0 = scmp.ne.s32.totalorder %s1119_s14, %s1115_s13 }
   0x6   : > { %p42_p1 = scmp.eq.s32.totalorder %s41_s20, 0  ;;  %p52_p2 = scmp.eq.s32.totalorder %s1123_s15, 0 }
   0x7   : > { %p107_p3 = scmp.eq.s32.totalorder %s1168_s16, 1  ;;  %p112_p4 = scmp.ne.s32.totalorder %s1115_s13, %s1111_s12 }
   0x8   : > { %s1184_s21 = scalar_select %p42_p1, %s1119_s14, %s44_s19  }
   0x9   : > { %p53_p5 = por %p52_p2, %p51_p0  ;;  %p1186_p6 = por %p107_p3, %p51_p0 }
   0xa   : > { %p113_p7 = scmp.eq.s32.totalorder %s870_s17, 1  ;;  %p872_p9 = scmp.ge.s32.totalorder %s1123_s15, 2 }
   0xc   : > { %p1190_p8 = por %p113_p7, %p112_p4  ;;  %132 = sbr.rel (%p872_p9) target bundleno = 87 (0x57), region = 20 }
  0x13   : > { %135 = sbr.rel (!%p53_p5) target bundleno = 87 (0x57), region = 24  ;;  %s137_s24 = sand.u32 (%p53_p5), 1, %s1119_s14  }
  0x14   : > { %s886_s25 = sshll.u32 (%p53_p5), %s1123_s15, 4  ;;  %s873_s26 = sshll.u32 (%p53_p5), %s137_s24, 10 }
  0x15   : > { %s1202_s29 = scalar_lea.vmem (%p53_p5), %s1670_s1, %s886_s25  ;;  %s1207_s30 = scalar_lea.vmem (%p53_p5), [#allocation2], %s873_s26 }
  0x16   : > { %v155_v0 = vld [vmem:[%s1202_s29] sm:$0xff] (%p53_p5)  ;;  %v157_v1 = vld [vmem:[%s1202_s29 + $0x8] sm:$0xff] (%p53_p5) }
  0x17   : > { %v159_v2 = vld [vmem:[%s1202_s29 + $0x20] sm:$0xff] (%p53_p5)  ;;  %156 = vst [vmem:[%s1207_s30] sm:$0xff] (%p53_p5), %v155_v0  ;;  %158 = vst [vmem:[%s1207_s30 + $0x8] sm:$0xff] (%p53_p5), %v157_v1  ;;  %v161_v3 = vld [vmem:[%s1202_s29 + $0x28] sm:$0xff] (%p53_p5) }
  0x18   : > { %160 = vst [vmem:[%s1207_s30 + $0x10] sm:$0xff] (%p53_p5), %v159_v2  ;;  %v163_v4 = vld [vmem:[%s1202_s29 + $0x40] sm:$0xff] (%p53_p5)  ;;  %v165_v5 = vld [vmem:[%s1202_s29 + $0x48] sm:$0xff] (%p53_p5)  ;;  %162 = vst [vmem:[%s1207_s30 + $0x18] sm:$0xff] (%p53_p5), %v161_v3 }
  0x19   : > { %164 = vst [vmem:[%s1207_s30 + $0x20] sm:$0xff] (%p53_p5), %v163_v4  ;;  %166 = vst [vmem:[%s1207_s30 + $0x28] sm:$0xff] (%p53_p5), %v165_v5  ;;  %v167_v6 = vld [vmem:[%s1202_s29 + $0x60] sm:$0xff] (%p53_p5)  ;;  %v169_v7 = vld [vmem:[%s1202_s29 + $0x68] sm:$0xff] (%p53_p5) }
  0x1a   : > { %v171_v8 = vld [vmem:[%s1202_s29 + $0x80] sm:$0xff]  ;;  %168 = vst [vmem:[%s1207_s30 + $0x30] sm:$0xff] %v167_v6  ;;  %170 = vst [vmem:[%s1207_s30 + $0x38] sm:$0xff] %v169_v7  ;;  %v173_v9 = vld [vmem:[%s1202_s29 + $0x88] sm:$0xff] }
  0x1b   : > { %172 = vst [vmem:[%s1207_s30 + $0x40] sm:$0xff] %v171_v8  ;;  %v175_v10 = vld [vmem:[%s1202_s29 + $0xa0] sm:$0xff]  ;;  %v177_v11 = vld [vmem:[%s1202_s29 + $0xa8] sm:$0xff]  ;;  %174 = vst [vmem:[%s1207_s30 + $0x48] sm:$0xff] %v173_v9 }
  0x1c   : > { %176 = vst [vmem:[%s1207_s30 + $0x50] sm:$0xff] %v175_v10  ;;  %178 = vst [vmem:[%s1207_s30 + $0x58] sm:$0xff] %v177_v11  ;;  %v179_v12 = vld [vmem:[%s1202_s29 + $0xc0] sm:$0xff]  ;;  %v181_v13 = vld [vmem:[%s1202_s29 + $0xc8] sm:$0xff] }
  0x1d   : > { %v183_v14 = vld [vmem:[%s1202_s29 + $0xe0] sm:$0xff]  ;;  %180 = vst [vmem:[%s1207_s30 + $0x60] sm:$0xff] %v179_v12  ;;  %182 = vst [vmem:[%s1207_s30 + $0x68] sm:$0xff] %v181_v13  ;;  %v185_v15 = vld [vmem:[%s1202_s29 + $0xe8] sm:$0xff] }
  0x1e   : > { %184 = vst [vmem:[%s1207_s30 + $0x70] sm:$0xff] %v183_v14  ;;  %v187_v16 = vld [vmem:[%s1202_s29 + $0x100] sm:$0xff]  ;;  %v189_v17 = vld [vmem:[%s1202_s29 + $0x108] sm:$0xff]  ;;  %186 = vst [vmem:[%s1207_s30 + $0x78] sm:$0xff] %v185_v15 }
  0x1f   : > { %188 = vst [vmem:[%s1207_s30 + $0x80] sm:$0xff] %v187_v16  ;;  %190 = vst [vmem:[%s1207_s30 + $0x88] sm:$0xff] %v189_v17  ;;  %v191_v18 = vld [vmem:[%s1202_s29 + $0x120] sm:$0xff]  ;;  %v193_v19 = vld [vmem:[%s1202_s29 + $0x128] sm:$0xff] }
  0x20   : > { %v195_v20 = vld [vmem:[%s1202_s29 + $0x140] sm:$0xff]  ;;  %192 = vst [vmem:[%s1207_s30 + $0x90] sm:$0xff] %v191_v18  ;;  %194 = vst [vmem:[%s1207_s30 + $0x98] sm:$0xff] %v193_v19  ;;  %v197_v21 = vld [vmem:[%s1202_s29 + $0x148] sm:$0xff] }
  0x21   : > { %196 = vst [vmem:[%s1207_s30 + $0xa0] sm:$0xff] %v195_v20  ;;  %v199_v22 = vld [vmem:[%s1202_s29 + $0x160] sm:$0xff]  ;;  %v201_v23 = vld [vmem:[%s1202_s29 + $0x168] sm:$0xff]  ;;  %198 = vst [vmem:[%s1207_s30 + $0xa8] sm:$0xff] %v197_v21 }
  0x22   : > { %200 = vst [vmem:[%s1207_s30 + $0xb0] sm:$0xff] %v199_v22  ;;  %202 = vst [vmem:[%s1207_s30 + $0xb8] sm:$0xff] %v201_v23  ;;  %v203_v24 = vld [vmem:[%s1202_s29 + $0x180] sm:$0xff]  ;;  %v205_v25 = vld [vmem:[%s1202_s29 + $0x188] sm:$0xff] }
  0x23   : > { %v207_v26 = vld [vmem:[%s1202_s29 + $0x1a0] sm:$0xff]  ;;  %204 = vst [vmem:[%s1207_s30 + $0xc0] sm:$0xff] %v203_v24  ;;  %206 = vst [vmem:[%s1207_s30 + $0xc8] sm:$0xff] %v205_v25  ;;  %v209_v27 = vld [vmem:[%s1202_s29 + $0x1a8] sm:$0xff] }
  0x24   : > { %208 = vst [vmem:[%s1207_s30 + $0xd0] sm:$0xff] %v207_v26  ;;  %v211_v28 = vld [vmem:[%s1202_s29 + $0x1c0] sm:$0xff]  ;;  %v213_v29 = vld [vmem:[%s1202_s29 + $0x1c8] sm:$0xff]  ;;  %210 = vst [vmem:[%s1207_s30 + $0xd8] sm:$0xff] %v209_v27 }
  0x25   : > { %212 = vst [vmem:[%s1207_s30 + $0xe0] sm:$0xff] %v211_v28  ;;  %214 = vst [vmem:[%s1207_s30 + $0xe8] sm:$0xff] %v213_v29  ;;  %v215_v30 = vld [vmem:[%s1202_s29 + $0x1e0] sm:$0xff]  ;;  %v217_v31 = vld [vmem:[%s1202_s29 + $0x1e8] sm:$0xff] }
  0x26   : > { %v219_v32 = vld [vmem:[%s1202_s29 + $0x200] sm:$0xff]  ;;  %216 = vst [vmem:[%s1207_s30 + $0xf0] sm:$0xff] %v215_v30  ;;  %218 = vst [vmem:[%s1207_s30 + $0xf8] sm:$0xff] %v217_v31  ;;  %v221_v33 = vld [vmem:[%s1202_s29 + $0x208] sm:$0xff] }
  0x27   : > { %220 = vst [vmem:[%s1207_s30 + $0x100] sm:$0xff] %v219_v32  ;;  %v223_v34 = vld [vmem:[%s1202_s29 + $0x220] sm:$0xff]  ;;  %v225_v35 = vld [vmem:[%s1202_s29 + $0x228] sm:$0xff]  ;;  %222 = vst [vmem:[%s1207_s30 + $0x108] sm:$0xff] %v221_v33 }
  0x28   : > { %224 = vst [vmem:[%s1207_s30 + $0x110] sm:$0xff] %v223_v34  ;;  %226 = vst [vmem:[%s1207_s30 + $0x118] sm:$0xff] %v225_v35  ;;  %v227_v36 = vld [vmem:[%s1202_s29 + $0x240] sm:$0xff]  ;;  %v229_v37 = vld [vmem:[%s1202_s29 + $0x248] sm:$0xff] }
  0x29   : > { %v231_v38 = vld [vmem:[%s1202_s29 + $0x260] sm:$0xff]  ;;  %228 = vst [vmem:[%s1207_s30 + $0x120] sm:$0xff] %v227_v36  ;;  %230 = vst [vmem:[%s1207_s30 + $0x128] sm:$0xff] %v229_v37  ;;  %v233_v39 = vld [vmem:[%s1202_s29 + $0x268] sm:$0xff] }
  0x2a   : > { %232 = vst [vmem:[%s1207_s30 + $0x130] sm:$0xff] %v231_v38  ;;  %v235_v40 = vld [vmem:[%s1202_s29 + $0x280] sm:$0xff]  ;;  %v237_v41 = vld [vmem:[%s1202_s29 + $0x288] sm:$0xff]  ;;  %234 = vst [vmem:[%s1207_s30 + $0x138] sm:$0xff] %v233_v39 }
  0x2b   : > { %236 = vst [vmem:[%s1207_s30 + $0x140] sm:$0xff] %v235_v40  ;;  %238 = vst [vmem:[%s1207_s30 + $0x148] sm:$0xff] %v237_v41  ;;  %v239_v42 = vld [vmem:[%s1202_s29 + $0x2a0] sm:$0xff]  ;;  %v241_v43 = vld [vmem:[%s1202_s29 + $0x2a8] sm:$0xff] }
  0x2c   : > { %v243_v44 = vld [vmem:[%s1202_s29 + $0x2c0] sm:$0xff]  ;;  %240 = vst [vmem:[%s1207_s30 + $0x150] sm:$0xff] %v239_v42  ;;  %242 = vst [vmem:[%s1207_s30 + $0x158] sm:$0xff] %v241_v43  ;;  %v245_v45 = vld [vmem:[%s1202_s29 + $0x2c8] sm:$0xff] }
  0x2d   : > { %244 = vst [vmem:[%s1207_s30 + $0x160] sm:$0xff] %v243_v44  ;;  %v247_v46 = vld [vmem:[%s1202_s29 + $0x2e0] sm:$0xff]  ;;  %v249_v47 = vld [vmem:[%s1202_s29 + $0x2e8] sm:$0xff]  ;;  %246 = vst [vmem:[%s1207_s30 + $0x168] sm:$0xff] %v245_v45 }
  0x2e   : > { %248 = vst [vmem:[%s1207_s30 + $0x170] sm:$0xff] %v247_v46  ;;  %250 = vst [vmem:[%s1207_s30 + $0x178] sm:$0xff] %v249_v47  ;;  %v251_v48 = vld [vmem:[%s1202_s29 + $0x300] sm:$0xff]  ;;  %v253_v49 = vld [vmem:[%s1202_s29 + $0x308] sm:$0xff] }
  0x2f   : > { %v255_v50 = vld [vmem:[%s1202_s29 + $0x320] sm:$0xff]  ;;  %252 = vst [vmem:[%s1207_s30 + $0x180] sm:$0xff] %v251_v48  ;;  %254 = vst [vmem:[%s1207_s30 + $0x188] sm:$0xff] %v253_v49  ;;  %v257_v51 = vld [vmem:[%s1202_s29 + $0x328] sm:$0xff] }
  0x30   : > { %256 = vst [vmem:[%s1207_s30 + $0x190] sm:$0xff] %v255_v50  ;;  %v259_v52 = vld [vmem:[%s1202_s29 + $0x340] sm:$0xff]  ;;  %v261_v53 = vld [vmem:[%s1202_s29 + $0x348] sm:$0xff]  ;;  %258 = vst [vmem:[%s1207_s30 + $0x198] sm:$0xff] %v257_v51 }
  0x31   : > { %260 = vst [vmem:[%s1207_s30 + $0x1a0] sm:$0xff] %v259_v52  ;;  %262 = vst [vmem:[%s1207_s30 + $0x1a8] sm:$0xff] %v261_v53  ;;  %v263_v54 = vld [vmem:[%s1202_s29 + $0x360] sm:$0xff]  ;;  %v265_v55 = vld [vmem:[%s1202_s29 + $0x368] sm:$0xff] }
  0x32   : > { %v267_v56 = vld [vmem:[%s1202_s29 + $0x380] sm:$0xff]  ;;  %264 = vst [vmem:[%s1207_s30 + $0x1b0] sm:$0xff] %v263_v54  ;;  %266 = vst [vmem:[%s1207_s30 + $0x1b8] sm:$0xff] %v265_v55  ;;  %v269_v57 = vld [vmem:[%s1202_s29 + $0x388] sm:$0xff] }
  0x33   : > { %268 = vst [vmem:[%s1207_s30 + $0x1c0] sm:$0xff] %v267_v56  ;;  %v271_v58 = vld [vmem:[%s1202_s29 + $0x3a0] sm:$0xff]  ;;  %v273_v59 = vld [vmem:[%s1202_s29 + $0x3a8] sm:$0xff]  ;;  %270 = vst [vmem:[%s1207_s30 + $0x1c8] sm:$0xff] %v269_v57 }
  0x34   : > { %272 = vst [vmem:[%s1207_s30 + $0x1d0] sm:$0xff] %v271_v58  ;;  %274 = vst [vmem:[%s1207_s30 + $0x1d8] sm:$0xff] %v273_v59  ;;  %v275_v60 = vld [vmem:[%s1202_s29 + $0x3c0] sm:$0xff]  ;;  %v277_v61 = vld [vmem:[%s1202_s29 + $0x3c8] sm:$0xff] }
  0x35   : > { %v279_v62 = vld [vmem:[%s1202_s29 + $0x3e0] sm:$0xff]  ;;  %276 = vst [vmem:[%s1207_s30 + $0x1e0] sm:$0xff] %v275_v60  ;;  %278 = vst [vmem:[%s1207_s30 + $0x1e8] sm:$0xff] %v277_v61  ;;  %v281_v63 = vld [vmem:[%s1202_s29 + $0x3e8] sm:$0xff] }
  0x36   : > { %280 = vst [vmem:[%s1207_s30 + $0x1f0] sm:$0xff] %v279_v62  ;;  %v283_v0 = vld [vmem:[%s1202_s29 + $0x400] sm:$0xff]  ;;  %v285_v1 = vld [vmem:[%s1202_s29 + $0x408] sm:$0xff]  ;;  %282 = vst [vmem:[%s1207_s30 + $0x1f8] sm:$0xff] %v281_v63 }
  0x37   : > { %284 = vst [vmem:[%s1207_s30 + $0x200] sm:$0xff] %v283_v0  ;;  %286 = vst [vmem:[%s1207_s30 + $0x208] sm:$0xff] %v285_v1  ;;  %v287_v2 = vld [vmem:[%s1202_s29 + $0x420] sm:$0xff]  ;;  %v289_v3 = vld [vmem:[%s1202_s29 + $0x428] sm:$0xff] }
  0x38   : > { %v291_v4 = vld [vmem:[%s1202_s29 + $0x440] sm:$0xff]  ;;  %288 = vst [vmem:[%s1207_s30 + $0x210] sm:$0xff] %v287_v2  ;;  %290 = vst [vmem:[%s1207_s30 + $0x218] sm:$0xff] %v289_v3  ;;  %v293_v5 = vld [vmem:[%s1202_s29 + $0x448] sm:$0xff] }
  0x39   : > { %292 = vst [vmem:[%s1207_s30 + $0x220] sm:$0xff] %v291_v4  ;;  %v295_v6 = vld [vmem:[%s1202_s29 + $0x460] sm:$0xff]  ;;  %v297_v7 = vld [vmem:[%s1202_s29 + $0x468] sm:$0xff]  ;;  %294 = vst [vmem:[%s1207_s30 + $0x228] sm:$0xff] %v293_v5 }
  0x3a   : > { %296 = vst [vmem:[%s1207_s30 + $0x230] sm:$0xff] %v295_v6  ;;  %298 = vst [vmem:[%s1207_s30 + $0x238] sm:$0xff] %v297_v7  ;;  %v299_v8 = vld [vmem:[%s1202_s29 + $0x480] sm:$0xff]  ;;  %v301_v9 = vld [vmem:[%s1202_s29 + $0x488] sm:$0xff] }
  0x3b   : > { %v303_v10 = vld [vmem:[%s1202_s29 + $0x4a0] sm:$0xff]  ;;  %300 = vst [vmem:[%s1207_s30 + $0x240] sm:$0xff] %v299_v8  ;;  %302 = vst [vmem:[%s1207_s30 + $0x248] sm:$0xff] %v301_v9  ;;  %v305_v11 = vld [vmem:[%s1202_s29 + $0x4a8] sm:$0xff] }
  0x3c   : > { %304 = vst [vmem:[%s1207_s30 + $0x250] sm:$0xff] %v303_v10  ;;  %v307_v12 = vld [vmem:[%s1202_s29 + $0x4c0] sm:$0xff]  ;;  %v309_v13 = vld [vmem:[%s1202_s29 + $0x4c8] sm:$0xff]  ;;  %306 = vst [vmem:[%s1207_s30 + $0x258] sm:$0xff] %v305_v11 }
  0x3d   : > { %308 = vst [vmem:[%s1207_s30 + $0x260] sm:$0xff] %v307_v12  ;;  %310 = vst [vmem:[%s1207_s30 + $0x268] sm:$0xff] %v309_v13  ;;  %v311_v14 = vld [vmem:[%s1202_s29 + $0x4e0] sm:$0xff]  ;;  %v313_v15 = vld [vmem:[%s1202_s29 + $0x4e8] sm:$0xff] }
  0x3e   : > { %v315_v16 = vld [vmem:[%s1202_s29 + $0x500] sm:$0xff]  ;;  %312 = vst [vmem:[%s1207_s30 + $0x270] sm:$0xff] %v311_v14  ;;  %314 = vst [vmem:[%s1207_s30 + $0x278] sm:$0xff] %v313_v15  ;;  %v317_v17 = vld [vmem:[%s1202_s29 + $0x508] sm:$0xff] }
  0x3f   : > { %316 = vst [vmem:[%s1207_s30 + $0x280] sm:$0xff] %v315_v16  ;;  %v319_v18 = vld [vmem:[%s1202_s29 + $0x520] sm:$0xff]  ;;  %v321_v19 = vld [vmem:[%s1202_s29 + $0x528] sm:$0xff]  ;;  %318 = vst [vmem:[%s1207_s30 + $0x288] sm:$0xff] %v317_v17 }
  0x40   : > { %320 = vst [vmem:[%s1207_s30 + $0x290] sm:$0xff] %v319_v18  ;;  %322 = vst [vmem:[%s1207_s30 + $0x298] sm:$0xff] %v321_v19  ;;  %v323_v20 = vld [vmem:[%s1202_s29 + $0x540] sm:$0xff]  ;;  %v325_v21 = vld [vmem:[%s1202_s29 + $0x548] sm:$0xff] }
  0x41   : > { %v327_v22 = vld [vmem:[%s1202_s29 + $0x560] sm:$0xff]  ;;  %324 = vst [vmem:[%s1207_s30 + $0x2a0] sm:$0xff] %v323_v20  ;;  %326 = vst [vmem:[%s1207_s30 + $0x2a8] sm:$0xff] %v325_v21  ;;  %v329_v23 = vld [vmem:[%s1202_s29 + $0x568] sm:$0xff] }
  0x42   : > { %328 = vst [vmem:[%s1207_s30 + $0x2b0] sm:$0xff] %v327_v22  ;;  %v331_v24 = vld [vmem:[%s1202_s29 + $0x580] sm:$0xff]  ;;  %v333_v25 = vld [vmem:[%s1202_s29 + $0x588] sm:$0xff]  ;;  %330 = vst [vmem:[%s1207_s30 + $0x2b8] sm:$0xff] %v329_v23 }
  0x43   : > { %332 = vst [vmem:[%s1207_s30 + $0x2c0] sm:$0xff] %v331_v24  ;;  %334 = vst [vmem:[%s1207_s30 + $0x2c8] sm:$0xff] %v333_v25  ;;  %v335_v26 = vld [vmem:[%s1202_s29 + $0x5a0] sm:$0xff]  ;;  %v337_v27 = vld [vmem:[%s1202_s29 + $0x5a8] sm:$0xff] }
  0x44   : > { %v339_v28 = vld [vmem:[%s1202_s29 + $0x5c0] sm:$0xff]  ;;  %336 = vst [vmem:[%s1207_s30 + $0x2d0] sm:$0xff] %v335_v26  ;;  %338 = vst [vmem:[%s1207_s30 + $0x2d8] sm:$0xff] %v337_v27  ;;  %v341_v29 = vld [vmem:[%s1202_s29 + $0x5c8] sm:$0xff] }
  0x45   : > { %340 = vst [vmem:[%s1207_s30 + $0x2e0] sm:$0xff] %v339_v28  ;;  %v343_v30 = vld [vmem:[%s1202_s29 + $0x5e0] sm:$0xff]  ;;  %v345_v31 = vld [vmem:[%s1202_s29 + $0x5e8] sm:$0xff]  ;;  %342 = vst [vmem:[%s1207_s30 + $0x2e8] sm:$0xff] %v341_v29 }
  0x46   : > { %344 = vst [vmem:[%s1207_s30 + $0x2f0] sm:$0xff] %v343_v30  ;;  %346 = vst [vmem:[%s1207_s30 + $0x2f8] sm:$0xff] %v345_v31  ;;  %v347_v32 = vld [vmem:[%s1202_s29 + $0x600] sm:$0xff]  ;;  %v349_v33 = vld [vmem:[%s1202_s29 + $0x608] sm:$0xff] }
  0x47   : > { %v351_v34 = vld [vmem:[%s1202_s29 + $0x620] sm:$0xff]  ;;  %348 = vst [vmem:[%s1207_s30 + $0x300] sm:$0xff] %v347_v32  ;;  %350 = vst [vmem:[%s1207_s30 + $0x308] sm:$0xff] %v349_v33  ;;  %v353_v35 = vld [vmem:[%s1202_s29 + $0x628] sm:$0xff] }
  0x48   : > { %352 = vst [vmem:[%s1207_s30 + $0x310] sm:$0xff] %v351_v34  ;;  %v355_v36 = vld [vmem:[%s1202_s29 + $0x640] sm:$0xff]  ;;  %v357_v37 = vld [vmem:[%s1202_s29 + $0x648] sm:$0xff]  ;;  %354 = vst [vmem:[%s1207_s30 + $0x318] sm:$0xff] %v353_v35 }
  0x49   : > { %356 = vst [vmem:[%s1207_s30 + $0x320] sm:$0xff] %v355_v36  ;;  %358 = vst [vmem:[%s1207_s30 + $0x328] sm:$0xff] %v357_v37  ;;  %v359_v38 = vld [vmem:[%s1202_s29 + $0x660] sm:$0xff]  ;;  %v361_v39 = vld [vmem:[%s1202_s29 + $0x668] sm:$0xff] }
  0x4a   : > { %v363_v40 = vld [vmem:[%s1202_s29 + $0x680] sm:$0xff]  ;;  %360 = vst [vmem:[%s1207_s30 + $0x330] sm:$0xff] %v359_v38  ;;  %362 = vst [vmem:[%s1207_s30 + $0x338] sm:$0xff] %v361_v39  ;;  %v365_v41 = vld [vmem:[%s1202_s29 + $0x688] sm:$0xff] }
  0x4b   : > { %364 = vst [vmem:[%s1207_s30 + $0x340] sm:$0xff] %v363_v40  ;;  %v367_v42 = vld [vmem:[%s1202_s29 + $0x6a0] sm:$0xff]  ;;  %v369_v43 = vld [vmem:[%s1202_s29 + $0x6a8] sm:$0xff]  ;;  %366 = vst [vmem:[%s1207_s30 + $0x348] sm:$0xff] %v365_v41 }
  0x4c   : > { %368 = vst [vmem:[%s1207_s30 + $0x350] sm:$0xff] %v367_v42  ;;  %370 = vst [vmem:[%s1207_s30 + $0x358] sm:$0xff] %v369_v43  ;;  %v371_v44 = vld [vmem:[%s1202_s29 + $0x6c0] sm:$0xff]  ;;  %v373_v45 = vld [vmem:[%s1202_s29 + $0x6c8] sm:$0xff] }
  0x4d   : > { %v375_v46 = vld [vmem:[%s1202_s29 + $0x6e0] sm:$0xff]  ;;  %372 = vst [vmem:[%s1207_s30 + $0x360] sm:$0xff] %v371_v44  ;;  %374 = vst [vmem:[%s1207_s30 + $0x368] sm:$0xff] %v373_v45  ;;  %v377_v47 = vld [vmem:[%s1202_s29 + $0x6e8] sm:$0xff] }
  0x4e   : > { %376 = vst [vmem:[%s1207_s30 + $0x370] sm:$0xff] %v375_v46  ;;  %v379_v48 = vld [vmem:[%s1202_s29 + $0x700] sm:$0xff]  ;;  %v381_v49 = vld [vmem:[%s1202_s29 + $0x708] sm:$0xff]  ;;  %378 = vst [vmem:[%s1207_s30 + $0x378] sm:$0xff] %v377_v47 }
  0x4f   : > { %380 = vst [vmem:[%s1207_s30 + $0x380] sm:$0xff] %v379_v48  ;;  %382 = vst [vmem:[%s1207_s30 + $0x388] sm:$0xff] %v381_v49  ;;  %v383_v50 = vld [vmem:[%s1202_s29 + $0x720] sm:$0xff]  ;;  %v385_v51 = vld [vmem:[%s1202_s29 + $0x728] sm:$0xff] }
  0x50   : > { %v387_v52 = vld [vmem:[%s1202_s29 + $0x740] sm:$0xff]  ;;  %384 = vst [vmem:[%s1207_s30 + $0x390] sm:$0xff] %v383_v50  ;;  %386 = vst [vmem:[%s1207_s30 + $0x398] sm:$0xff] %v385_v51  ;;  %v389_v53 = vld [vmem:[%s1202_s29 + $0x748] sm:$0xff] }
  0x51   : > { %388 = vst [vmem:[%s1207_s30 + $0x3a0] sm:$0xff] %v387_v52  ;;  %v391_v54 = vld [vmem:[%s1202_s29 + $0x760] sm:$0xff]  ;;  %v393_v55 = vld [vmem:[%s1202_s29 + $0x768] sm:$0xff]  ;;  %390 = vst [vmem:[%s1207_s30 + $0x3a8] sm:$0xff] %v389_v53 }
  0x52   : > { %392 = vst [vmem:[%s1207_s30 + $0x3b0] sm:$0xff] %v391_v54  ;;  %394 = vst [vmem:[%s1207_s30 + $0x3b8] sm:$0xff] %v393_v55  ;;  %v395_v56 = vld [vmem:[%s1202_s29 + $0x780] sm:$0xff]  ;;  %v397_v57 = vld [vmem:[%s1202_s29 + $0x788] sm:$0xff] }
  0x53   : > { %v399_v58 = vld [vmem:[%s1202_s29 + $0x7a0] sm:$0xff]  ;;  %396 = vst [vmem:[%s1207_s30 + $0x3c0] sm:$0xff] %v395_v56  ;;  %398 = vst [vmem:[%s1207_s30 + $0x3c8] sm:$0xff] %v397_v57  ;;  %v401_v59 = vld [vmem:[%s1202_s29 + $0x7a8] sm:$0xff] }
  0x54   : > { %400 = vst [vmem:[%s1207_s30 + $0x3d0] sm:$0xff] %v399_v58  ;;  %v403_v60 = vld [vmem:[%s1202_s29 + $0x7c0] sm:$0xff]  ;;  %v405_v61 = vld [vmem:[%s1202_s29 + $0x7c8] sm:$0xff]  ;;  %402 = vst [vmem:[%s1207_s30 + $0x3d8] sm:$0xff] %v401_v59 }
  0x55   : > { %404 = vst [vmem:[%s1207_s30 + $0x3e0] sm:$0xff] %v403_v60  ;;  %406 = vst [vmem:[%s1207_s30 + $0x3e8] sm:$0xff] %v405_v61  ;;  %v407_v62 = vld [vmem:[%s1202_s29 + $0x7e0] sm:$0xff]  ;;  %v409_v63 = vld [vmem:[%s1202_s29 + $0x7e8] sm:$0xff] }
  0x56   : > { %408 = vst [vmem:[%s1207_s30 + $0x3f0] sm:$0xff] %v407_v62  ;;  %410 = vst [vmem:[%s1207_s30 + $0x3f8] sm:$0xff] %v409_v63 }
  0x57 PF: > { %p876_p10 = scmp.ge.s32.totalorder %s1123_s15, 1  ;;  %p423_p11 = scmp.lt.s32.totalorder %s1123_s15, 3 }
  0x59   : > { %p424_p12 = pnand %p876_p10, %p423_p11 }
  0x5a   : > { %s1465_s4 = sand.u32 (!%p424_p12), 1, %s1115_s13   ;;  %v595_v0 = vlaneseq (!%p424_p12)  ;;  %v464_v1 = vld [vmem:[%s1669_s0] sm:$0xff] (!%p424_p12)  ;;  %v1125_v2 = vmov (!%p424_p12), 1983009808   ;;  %s879_s9 = sshll.u32 (!%p424_p12), %s1168_s16, 1 }
  0x5b   : > { %427 = sbr.rel (%p424_p12) target bundleno = 393 (0x189), region = 51  ;;  %s877_s5 = sshll.u32 (!%p424_p12), %s1465_s4, 10  ;;  %v608_v3 = vunpack.c.l.s4 (!%p424_p12), %v1125_v2  ;;  %v606_v13 = vcombine.high (!%p424_p12), %v464_v1, %v464_v1 }
  0x5c   : > { %v1471_v4 = vshrl.u32 (!%p424_p12), %v595_v0, 7  ;;  %s1473_s8 = scalar_lea.vmem (!%p424_p12), [#allocation2], %s877_s5  ;;  %p459_p13 = scmp.lt.s32.totalorder (!%p424_p12), %s879_s9, 3 }
  0x5d   : > { %v466_v5 = vld [vmem:[%s1473_s8 + $0x8] sm:$0xff] (!%p424_p12)  ;;  %v468_v6 = vld [vmem:[%s1473_s8 + $0x18] sm:$0xff] (!%p424_p12)  ;;  %v465_v7 = vld [vmem:[%s1473_s8] sm:$0xff] (!%p424_p12)  ;;  %v609_v8 = vunpack.c.0.s8 (!%p424_p12), %v608_v3  ;;  %s878_s19 = sshll.u32 (!%p424_p12), %s1465_s4, 2  ;;  %s887_s20 = sshll.u32 (!%p424_p12), %s1168_s16, 6 }
  0x5e   : > { %v888_v9 = vpack.c.bf16 (!%p424_p12), %v468_v6, %v466_v5  ;;  %v467_v10 = vld [vmem:[%s1473_s8 + $0x10] sm:$0xff] (!%p424_p12)  ;;  %v530_v11 = vld [vmem:[%s1473_s8 + $0x208] sm:$0xff] (!%p424_p12)  ;;  %v532_v12 = vld [vmem:[%s1473_s8 + $0x218] sm:$0xff] (!%p424_p12)  ;;  %s456_s24 = scalar_lea.vmem (!%p424_p12), [#allocation3], %s878_s19  ;;  %s1625_s28 = scalar_lea.hbm (!%p424_p12), %s1672_s3, %s887_s20 }
  0x5f   : > { %v890_v14 = vpack.c.bf16 (!%p424_p12), %v467_v10, %v465_v7  ;;  %v952_v15 = vpack.c.bf16 (!%p424_p12), %v532_v12, %v530_v11  ;;  %v529_v16 = vld [vmem:[%s1473_s8 + $0x200] sm:$0xff] (!%p424_p12)  ;;  %v531_v17 = vld [vmem:[%s1473_s8 + $0x210] sm:$0xff] (!%p424_p12)  ;;  %v470_v18 = vld [vmem:[%s1473_s8 + $0x28] sm:$0xff] (!%p424_p12)  ;;  %v612_v19 = vsub.s32 (!%p424_p12), %v609_v8, %v1471_v4  ;;  %s796_s25 = sshll.u32 (!%p424_p12), %s456_s24, 4  ;;  %s782_s29 = scalar_lea.sflag (!%p424_p12), [#allocation4], %s1465_s4  ;;  %s1627_s25 = int_to_ptr.vmem [resolvable:$true] %s796_s25 }
  0x60   : > { %889 = vmatprep.subr.bf16.mxu1 (!%p424_p12), %v888_v9  ;;  %v954_v20 = vpack.c.bf16 (!%p424_p12), %v531_v17, %v529_v16  ;;  %v472_v21 = vld [vmem:[%s1473_s8 + $0x38] sm:$0xff] (!%p424_p12)  ;;  %v469_v22 = vld [vmem:[%s1473_s8 + $0x20] sm:$0xff] (!%p424_p12)  ;;  %v471_v23 = vld [vmem:[%s1473_s8 + $0x30] sm:$0xff] (!%p424_p12)  ;;  %s1061_s30 = scalar_lea.vmem (!%p424_p12), %s1627_s25, 64  ;;  %s1126_s16 = smov (!%p424_p12), [#allocation3]  }
  0x61   : > { %891 = vmatpush1.bf16.msra.mxu1 (!%p424_p12), %v890_v14  ;;  %953 = vmatprep.subr.bf16.mxu0 (!%p424_p12), %v952_v15  ;;  %v892_v24 = vpack.c.bf16 (!%p424_p12), %v472_v21, %v470_v18  ;;  %v894_v25 = vpack.c.bf16 (!%p424_p12), %v471_v23, %v469_v22  ;;  %v534_v26 = vld [vmem:[%s1473_s8 + $0x228] sm:$0xff] (!%p424_p12)  ;;  %v536_v27 = vld [vmem:[%s1473_s8 + $0x238] sm:$0xff] (!%p424_p12)  ;;  %v533_v28 = vld [vmem:[%s1473_s8 + $0x220] sm:$0xff] (!%p424_p12)  ;;  %v1491_v29 = vrot.slane (!%p424_p12), %v464_v1, %v612_v19  ;;  %p1062_p0 = scmp.ne.s32.totalorder (!%p424_p12), %s1627_s25, %s1061_s30  ;;  %s1065_s5 = sshll.u32 (!%p424_p12), %s1126_s16, 4  ;;  %s1066_s5 = int_to_ptr.vmem [resolvable:$false] %s1065_s5 }
  0x62   : > { %955 = vmatpush1.bf16.msra.mxu0 %v954_v20  ;;  %v956_v30 = vpack.c.bf16 %v536_v27, %v534_v26  ;;  %v535_v31 = vld [vmem:[%s1473_s8 + $0x230] sm:$0xff]  ;;  %v474_v32 = vld [vmem:[%s1473_s8 + $0x48] sm:$0xff]  ;;  %v476_v33 = vld [vmem:[%s1473_s8 + $0x58] sm:$0xff]  ;;  %v1496_v34 = vrot.slane %v606_v13, %v612_v19  ;;  %s1680_s9 = smov (!%p459_p13, %s879_s9), 3  ;;  %s1067_s6 = scalar_lea.vmem %s1066_s5, 128 }
  0x63   : > { %893 = vmatprep.subr.bf16.mxu1 %v892_v24  ;;  %v958_v35 = vpack.c.bf16 %v535_v31, %v533_v28  ;;  %v896_v36 = vpack.c.bf16 %v476_v33, %v474_v32  ;;  %v473_v37 = vld [vmem:[%s1473_s8 + $0x40] sm:$0xff]  ;;  %v475_v38 = vld [vmem:[%s1473_s8 + $0x50] sm:$0xff]  ;;  %v538_v39 = vld [vmem:[%s1473_s8 + $0x248] sm:$0xff]  ;;  %v621_v40 = vcombine.high %v1491_v29, %v1491_v29  ;;  %s461_s17 = scalar_lea.vmem %s1671_s2, %s1680_s9  ;;  %p1063_p1 = pnand %p1062_p0, %p1186_p6 }
  0x64   : > { %957 = vmatprep.subr.bf16.mxu0 %v956_v30  ;;  %v540_v41 = vld [vmem:[%s1473_s8 + $0x258] sm:$0xff]  ;;  %v537_v42 = vld [vmem:[%s1473_s8 + $0x240] sm:$0xff]  ;;  %v539_v43 = vld [vmem:[%s1473_s8 + $0x250] sm:$0xff]  ;;  %v622_v44 = vcombine.high %v1496_v34, %v1496_v34  ;;  %v898_v45 = vpack.c.bf16 %v475_v38, %v473_v37  ;;  %p1068_p3 = scmp.lt.s32.totalorder %s1627_s25, %s1066_s5  ;;  %p1069_p4 = scmp.lt.s32.totalorder %s1067_s6, %s1061_s30 }
  0x65   : > { %895 = vmatpush1.bf16.msra.mxu1 %v894_v25  ;;  %v960_v46 = vpack.c.bf16 %v540_v41, %v538_v39  ;;  %v478_v47 = vld [vmem:[%s1473_s8 + $0x68] sm:$0xff]  ;;  %v480_v48 = vld [vmem:[%s1473_s8 + $0x78] sm:$0xff]  ;;  %v477_v49 = vld [vmem:[%s1473_s8 + $0x60] sm:$0xff]  ;;  %691 = vmatprep.mubr.f32.mxu1 %v621_v40  ;;  %v962_v50 = vpack.c.bf16 %v539_v43, %v537_v42  ;;  %p1064_p2 = pneg %p1063_p1 }
  0x66   : > { %959 = vmatpush1.bf16.msra.mxu0 %v958_v35  ;;  %897 = vmatprep.subr.bf16.mxu1 %v896_v36  ;;  %v900_v51 = vpack.c.bf16 %v480_v48, %v478_v47  ;;  %v479_v52 = vld [vmem:[%s1473_s8 + $0x70] sm:$0xff]  ;;  %v542_v53 = vld [vmem:[%s1473_s8 + $0x268] sm:$0xff]  ;;  %v544_v54 = vld [vmem:[%s1473_s8 + $0x278] sm:$0xff]  ;;  %p1070_p5 = por %p1069_p4, %p1068_p3 }
  0x67   : > { %961 = vmatprep.subr.bf16.mxu0 %v960_v46  ;;  %v964_v55 = vpack.c.bf16 %v544_v54, %v542_v53  ;;  %v541_v56 = vld [vmem:[%s1473_s8 + $0x260] sm:$0xff]  ;;  %v543_v57 = vld [vmem:[%s1473_s8 + $0x270] sm:$0xff]  ;;  %v482_v58 = vld [vmem:[%s1473_s8 + $0x88] sm:$0xff]  ;;  %762 = vmatprep.mubr.f32.mxu0 %v622_v44  ;;  %v902_v60 = vpack.c.bf16 %v479_v52, %v477_v49 }
  0x68   : > { %v484_v59 = vld [vmem:[%s1473_s8 + $0x98] sm:$0xff]  ;;  %v546_v61 = vld [vmem:[%s1473_s8 + $0x288] sm:$0xff]  ;;  %v966_v63 = vpack.c.bf16 %v543_v57, %v541_v56  ;;  %v481_v1 = vld [vmem:[%s1473_s8 + $0x80] sm:$0xff]  ;;  %p1071_p7 = pnand %p1070_p5, %p1064_p2 }
  0x69   : > { %899 = vmatpush1.bf16.msra.mxu1 %v898_v45  ;;  %v548_v62 = vld [vmem:[%s1473_s8 + $0x298] sm:$0xff]  ;;  %v904_v0 = vpack.c.bf16 %v484_v59, %v482_v58  ;;  %v483_v2 = vld [vmem:[%s1473_s8 + $0x90] sm:$0xff]  ;;  %v545_v3 = vld [vmem:[%s1473_s8 + $0x280] sm:$0xff] }
  0x6a   : > { %963 = vmatpush1.bf16.msra.mxu0 %v962_v50  ;;  %901 = vmatprep.subr.bf16.mxu1 %v900_v51  ;;  %v968_v5 = vpack.c.bf16 %v548_v62, %v546_v61  ;;  %v547_v6 = vld [vmem:[%s1473_s8 + $0x290] sm:$0xff]  ;;  %v486_v7 = vld [vmem:[%s1473_s8 + $0xa8] sm:$0xff]  ;;  %v488_v8 = vld [vmem:[%s1473_s8 + $0xb8] sm:$0xff]  ;;  %v906_v11 = vpack.c.bf16 %v483_v2, %v481_v1 }
  0x6b   : > { %965 = vmatprep.subr.bf16.mxu0 %v964_v55  ;;  %v550_v9 = vld [vmem:[%s1473_s8 + $0x2a8] sm:$0xff]  ;;  %v552_v10 = vld [vmem:[%s1473_s8 + $0x2b8] sm:$0xff]  ;;  %v970_v12 = vpack.c.bf16 %v547_v6, %v545_v3  ;;  %v908_v13 = vpack.c.bf16 %v488_v8, %v486_v7  ;;  %v485_v14 = vld [vmem:[%s1473_s8 + $0xa0] sm:$0xff] }
  0x6c   : > { %v487_v15 = vld [vmem:[%s1473_s8 + $0xb0] sm:$0xff]  ;;  %v549_v16 = vld [vmem:[%s1473_s8 + $0x2a0] sm:$0xff]  ;;  %v972_v17 = vpack.c.bf16 %v552_v10, %v550_v9  ;;  %v490_v19 = vld [vmem:[%s1473_s8 + $0xc8] sm:$0xff] }
  0x6d   : > { %903 = vmatpush1.bf16.msra.mxu1 %v902_v60  ;;  %v551_v18 = vld [vmem:[%s1473_s8 + $0x2b0] sm:$0xff]  ;;  %v492_v20 = vld [vmem:[%s1473_s8 + $0xd8] sm:$0xff]  ;;  %v554_v21 = vld [vmem:[%s1473_s8 + $0x2c8] sm:$0xff]  ;;  %v910_v23 = vpack.c.bf16 %v487_v15, %v485_v14 }
  0x6e   : > { %967 = vmatpush1.bf16.msra.mxu0 %v966_v63  ;;  %905 = vmatprep.subr.bf16.mxu1 %v904_v0  ;;  %v556_v22 = vld [vmem:[%s1473_s8 + $0x2d8] sm:$0xff]  ;;  %v974_v24 = vpack.c.bf16 %v551_v18, %v549_v16  ;;  %v912_v25 = vpack.c.bf16 %v492_v20, %v490_v19  ;;  %v489_v26 = vld [vmem:[%s1473_s8 + $0xc0] sm:$0xff]  ;;  %v491_v27 = vld [vmem:[%s1473_s8 + $0xd0] sm:$0xff] }
  0x6f   : > { %969 = vmatprep.subr.bf16.mxu0 %v968_v5  ;;  %v553_v28 = vld [vmem:[%s1473_s8 + $0x2c0] sm:$0xff]  ;;  %v976_v30 = vpack.c.bf16 %v556_v22, %v554_v21  ;;  %v555_v31 = vld [vmem:[%s1473_s8 + $0x2d0] sm:$0xff]  ;;  %v494_v32 = vld [vmem:[%s1473_s8 + $0xe8] sm:$0xff]  ;;  %v914_v37 = vpack.c.bf16 %v491_v27, %v489_v26 }
  0x70   : > { %v496_v33 = vld [vmem:[%s1473_s8 + $0xf8] sm:$0xff]  ;;  %v558_v35 = vld [vmem:[%s1473_s8 + $0x2e8] sm:$0xff]  ;;  %v978_v38 = vpack.c.bf16 %v555_v31, %v553_v28  ;;  %v493_v40 = vld [vmem:[%s1473_s8 + $0xe0] sm:$0xff] }
  0x71   : > { %907 = vmatpush1.bf16.msra.mxu1 %v906_v11  ;;  %v560_v36 = vld [vmem:[%s1473_s8 + $0x2f8] sm:$0xff]  ;;  %v916_v39 = vpack.c.bf16 %v496_v33, %v494_v32  ;;  %v495_v41 = vld [vmem:[%s1473_s8 + $0xf0] sm:$0xff]  ;;  %v557_v42 = vld [vmem:[%s1473_s8 + $0x2e0] sm:$0xff] }
  0x72   : > { %971 = vmatpush1.bf16.msra.mxu0 %v970_v12  ;;  %909 = vmatprep.subr.bf16.mxu1 %v908_v13  ;;  %v980_v43 = vpack.c.bf16 %v560_v36, %v558_v35  ;;  %v559_v44 = vld [vmem:[%s1473_s8 + $0x2f0] sm:$0xff]  ;;  %v498_v45 = vld [vmem:[%s1473_s8 + $0x108] sm:$0xff]  ;;  %v500_v46 = vld [vmem:[%s1473_s8 + $0x118] sm:$0xff]  ;;  %v918_v49 = vpack.c.bf16 %v495_v41, %v493_v40 }
  0x73   : > { %973 = vmatprep.subr.bf16.mxu0 %v972_v17  ;;  %v562_v47 = vld [vmem:[%s1473_s8 + $0x308] sm:$0xff]  ;;  %v564_v48 = vld [vmem:[%s1473_s8 + $0x318] sm:$0xff]  ;;  %v982_v50 = vpack.c.bf16 %v559_v44, %v557_v42  ;;  %v920_v51 = vpack.c.bf16 %v500_v46, %v498_v45  ;;  %v497_v52 = vld [vmem:[%s1473_s8 + $0x100] sm:$0xff] }
  0x74   : > { %v499_v53 = vld [vmem:[%s1473_s8 + $0x110] sm:$0xff]  ;;  %v561_v54 = vld [vmem:[%s1473_s8 + $0x300] sm:$0xff]  ;;  %v984_v55 = vpack.c.bf16 %v564_v48, %v562_v47  ;;  %v502_v57 = vld [vmem:[%s1473_s8 + $0x128] sm:$0xff] }
  0x75   : > { %911 = vmatpush1.bf16.msra.mxu1 %v910_v23  ;;  %v563_v56 = vld [vmem:[%s1473_s8 + $0x310] sm:$0xff]  ;;  %v504_v58 = vld [vmem:[%s1473_s8 + $0x138] sm:$0xff]  ;;  %v566_v59 = vld [vmem:[%s1473_s8 + $0x328] sm:$0xff]  ;;  %v922_v61 = vpack.c.bf16 %v499_v53, %v497_v52 }
  0x76   : > { %975 = vmatpush1.bf16.msra.mxu0 %v974_v24  ;;  %913 = vmatprep.subr.bf16.mxu1 %v912_v25  ;;  %v568_v60 = vld [vmem:[%s1473_s8 + $0x338] sm:$0xff]  ;;  %v986_v62 = vpack.c.bf16 %v563_v56, %v561_v54  ;;  %v924_v63 = vpack.c.bf16 %v504_v58, %v502_v57  ;;  %v501_v0 = vld [vmem:[%s1473_s8 + $0x120] sm:$0xff]  ;;  %v503_v1 = vld [vmem:[%s1473_s8 + $0x130] sm:$0xff] }
  0x77   : > { %977 = vmatprep.subr.bf16.mxu0 %v976_v30  ;;  %v565_v2 = vld [vmem:[%s1473_s8 + $0x320] sm:$0xff]  ;;  %v988_v3 = vpack.c.bf16 %v568_v60, %v566_v59  ;;  %v567_v5 = vld [vmem:[%s1473_s8 + $0x330] sm:$0xff]  ;;  %v506_v6 = vld [vmem:[%s1473_s8 + $0x148] sm:$0xff]  ;;  %v926_v10 = vpack.c.bf16 %v503_v1, %v501_v0 }
  0x78   : > { %v508_v7 = vld [vmem:[%s1473_s8 + $0x158] sm:$0xff]  ;;  %v570_v8 = vld [vmem:[%s1473_s8 + $0x348] sm:$0xff]  ;;  %v990_v11 = vpack.c.bf16 %v567_v5, %v565_v2  ;;  %v505_v13 = vld [vmem:[%s1473_s8 + $0x140] sm:$0xff] }
  0x79   : > { %915 = vmatpush1.bf16.msra.mxu1 %v914_v37  ;;  %v572_v9 = vld [vmem:[%s1473_s8 + $0x358] sm:$0xff]  ;;  %v928_v12 = vpack.c.bf16 %v508_v7, %v506_v6  ;;  %v507_v14 = vld [vmem:[%s1473_s8 + $0x150] sm:$0xff]  ;;  %v569_v15 = vld [vmem:[%s1473_s8 + $0x340] sm:$0xff] }
  0x7a   : > { %979 = vmatpush1.bf16.msra.mxu0 %v978_v38  ;;  %917 = vmatprep.subr.bf16.mxu1 %v916_v39  ;;  %v992_v16 = vpack.c.bf16 %v572_v9, %v570_v8  ;;  %v571_v17 = vld [vmem:[%s1473_s8 + $0x350] sm:$0xff]  ;;  %v510_v18 = vld [vmem:[%s1473_s8 + $0x168] sm:$0xff]  ;;  %v512_v19 = vld [vmem:[%s1473_s8 + $0x178] sm:$0xff]  ;;  %v930_v22 = vpack.c.bf16 %v507_v14, %v505_v13 }
  0x7b   : > { %981 = vmatprep.subr.bf16.mxu0 %v980_v43  ;;  %v574_v20 = vld [vmem:[%s1473_s8 + $0x368] sm:$0xff]  ;;  %v576_v21 = vld [vmem:[%s1473_s8 + $0x378] sm:$0xff]  ;;  %v994_v23 = vpack.c.bf16 %v571_v17, %v569_v15  ;;  %v932_v24 = vpack.c.bf16 %v512_v19, %v510_v18  ;;  %v509_v25 = vld [vmem:[%s1473_s8 + $0x160] sm:$0xff]  ;;  %v597_v19 = vsub.s32 0, %v1471_v4 }
  0x7c   : > { %v511_v26 = vld [vmem:[%s1473_s8 + $0x170] sm:$0xff]  ;;  %v573_v27 = vld [vmem:[%s1473_s8 + $0x360] sm:$0xff]  ;;  %v996_v28 = vpack.c.bf16 %v576_v21, %v574_v20  ;;  %v514_v31 = vld [vmem:[%s1473_s8 + $0x188] sm:$0xff]  ;;  %v601_v21 = vsub.s32 1, %v1471_v4 }
  0x7d   : > { %919 = vmatpush1.bf16.msra.mxu1 %v918_v49  ;;  %v575_v30 = vld [vmem:[%s1473_s8 + $0x370] sm:$0xff]  ;;  %v516_v32 = vld [vmem:[%s1473_s8 + $0x198] sm:$0xff]  ;;  %v578_v33 = vld [vmem:[%s1473_s8 + $0x388] sm:$0xff]  ;;  %v934_v36 = vpack.c.bf16 %v511_v26, %v509_v25 }
  0x7e   : > { %983 = vmatpush1.bf16.msra.mxu0 %v982_v50  ;;  %921 = vmatprep.subr.bf16.mxu1 %v920_v51  ;;  %v580_v35 = vld [vmem:[%s1473_s8 + $0x398] sm:$0xff]  ;;  %v998_v37 = vpack.c.bf16 %v575_v30, %v573_v27  ;;  %v936_v38 = vpack.c.bf16 %v516_v32, %v514_v31  ;;  %v513_v39 = vld [vmem:[%s1473_s8 + $0x180] sm:$0xff]  ;;  %v515_v40 = vld [vmem:[%s1473_s8 + $0x190] sm:$0xff] }
  0x7f   : > { %985 = vmatprep.subr.bf16.mxu0 %v984_v55  ;;  %v577_v41 = vld [vmem:[%s1473_s8 + $0x380] sm:$0xff]  ;;  %v1000_v42 = vpack.c.bf16 %v580_v35, %v578_v33  ;;  %v579_v43 = vld [vmem:[%s1473_s8 + $0x390] sm:$0xff]  ;;  %v518_v44 = vld [vmem:[%s1473_s8 + $0x1a8] sm:$0xff]  ;;  %v938_v48 = vpack.c.bf16 %v515_v40, %v513_v39 }
  0x80   : > { %v520_v45 = vld [vmem:[%s1473_s8 + $0x1b8] sm:$0xff]  ;;  %v582_v46 = vld [vmem:[%s1473_s8 + $0x3a8] sm:$0xff]  ;;  %v1002_v49 = vpack.c.bf16 %v579_v43, %v577_v41  ;;  %v517_v51 = vld [vmem:[%s1473_s8 + $0x1a0] sm:$0xff] }
  0x81   : > { %923 = vmatpush1.bf16.msra.mxu1 %v922_v61  ;;  %v584_v47 = vld [vmem:[%s1473_s8 + $0x3b8] sm:$0xff]  ;;  %v940_v50 = vpack.c.bf16 %v520_v45, %v518_v44  ;;  %v519_v52 = vld [vmem:[%s1473_s8 + $0x1b0] sm:$0xff]  ;;  %v581_v53 = vld [vmem:[%s1473_s8 + $0x3a0] sm:$0xff] }
  0x82   : > { %987 = vmatpush1.bf16.msra.mxu0 %v986_v62  ;;  %925 = vmatprep.subr.bf16.mxu1 %v924_v63  ;;  %v1004_v54 = vpack.c.bf16 %v584_v47, %v582_v46  ;;  %v583_v55 = vld [vmem:[%s1473_s8 + $0x3b0] sm:$0xff]  ;;  %v522_v56 = vld [vmem:[%s1473_s8 + $0x1c8] sm:$0xff]  ;;  %v524_v57 = vld [vmem:[%s1473_s8 + $0x1d8] sm:$0xff]  ;;  %v942_v60 = vpack.c.bf16 %v519_v52, %v517_v51 }
  0x83   : > { %989 = vmatprep.subr.bf16.mxu0 %v988_v3  ;;  %v586_v58 = vld [vmem:[%s1473_s8 + $0x3c8] sm:$0xff]  ;;  %v588_v59 = vld [vmem:[%s1473_s8 + $0x3d8] sm:$0xff]  ;;  %v1006_v61 = vpack.c.bf16 %v583_v55, %v581_v53  ;;  %v944_v62 = vpack.c.bf16 %v524_v57, %v522_v56  ;;  %v521_v63 = vld [vmem:[%s1473_s8 + $0x1c0] sm:$0xff] }
  0x84   : > { %v523_v0 = vld [vmem:[%s1473_s8 + $0x1d0] sm:$0xff]  ;;  %v585_v1 = vld [vmem:[%s1473_s8 + $0x3c0] sm:$0xff]  ;;  %v1008_v2 = vpack.c.bf16 %v588_v59, %v586_v58  ;;  %v526_v5 = vld [vmem:[%s1473_s8 + $0x1e8] sm:$0xff] }
  0x85   : > { %927 = vmatpush1.bf16.msra.mxu1 %v926_v10  ;;  %v587_v3 = vld [vmem:[%s1473_s8 + $0x3d0] sm:$0xff]  ;;  %v528_v6 = vld [vmem:[%s1473_s8 + $0x1f8] sm:$0xff]  ;;  %v590_v7 = vld [vmem:[%s1473_s8 + $0x3e8] sm:$0xff]  ;;  %v946_v9 = vpack.c.bf16 %v523_v0, %v521_v63 }
  0x86   : > { %991 = vmatpush1.bf16.msra.mxu0 %v990_v11  ;;  %929 = vmatprep.subr.bf16.mxu1 %v928_v12  ;;  %v592_v8 = vld [vmem:[%s1473_s8 + $0x3f8] sm:$0xff]  ;;  %v1010_v10 = vpack.c.bf16 %v587_v3, %v585_v1  ;;  %v948_v11 = vpack.c.bf16 %v528_v6, %v526_v5  ;;  %v525_v12 = vld [vmem:[%s1473_s8 + $0x1e0] sm:$0xff]  ;;  %v527_v13 = vld [vmem:[%s1473_s8 + $0x1f0] sm:$0xff] }
  0x87   : > { %993 = vmatprep.subr.bf16.mxu0 %v992_v16  ;;  %v1012_v14 = vpack.c.bf16 %v592_v8, %v590_v7  ;;  %v589_v15 = vld [vmem:[%s1473_s8 + $0x3e0] sm:$0xff]  ;;  %v591_v16 = vld [vmem:[%s1473_s8 + $0x3f0] sm:$0xff]  ;;  %v950_v17 = vpack.c.bf16 %v527_v13, %v525_v12 }
  0x88   : > { %v1014_v18 = vpack.c.bf16 %v591_v16, %v589_v15  ;;  %v593_v20 = vld [vmem:[%s461_s17] sm:$0x3] }
  0x89   : > { %931 = vmatpush1.bf16.msra.mxu1 %v930_v22  ;;  %v598_v22 = vrot.slane %v593_v20, %v597_v19 }
  0x8a   : > { %995 = vmatpush1.bf16.msra.mxu0 %v994_v23  ;;  %933 = vmatprep.subr.bf16.mxu1 %v932_v24  ;;  %v602_v23 = vrot.slane %v593_v20, %v601_v21 }
  0x8b   : > { %997 = vmatprep.subr.bf16.mxu0 %v996_v28 }
  0x8d   : > { %935 = vmatpush1.bf16.msra.mxu1 %v934_v36 }
  0x8e   : > { %999 = vmatpush1.bf16.msra.mxu0 %v998_v37  ;;  %937 = vmatprep.subr.bf16.mxu1 %v936_v38 }
  0x8f   : > { %1001 = vmatprep.subr.bf16.mxu0 %v1000_v42 }
  0x91   : > { %939 = vmatpush1.bf16.msra.mxu1 %v938_v48 }
  0x92   : > { %1003 = vmatpush1.bf16.msra.mxu0 %v1002_v49  ;;  %941 = vmatprep.subr.bf16.mxu1 %v940_v50 }
  0x93   : > { %1005 = vmatprep.subr.bf16.mxu0 %v1004_v54 }
  0x95   : > { %943 = vmatpush1.bf16.msra.mxu1 %v942_v60 }
  0x96   : > { %1007 = vmatpush1.bf16.msra.mxu0 %v1006_v61  ;;  %945 = vmatprep.subr.bf16.mxu1 %v944_v62 }
  0x97   : > { %1009 = vmatprep.subr.bf16.mxu0 %v1008_v2 }
  0x99   : > { %947 = vmatpush1.bf16.msra.mxu1 %v946_v9 }
  0x9a   : > { %1011 = vmatpush1.bf16.msra.mxu0 %v1010_v10  ;;  %949 = vmatprep.subr.bf16.mxu1 %v948_v11 }
  0x9b   : > { %1013 = vmatprep.subr.bf16.mxu0 %v1012_v14 }
  0x9d   : > { %951 = vmatpush1.bf16.msra.mxu1 %v950_v17 }
  0x9e   : > { %1015 = vmatpush1.bf16.msra.mxu0 %v1014_v18 }
  0xa0   : > { %692 = vmatmul.mubr.f32.vlgmr.msra.gmra.mrb[0].mxu1 %v1491_v29 }
  0xa1   : > { %763 = vmatmul.mubr.f32.vlgmr.msra.gmra.mrb[0].mxu0 %v1496_v34 }
 0x173   : > { %v693_v29 = vpop.f32.mrb[0].mxu1 }
 0x174   : > { %v694_v24 = vadd.f32 %v693_v29, %v598_v22  ;;  %v695_v34 = vpop.f32.mrb[1].mxu1  ;;  %v764_v25 = vpop.f32.mrb[0].mxu0 }
 0x175   : > { %v696_v26 = vadd.f32 %v695_v34, %v602_v23  ;;  %v766_v27 = vpop.f32.mrb[1].mxu0 }
 0x176   : > { %v765_v28 = vadd.f32 %v764_v25, %v694_v24 }
 0x177   : > { %v767_v30 = vadd.f32 %v766_v27, %v696_v26 }
 0x179   : > { %v771_v31 = vcombine.low %v765_v28, %v767_v30 }
 0x17b   : > { %880 = vst.sshfl [vmem:[%s456_s24] sm:$0x33 pattern:$0x76325410] %v771_v31 }
 0x17c   : > { %1074 = shalt.err (!%p1071_p7)
}
 0x17d   : > { %s1075_s4 = scalar_lea.hbm %s1625_s28, 64  ;;  %s1079_s9 = scalar_lea.hbm %s1672_s3, 128 }
 0x17e   : > { %p1076_p10 = scmp.ne.s32.totalorder %s1625_s28, %s1075_s4  ;;  %p1080_p13 = scmp.lt.u32.totalorder %s1625_s28, %s1672_s3 }
 0x17f   : > { %p1081_p0 = scmp.lt.u32.totalorder %s1079_s9, %s1075_s4  ;;  %p1083_p2 = scmp.lt.u32.totalorder %s1075_s4, %s1625_s28 }
 0x180   : > { %p1077_p11 = pnand %p1076_p10, %p1186_p6 }
 0x181   : > { %p1082_p1 = por %p1081_p0, %p1080_p13 }
 0x182   : > { %p1078_p12 = pneg %p1077_p11 }
 0x183   : > { %p1084_p3 = por %p1083_p2, %p1082_p1 }
 0x185   : > { %p1085_p4 = pnand %p1084_p3, %p1078_p12 }
 0x187   : > { %1088 = shalt.err (!%p1085_p4)
}
 0x188   : > { %1020 = dma.vmem_to_hbm [thread:$0]  (%p1186_p6), %s1627_s25, 64, %s1625_s28, %s782_s29  }
 0x189 PF: > { %s808_s17 = sand.u32 1, %s1111_s12   ;;  %p1023_p5 = pnand %p872_p9, %p1190_p8 }
 0x18a   : > { %s809_s19 = scalar_lea.sflag [#allocation4], %s808_s17 }
 0x18b   : > { %1106 = dma.done.wait (!%p1023_p5), %s809_s19, 64  }
 0x18c   : > { %1108 = vsyncadd (!%p1023_p5), %s809_s19, 4294967232  ;;  %p13_p7 = scmp.ge.s32.totalorder %s1172_s18, 4   ;;  %s1675_s12 = smov %s1115_s13 }
 0x18d   : > { %s1676_s13 = smov %s1119_s14  ;;  %s1677_s14 = smov %s1184_s21 }
 0x18e   : > { %s1678_s15 = smov %s1172_s18  ;;  %15 = sbr.rel (!%p13_p7) target bundleno = 3 (0x3), region = 98 }
 0x195   :  { %814 = vsyncpa [#allocation4], 1 }
 0x196   :  { %816 = vsyncpa [#allocation4 + $0x1], 1 }

// kernel: decoder_forward.2
= control target key start
LH: loop header
LB: loop body
LE: loop exit
PB: predicated region body
PF: predicated region fallthrough
CT: control target
= control target key end

     0   :  { %s4346_s0 = inlined_call_operand.vmem [shape: s32[2], index: 0, kind: input, shape index: {}]   ;;  %s4347_s1 = inlined_call_operand.hbm [shape: f32[512,128], index: 1, kind: input, shape index: {}]   ;;  %s4348_s2 = inlined_call_operand.vmem [shape: f32[2,8,128], index: 2, kind: input, shape index: {}]   ;;  %s4349_s3 = inlined_call_operand.vmem [shape: f32[2,2,128], index: 3, kind: input, shape index: {}]   ;;  %s4350_s4 = inlined_call_operand.hbm [shape: f32[3,128,128], index: 4, kind: input, shape index: {}]   ;;  %s4351_s5 = inlined_call_operand.hbm [shape: f32[3,128,128], index: 5, kind: input, shape index: {}]   ;;  %s4352_s6 = inlined_call_operand.hbm [shape: f32[3,1,128], index: 6, kind: input, shape index: {}]   ;;  %s4353_s7 = inlined_call_operand.hbm [shape: f32[3,1,128], index: 7, kind: input, shape index: {}]   ;;  %s4354_s8 = inlined_call_operand.hbm [shape: f32[3,128,128], index: 8, kind: input, shape index: {}]   ;;  %s4355_s9 = inlined_call_operand.hbm [shape: f32[3,128,128], index: 9, kind: input, shape index: {}]   ;;  %s4356_s10 = inlined_call_operand.hbm [shape: f32[3,1,128], index: 10, kind: input, shape index: {}]   ;;  %s4357_s11 = inlined_call_operand.hbm [shape: f32[3,1,128], index: 11, kind: input, shape index: {}]   ;;  %s4358_s12 = inlined_call_operand.hbm [shape: f32[128,256], index: 12, kind: input, shape index: {}]   ;;  %s4359_s13 = inlined_call_operand.hbm [shape: f32[1,256], index: 13, kind: input, shape index: {}]   ;;  %s4360_s14 = inlined_call_operand.hbm [shape: f32[256,512], index: 14, kind: input, shape index: {}]   ;;  %s4361_s15 = inlined_call_operand.hbm [shape: f32[1,512], index: 15, kind: input, shape index: {}]   ;;  %s4362_s16 = inlined_call_operand.hbm [shape: f32[2,2,128], index: 16, kind: output, shape index: {0}]   ;;  %s4363_s17 = inlined_call_operand.vmem [shape: f32[2,512], index: 17, kind: output, shape index: {1}]  }
   0x1   :  { %4365 = sst [smem:[#allocation44_spill]] %s4346_s0 }
   0x2   :  { %4366 = sst [smem:[#allocation45_spill]] %s4347_s1 }
   0x3   :  { %4367 = sst [smem:[#allocation46_spill]] %s4363_s17 }
   0x4   :  { %23 = vsyncpa [#allocation7], 0 }
   0x5   :  { %24 = vsyncpa [#allocation5], 0 }
   0x6   :  { %25 = vsyncpa [#allocation10], 0 }
   0x7   :  { %26 = vsyncpa [#allocation13], 0 }
   0x8   :  { %27 = vsyncpa [#allocation16], 0 }
   0x9   :  { %28 = vsyncpa [#allocation19], 0 }
   0xa   :  { %29 = vsyncpa [#allocation22], 0 }
   0xb   :  { %30 = vsyncpa [#allocation25], 0 }
   0xc   :  { %31 = vsyncpa [#allocation6], 0  ;;  %s3802_s24 = smov [#allocation9]   ;;  %s3434_s28 = scalar_lea.hbm %s4351_s5, 6144 }
   0xd   :  { %s63_s25 = sshll.u32 %s3802_s24, 4  ;;  %p3435_p0 = scmp.ne.s32.totalorder %s4351_s5, %s3434_s28  ;;  %s64_s25 = int_to_ptr.vmem [resolvable:$true] %s63_s25 }
   0xe   :  { %p3438_p1 = scmp.lt.u32.totalorder %s3434_s28, %s4351_s5 }
  0x10   :  { %p3440_p2 = pnand %p3438_p1, %p3435_p0 }
  0x12   :  { %3443 = shalt.err (!%p3440_p2)
}
  0x13   :  { %s3444_s19 = scalar_lea.vmem %s64_s25, 6144  ;;  %p3449_p4 = scmp.lt.s32.totalorder %s64_s25, %s64_s25 }
  0x14   :  { %p3445_p3 = scmp.ne.s32.totalorder %s64_s25, %s3444_s19  ;;  %p3450_p5 = scmp.lt.s32.totalorder %s3444_s19, %s3444_s19 }
  0x16   :  { %p3451_p6 = por %p3450_p5, %p3449_p4 }
  0x18   :  { %p3452_p7 = pnand %p3451_p6, %p3445_p3 }
  0x1a   :  { %3455 = shalt.err (!%p3452_p7)
}
  0x1b   :  { %s3803_s1 = smov 128   ;;  %s3804_s20 = smov 8  }
  0x1c   :  { %69 = dma.hbm_to_vmem [thread:$0]  %s4351_s5, 6144, %s64_s25, [#allocation10], %s3803_s1, %s3803_s1, %s3804_s20  }
  0x1d   :  { %s3805_s23 = smov [#allocation12]   ;;  %s3806_s26 = smov [#allocation15]  }
  0x1e   :  { %s87_s24 = sshll.u32 %s3805_s23, 4  ;;  %s111_s27 = sshll.u32 %s3806_s26, 4  ;;  %s88_s24 = int_to_ptr.vmem [resolvable:$true] %s87_s24  ;;  %s112_s27 = int_to_ptr.vmem [resolvable:$true] %s111_s27 }
  0x1f   :  { %s3456_s0 = scalar_lea.hbm %s4353_s7, 48 }
  0x20   :  { %p3457_p8 = scmp.ne.s32.totalorder %s4353_s7, %s3456_s0  ;;  %p3460_p9 = scmp.lt.u32.totalorder %s3456_s0, %s4353_s7 }
  0x22   :  { %p3462_p10 = pnand %p3460_p9, %p3457_p8 }
  0x24   :  { %3465 = shalt.err (!%p3462_p10)
}
  0x25   :  { %s3466_s5 = scalar_lea.vmem %s88_s24, 48  ;;  %s3470_s25 = scalar_lea.vmem %s88_s24, 64 }
  0x26   :  { %p3467_p11 = scmp.ne.s32.totalorder %s88_s24, %s3466_s5  ;;  %p3471_p12 = scmp.lt.s32.totalorder %s88_s24, %s88_s24 }
  0x27   :  { %p3472_p13 = scmp.lt.s32.totalorder %s3470_s25, %s3466_s5 }
  0x29   :  { %p3473_p0 = por %p3472_p13, %p3471_p12 }
  0x2b   :  { %p3474_p1 = pnand %p3473_p0, %p3467_p11 }
  0x2d   :  { %3477 = shalt.err (!%p3474_p1)
}
  0x2e   :  { %s3807_s21 = smov 16   ;;  %s3808_s22 = smov 1  }
  0x2f   :  { %93 = dma.hbm_to_vmem [thread:$0]  %s4353_s7, 48, %s88_s24, [#allocation13], %s3807_s21, %s3807_s21, %s3808_s22  }
  0x30   :  { %s3478_s29 = scalar_lea.hbm %s4355_s9, 6144 }
  0x31   :  { %p3479_p2 = scmp.ne.s32.totalorder %s4355_s9, %s3478_s29  ;;  %p3482_p3 = scmp.lt.u32.totalorder %s3478_s29, %s4355_s9 }
  0x33   :  { %p3484_p4 = pnand %p3482_p3, %p3479_p2 }
  0x35   :  { %3487 = shalt.err (!%p3484_p4)
}
  0x36   :  { %s3488_s5 = scalar_lea.vmem %s112_s27, 6144  ;;  %p3493_p6 = scmp.lt.s32.totalorder %s112_s27, %s112_s27 }
  0x37   :  { %p3489_p5 = scmp.ne.s32.totalorder %s112_s27, %s3488_s5  ;;  %p3494_p7 = scmp.lt.s32.totalorder %s3488_s5, %s3488_s5 }
  0x39   :  { %p3495_p8 = por %p3494_p7, %p3493_p6 }
  0x3b   :  { %p3496_p9 = pnand %p3495_p8, %p3489_p5 }
  0x3d   :  { %3499 = shalt.err (!%p3496_p9)
}
  0x3e   :  { %117 = dma.hbm_to_vmem [thread:$0]  %s4355_s9, 6144, %s112_s27, [#allocation16], %s3803_s1, %s3803_s1, %s3804_s20  }
  0x3f   :  { %s3809_s25 = smov [#allocation18]   ;;  %s3810_s26 = smov [#allocation21]  }
  0x40   :  { %s135_s23 = sshll.u32 %s3809_s25, 4  ;;  %s160_s17 = sshll.u32 %s3810_s26, 4  ;;  %s136_s23 = int_to_ptr.vmem [resolvable:$true] %s135_s23  ;;  %s161_s17 = int_to_ptr.vmem [resolvable:$true] %s160_s17 }
  0x41   :  { %s3500_s0 = scalar_lea.hbm %s4357_s11, 48 }
  0x42   :  { %p3501_p10 = scmp.ne.s32.totalorder %s4357_s11, %s3500_s0  ;;  %p3504_p11 = scmp.lt.u32.totalorder %s3500_s0, %s4357_s11 }
  0x44   :  { %p3506_p12 = pnand %p3504_p11, %p3501_p10 }
  0x46   :  { %3509 = shalt.err (!%p3506_p12)
}
  0x47   :  { %s3510_s9 = scalar_lea.vmem %s136_s23, 48  ;;  %s3514_s27 = scalar_lea.vmem %s136_s23, 64 }
  0x48   :  { %p3511_p13 = scmp.ne.s32.totalorder %s136_s23, %s3510_s9  ;;  %p3515_p0 = scmp.lt.s32.totalorder %s136_s23, %s136_s23 }
  0x49   :  { %p3516_p1 = scmp.lt.s32.totalorder %s3514_s27, %s3510_s9 }
  0x4b   :  { %p3517_p2 = por %p3516_p1, %p3515_p0 }
  0x4d   :  { %p3518_p3 = pnand %p3517_p2, %p3511_p13 }
  0x4f   :  { %3521 = shalt.err (!%p3518_p3)
}
  0x50   :  { %141 = dma.hbm_to_vmem [thread:$0]  %s4357_s11, 48, %s136_s23, [#allocation19], %s3807_s21, %s3807_s21, %s3808_s22  }
  0x51   :  { %s4368_s28 = sld [smem:[#allocation44_spill]]  ;;  %s3522_s18 = scalar_lea.hbm %s4359_s13, 32 }
  0x52   :  { %p3523_p4 = scmp.ne.s32.totalorder %s4359_s13, %s3522_s18  ;;  %p3526_p5 = scmp.lt.u32.totalorder %s3522_s18, %s4359_s13 }
  0x54   :  { %p3528_p6 = pnand %p3526_p5, %p3523_p4 }
  0x57   :  { %s38_s29 = sshll.u32 %s4368_s28, 4  ;;  %s39_s29 = int_to_ptr.vmem [resolvable:$true] %s38_s29 }
  0x58   :  { %3531 = shalt.err (!%p3528_p6)
}
  0x59   :  { %s3532_s11 = scalar_lea.vmem %s161_s17, 32  ;;  %p3537_p8 = scmp.lt.s32.totalorder %s161_s17, %s161_s17 }
  0x5a   :  { %p3533_p7 = scmp.ne.s32.totalorder %s161_s17, %s3532_s11  ;;  %p3538_p9 = scmp.lt.s32.totalorder %s3532_s11, %s3532_s11 }
  0x5c   :  { %p3539_p10 = por %p3538_p9, %p3537_p8 }
  0x5e   :  { %p3540_p11 = pnand %p3539_p10, %p3533_p7 }
  0x60   :  { %3543 = shalt.err (!%p3540_p11)
}
  0x61   :  { %163 = dma.hbm_to_vmem [thread:$0]  %s4359_s13, 32, %s161_s17, [#allocation22]  }
  0x62   :  { %s3544_s24 = scalar_lea.vmem %s39_s29, 16  ;;  %p3549_p13 = scmp.lt.s32.totalorder %s39_s29, %s39_s29 }
  0x63   :  { %p3545_p12 = scmp.ne.s32.totalorder %s39_s29, %s3544_s24  ;;  %p3550_p0 = scmp.lt.s32.totalorder %s3544_s24, %s3544_s24 }
  0x65   :  { %p3551_p1 = por %p3550_p0, %p3549_p13 }
  0x67   :  { %p3552_p2 = pnand %p3551_p1, %p3545_p12 }
  0x69   :  { %3555 = shalt.err (!%p3552_p2)
}
  0x6a   :  { %s3811_s25 = smov [#allocation4]   ;;  %s3812_s26 = smov [#allocation8]  }
  0x6b   :  { %41 = dma.vmem_to_smem %s39_s29, 16, %s3811_s25, [#allocation7]  }
  0x6c   :  { %s51_s28 = sshll.u32 %s3812_s26, 4  ;;  %s3813_s0 = smov [#allocation11]   ;;  %s52_s28 = int_to_ptr.vmem [resolvable:$true] %s51_s28 }
  0x6d   :  { %s75_s30 = sshll.u32 %s3813_s0, 4  ;;  %s3556_s13 = scalar_lea.hbm %s4350_s4, 6144  ;;  %s3995_s30 = int_to_ptr.vmem [resolvable:$true] %s75_s30 }
  0x6e   :  { %p3557_p3 = scmp.ne.s32.totalorder %s4350_s4, %s3556_s13  ;;  %p3560_p4 = scmp.lt.u32.totalorder %s3556_s13, %s4350_s4 }
  0x70   :  { %p3562_p5 = pnand %p3560_p4, %p3557_p3 }
  0x72   :  { %3565 = shalt.err (!%p3562_p5)
}
  0x73   :  { %s3566_s29 = scalar_lea.vmem %s52_s28, 6144  ;;  %p3571_p7 = scmp.lt.s32.totalorder %s52_s28, %s52_s28 }
  0x74   :  { %p3567_p6 = scmp.ne.s32.totalorder %s52_s28, %s3566_s29  ;;  %p3572_p8 = scmp.lt.s32.totalorder %s3566_s29, %s3566_s29 }
  0x76   :  { %p3573_p9 = por %p3572_p8, %p3571_p7 }
  0x78   :  { %p3574_p10 = pnand %p3573_p9, %p3567_p6 }
  0x7a   :  { %3577 = shalt.err (!%p3574_p10)
}
  0x7b   :  { %57 = dma.hbm_to_vmem [thread:$0]  %s4350_s4, 6144, %s52_s28, [#allocation5], %s3803_s1, %s3803_s1, %s3804_s20  }
  0x7c   :  { %s3578_s25 = scalar_lea.hbm %s4352_s6, 48 }
  0x7d   :  { %p3579_p11 = scmp.ne.s32.totalorder %s4352_s6, %s3578_s25  ;;  %p3582_p12 = scmp.lt.u32.totalorder %s3578_s25, %s4352_s6 }
  0x7f   :  { %p3584_p13 = pnand %p3582_p12, %p3579_p11 }
  0x81   :  { %3587 = shalt.err (!%p3584_p13)
}
  0x82   :  { %s3588_s13 = scalar_lea.vmem %s3995_s30, 48  ;;  %s3592_s4 = scalar_lea.vmem %s3995_s30, 64 }
  0x83   :  { %p3589_p0 = scmp.ne.s32.totalorder %s3995_s30, %s3588_s13  ;;  %p3593_p1 = scmp.lt.s32.totalorder %s3995_s30, %s3995_s30 }
  0x84   :  { %p3594_p2 = scmp.lt.s32.totalorder %s3592_s4, %s3588_s13 }
  0x86   :  { %p3595_p3 = por %p3594_p2, %p3593_p1 }
  0x88   :  { %p3596_p4 = pnand %p3595_p3, %p3589_p0 }
  0x8a   :  { %3599 = shalt.err (!%p3596_p4)
}
  0x8b   :  { %81 = dma.hbm_to_vmem [thread:$0]  %s4352_s6, 48, %s3995_s30, [#allocation10], %s3807_s21, %s3807_s21, %s3808_s22  }
  0x8c   :  { %s3814_s5 = smov [#allocation14]   ;;  %s3815_s27 = smov [#allocation17]  }
  0x8d   :  { %s99_s9 = sshll.u32 %s3814_s5, 4  ;;  %s123_s29 = sshll.u32 %s3815_s27, 4  ;;  %s100_s9 = int_to_ptr.vmem [resolvable:$true] %s99_s9  ;;  %s4033_s29 = int_to_ptr.vmem [resolvable:$true] %s123_s29 }
  0x8e   :  { %s3600_s7 = scalar_lea.hbm %s4354_s8, 6144 }
  0x8f   :  { %p3601_p5 = scmp.ne.s32.totalorder %s4354_s8, %s3600_s7  ;;  %p3604_p6 = scmp.lt.u32.totalorder %s3600_s7, %s4354_s8 }
  0x91   :  { %p3606_p7 = pnand %p3604_p6, %p3601_p5 }
  0x93   :  { %3609 = shalt.err (!%p3606_p7)
}
  0x94   :  { %s3610_s6 = scalar_lea.vmem %s100_s9, 6144  ;;  %p3615_p9 = scmp.lt.s32.totalorder %s100_s9, %s100_s9 }
  0x95   :  { %p3611_p8 = scmp.ne.s32.totalorder %s100_s9, %s3610_s6  ;;  %p3616_p10 = scmp.lt.s32.totalorder %s3610_s6, %s3610_s6 }
  0x97   :  { %p3617_p11 = por %p3616_p10, %p3615_p9 }
  0x99   :  { %p3618_p12 = pnand %p3617_p11, %p3611_p8 }
  0x9b   :  { %3621 = shalt.err (!%p3618_p12)
}
  0x9c   :  { %105 = dma.hbm_to_vmem [thread:$0]  %s4354_s8, 6144, %s100_s9, [#allocation13], %s3803_s1, %s3803_s1, %s3804_s20  }
  0x9d   :  { %s3622_s4 = scalar_lea.hbm %s4356_s10, 48 }
  0x9e   :  { %p3623_p13 = scmp.ne.s32.totalorder %s4356_s10, %s3622_s4  ;;  %p3626_p0 = scmp.lt.u32.totalorder %s3622_s4, %s4356_s10 }
  0xa0   :  { %p3628_p1 = pnand %p3626_p0, %p3623_p13 }
  0xa2   :  { %3631 = shalt.err (!%p3628_p1)
}
  0xa3   :  { %s3632_s11 = scalar_lea.vmem %s4033_s29, 48  ;;  %s3636_s8 = scalar_lea.vmem %s4033_s29, 64 }
  0xa4   :  { %p3633_p2 = scmp.ne.s32.totalorder %s4033_s29, %s3632_s11  ;;  %p3637_p3 = scmp.lt.s32.totalorder %s4033_s29, %s4033_s29 }
  0xa5   :  { %p3638_p4 = scmp.lt.s32.totalorder %s3636_s8, %s3632_s11 }
  0xa7   :  { %p3639_p5 = por %p3638_p4, %p3637_p3 }
  0xa9   :  { %p3640_p6 = pnand %p3639_p5, %p3633_p2 }
  0xab   :  { %3643 = shalt.err (!%p3640_p6)
}
  0xac   :  { %129 = dma.hbm_to_vmem [thread:$0]  %s4356_s10, 48, %s4033_s29, [#allocation16], %s3807_s21, %s3807_s21, %s3808_s22  }
  0xad   :  { %s3816_s9 = smov [#allocation20]   ;;  %s3817_s7 = smov [#allocation23]  }
  0xae   :  { %s147_s23 = sshll.u32 %s3816_s9, 4  ;;  %s169_s24 = sshll.u32 %s3817_s7, 4  ;;  %s148_s23 = int_to_ptr.vmem [resolvable:$true] %s147_s23  ;;  %s170_s24 = int_to_ptr.vmem [resolvable:$true] %s169_s24 }
  0xaf   :  { %s3644_s0 = scalar_lea.hbm %s4358_s12, 4096 }
  0xb0   :  { %p3645_p7 = scmp.ne.s32.totalorder %s4358_s12, %s3644_s0  ;;  %p3648_p8 = scmp.lt.u32.totalorder %s3644_s0, %s4358_s12 }
  0xb2   :  { %p3650_p9 = pnand %p3648_p8, %p3645_p7 }
  0xb4   :  { %3653 = shalt.err (!%p3650_p9)
}
  0xb5   :  { %s3654_s10 = scalar_lea.vmem %s148_s23, 4096  ;;  %p3659_p11 = scmp.lt.s32.totalorder %s148_s23, %s148_s23 }
  0xb6   :  { %p3655_p10 = scmp.ne.s32.totalorder %s148_s23, %s3654_s10  ;;  %p3660_p12 = scmp.lt.s32.totalorder %s3654_s10, %s3654_s10 }
  0xb8   :  { %p3661_p13 = por %p3660_p12, %p3659_p11 }
  0xba   :  { %p3662_p0 = pnand %p3661_p13, %p3655_p10 }
  0xbc   :  { %3665 = shalt.err (!%p3662_p0)
}
  0xbd   :  { %s3818_s22 = smov 256   ;;  %s3666_s17 = scalar_lea.hbm %s4360_s14, 16384 }
  0xbe   :  { %153 = dma.hbm_to_vmem [thread:$0]  %s4358_s12, 4096, %s148_s23, [#allocation19], %s3818_s22, %s3818_s22, %s3807_s21  }
  0xbf   :  { %p3667_p1 = scmp.ne.s32.totalorder %s4360_s14, %s3666_s17  ;;  %p3670_p2 = scmp.lt.u32.totalorder %s3666_s17, %s4360_s14 }
  0xc1   :  { %p3672_p3 = pnand %p3670_p2, %p3667_p1 }
  0xc3   :  { %3675 = shalt.err (!%p3672_p3)
}
  0xc4   :  { %s3676_s1 = scalar_lea.vmem %s170_s24, 16384  ;;  %p3681_p5 = scmp.lt.s32.totalorder %s170_s24, %s170_s24 }
  0xc5   :  { %p3677_p4 = scmp.ne.s32.totalorder %s170_s24, %s3676_s1  ;;  %p3682_p6 = scmp.lt.s32.totalorder %s3676_s1, %s3676_s1 }
  0xc7   :  { %p3683_p7 = por %p3682_p6, %p3681_p5 }
  0xc9   :  { %p3684_p8 = pnand %p3683_p7, %p3677_p4 }
  0xcb   :  { %3687 = shalt.err (!%p3684_p8)
}
  0xcc   :  { %s3819_s12 = smov 512   ;;  %s3820_s21 = smov 32  }
  0xcd   :  { %175 = dma.hbm_to_vmem [thread:$0]  %s4360_s14, 16384, %s170_s24, [#allocation22], %s3819_s12, %s3819_s12, %s3820_s21  }
  0xce   :  { %s3821_s23 = smov [#allocation24]   ;;  %s3688_s0 = scalar_lea.hbm %s4361_s15, 64 }
  0xcf   :  { %s182_s7 = sshll.u32 %s3821_s23, 4  ;;  %p3689_p9 = scmp.ne.s32.totalorder %s4361_s15, %s3688_s0  ;;  %s183_s7 = int_to_ptr.vmem [resolvable:$true] %s182_s7 }
  0xd0   :  { %p3692_p10 = scmp.lt.u32.totalorder %s3688_s0, %s4361_s15 }
  0xd2   :  { %p3694_p11 = pnand %p3692_p10, %p3689_p9 }
  0xd4   :  { %3697 = shalt.err (!%p3694_p11)
}
  0xd5   :  { %s3698_s10 = scalar_lea.vmem %s183_s7, 64  ;;  %p3703_p13 = scmp.lt.s32.totalorder %s183_s7, %s183_s7 }
  0xd6   :  { %p3699_p12 = scmp.ne.s32.totalorder %s183_s7, %s3698_s10  ;;  %p3704_p0 = scmp.lt.s32.totalorder %s3698_s10, %s3698_s10 }
  0xd8   :  { %p3705_p1 = por %p3704_p0, %p3703_p13 }
  0xda   :  { %p3706_p2 = pnand %p3705_p1, %p3699_p12 }
  0xdc   :  { %3709 = shalt.err (!%p3706_p2)
}
  0xdd   :  { %185 = dma.hbm_to_vmem [thread:$0]  %s4361_s15, 64, %s183_s7, [#allocation25]  }
  0xde   :  { %3780 = dma.done.wait [#allocation7], 16  }
  0xdf   :  { %3781 = vsyncadd [#allocation7], 4294967280 }
  0xe0   :  { %3782 = dma.done.wait [#allocation5], 6144  }
  0xe1   :  { %3783 = vsyncadd [#allocation5], 4294961152 }
  0xe2   :  { %3784 = dma.done.wait [#allocation10], 6192  }
  0xe3   :  { %3785 = vsyncadd [#allocation10], 4294961104 }
  0xe4   :  { %3786 = dma.done.wait [#allocation13], 6192  }
  0xe5   :  { %3787 = vsyncadd [#allocation13], 4294961104 }
  0xe6   :  { %3788 = dma.done.wait [#allocation16], 6192  }
  0xe7   :  { %3789 = vsyncadd [#allocation16], 4294961104 }
  0xe8   :  { %3790 = dma.done.wait [#allocation19], 4144  }
  0xe9   :  { %3791 = vsyncadd [#allocation19], 4294963152 }
  0xea   :  { %3792 = dma.done.wait [#allocation22], 16416  }
  0xeb   :  { %3793 = vsyncadd [#allocation22], 4294950880 }
  0xec   :  { %3794 = dma.done.wait [#allocation25], 64  }
  0xed   :  { %3795 = vsyncadd [#allocation25], 4294967232 }
  0xee   :  { %225 = sfence }
  0xef   :  { %v256_v0 = vld [vmem:[%s4348_s2] sm:$0xff]  ;;  %v3822_v1 = vmov 0.0   ;;  %vm3823_vm0 = vmmov 0   ;;  %v257_v3 = vld [vmem:[%s4348_s2 + $0x8] sm:$0xff]  ;;  %vm400_vm1 = vcmask 58368   ;;  %vm423_vm2 = vcmask 64512  }
  0xf0   :  { %2474 = vmatprep.subr.mxu1 %v3822_v1  ;;  %2476 = vmatprep.mubr.msk.f32.mxu1 %vm3823_vm0, %v3822_v1  ;;  %v4118_v2 = vld [vmem:[%s4349_s3] sm:$0x3]  ;;  %v4130_v4 = vld [vmem:[%s4349_s3 + $0x2] sm:$0x3]  ;;  %s226_s2 = sld [smem:[#allocation4]]  ;;  %s2240_s3 = sld [smem:[#allocation4 + $0x1]] }
  0xf1   :  { %2475 = vmatpush3.xpose.msra.mxu1 %v256_v0  ;;  %s3824_s11 = smov [#allocation2]   ;;  %s4369_s20 = sld [smem:[#allocation45_spill]] }
  0xf2   :  { %2479 = vmatprep.subr.mxu1 %v3822_v1  ;;  %s236_s8 = sshll.u32 %s3824_s11, 4  ;;  %s4146_s8 = int_to_ptr.vmem [resolvable:$true] %s236_s8 }
  0xf4   :  { %2477 = vmatmul.mubr.f32.vlgmr.msra.gmra.mrb[0].mxu1 %v4118_v2 }
  0xf5   :  { %2480 = vmatpush3.xpose.msra.mxu1 %v257_v3  ;;  %2481 = vmatprep.mubr.msk.f32.mxu1 %vm3823_vm0, %v3822_v1 }
  0xf6   :  { %2484 = vmatprep.subr.mxu1 %v3822_v1  ;;  %s2239_s27 = sshll.u32 %s226_s2, 4 }
  0xf7   :  { %s228_s9 = scalar_lea.hbm %s4369_s20, %s2239_s27  ;;  %s3712_s26 = scalar_lea.hbm %s4369_s20, 8192 }
  0xf8   :  { %2482 = vmatmul.mubr.f32.vlgmr.msra.gmra.mrb[2].mxu1 %v4130_v4  ;;  %s3710_s23 = scalar_lea.hbm %s228_s9, 16  ;;  %p3713_p4 = scmp.lt.u32.totalorder %s228_s9, %s4369_s20 }
  0xf9   :  { %2485 = vmatpush3.msra.mxu1 %v256_v0  ;;  %2486 = vmatprep.mubr.msk.f32.mxu1 %vm3823_vm0, %v3822_v1  ;;  %p3711_p3 = scmp.ne.s32.totalorder %s228_s9, %s3710_s23  ;;  %p3714_p5 = scmp.lt.u32.totalorder %s3712_s26, %s3710_s23 }
  0xfa   :  { %2489 = vmatprep.subr.mxu1 %v3822_v1  ;;  %p3716_p7 = scmp.lt.u32.totalorder %s3710_s23, %s228_s9 }
  0xfb   :  { %p3715_p6 = por %p3714_p5, %p3713_p4 }
  0xfd   :  { %p3717_p8 = por %p3716_p7, %p3715_p6 }
  0xff   :  { %p3718_p9 = pnand %p3717_p8, %p3711_p3 }
 0x1c7   :  { %v326_v5 = vpop.f32.mrb[0].mxu1 }
 0x1c8   :  { %v2478_v6 = vpop.f32.mrb[1].mxu1  ;;  %v401_v7 = vsel %vm400_vm1, %v326_v5, -inf }
 0x1c9   :  { %402 = vmax.xlane.f32.xlu0 %v401_v7 }
 0x1cb   :  { %v396_v8 = vpop.f32.mrb[2].mxu1 }
 0x1cc   :  { %v2483_v9 = vpop.f32.mrb[3].mxu1  ;;  %v404_v10 = vsel %vm400_vm1, %v396_v8, -inf }
 0x1cd   :  { %405 = vmax.xlane.f32.xlu0 %v404_v10 }
 0x256   :  { %v403_v11 = vpop.xlane.xlu0 %402 }
 0x257   :  { %v407_v12 = vsub.f32 %v326_v5, %v403_v11 }
 0x259   :  { %v409_v13 = vmul.f32 1.442695, %v407_v12 }
 0x25a   :  { %v406_v14 = vpop.xlane.xlu0 %405 }
 0x25b   :  { %3406 = vpow2.f32 %v409_v13  ;;  %v408_v15 = vsub.f32 %v396_v8, %v406_v14 }
 0x25d   :  { %v411_v16 = vmul.f32 1.442695, %v408_v15 }
 0x25f   :  { %3408 = vpow2.f32 %v411_v16 }
 0x265   :  { %v3407_v17 = vpop.eup %3406 }
 0x266   :  { %v413_v18 = vsel %vm400_vm1, %v3407_v17, 0.0 }
 0x267   :  { %414 = vadd.xlane.f32.xlu1 %v413_v18 }
 0x269   :  { %v3409_v19 = vpop.eup %3408 }
 0x26a   :  { %v416_v20 = vsel %vm400_vm1, %v3409_v19, 0.0 }
 0x26b   :  { %417 = vadd.xlane.f32.xlu1 %v416_v20 }
 0x2f4   :  { %v415_v21 = vpop.xlane.xlu1 %414 }
 0x2f5   :  { %3410 = vrcp.f32 %v415_v21 }
 0x2f8   :  { %v418_v22 = vpop.xlane.xlu1 %417 }
 0x2f9   :  { %3412 = vrcp.f32 %v418_v22 }
 0x2ff   :  { %v3411_v23 = vpop.eup %3410 }
 0x300   :  { %v421_v24 = vmul.f32 %v3411_v23, %v3407_v17 }
 0x302   :  { %2487 = vmatmul.mubr.msk.f32.vlgmr.msra.gmra.mrb[4].mxu1 %vm423_vm2, %v421_v24 }
 0x303   :  { %v3413_v25 = vpop.eup %3412  ;;  %2490 = vmatpush3.msra.mxu1 %v257_v3  ;;  %2491 = vmatprep.mubr.msk.f32.mxu1 %vm3823_vm0, %v3822_v1 }
 0x304   :  { %v422_v26 = vmul.f32 %v3413_v25, %v3409_v19 }
 0x306   :  { %2492 = vmatmul.mubr.msk.f32.vlgmr.msra.gmra.mrb[6].mxu1 %vm423_vm2, %v422_v26 }
 0x307   :  { %3721 = shalt.err (!%p3718_p9)  }
 0x308   :  { %s3722_s30 = scalar_lea.vmem %s4146_s8, 16  ;;  %s3726_s18 = scalar_lea.vmem %s4146_s8, 32 }
 0x309   :  { %p3723_p10 = scmp.ne.s32.totalorder %s4146_s8, %s3722_s30  ;;  %p3727_p11 = scmp.lt.s32.totalorder %s4146_s8, %s4146_s8 }
 0x30a   :  { %p3728_p12 = scmp.lt.s32.totalorder %s3726_s18, %s3722_s30 }
 0x30c   :  { %p3729_p13 = por %p3728_p12, %p3727_p11 }
 0x30e   :  { %p3730_p0 = pnand %p3729_p13, %p3723_p10 }
 0x310   :  { %3733 = shalt.err (!%p3730_p0)  }
 0x311   :  { %239 = dma.hbm_to_vmem [thread:$0]  %s228_s9, 16, %s4146_s8, [#allocation3] }
 0x312   :  { %s2241_s19 = sshll.u32 %s2240_s3, 4  ;;  %s3825_s22 = smov [#allocation2 + $0x1]  }
 0x313   :  { %s242_s24 = scalar_lea.hbm %s4369_s20, %s2241_s19  ;;  %s252_s29 = sshll.u32 %s3825_s22, 4  ;;  %s253_s29 = int_to_ptr.vmem [resolvable:$true] %s252_s29 }
 0x314   :  { %s3734_s15 = scalar_lea.hbm %s242_s24, 16  ;;  %p3737_p2 = scmp.lt.u32.totalorder %s242_s24, %s4369_s20 }
 0x315   :  { %p3735_p1 = scmp.ne.s32.totalorder %s242_s24, %s3734_s15  ;;  %p3738_p3 = scmp.lt.u32.totalorder %s3712_s26, %s3734_s15 }
 0x316   :  { %p3740_p5 = scmp.lt.u32.totalorder %s3734_s15, %s242_s24 }
 0x317   :  { %p3739_p4 = por %p3738_p3, %p3737_p2 }
 0x319   :  { %p3741_p6 = por %p3740_p5, %p3739_p4 }
 0x31b   :  { %p3742_p7 = pnand %p3741_p6, %p3735_p1 }
 0x31d   :  { %3745 = shalt.err (!%p3742_p7)  }
 0x31e   :  { %s3746_s28 = scalar_lea.vmem %s253_s29, 16  ;;  %p3751_p9 = scmp.lt.s32.totalorder %s253_s29, %s4146_s8 }
 0x31f   :  { %p3747_p8 = scmp.ne.s32.totalorder %s253_s29, %s3746_s28  ;;  %p3752_p10 = scmp.lt.s32.totalorder %s3726_s18, %s3746_s28 }
 0x321   :  { %p3753_p11 = por %p3752_p10, %p3751_p9 }
 0x323   :  { %p3754_p12 = pnand %p3753_p11, %p3747_p8 }
 0x325   :  { %3757 = shalt.err (!%p3754_p12)  }
 0x326   :  { %255 = dma.hbm_to_vmem [thread:$0]  %s242_s24, 16, %s253_s29, [#allocation3 + $0x1] }
 0x3d5   :  { %v4167_v27 = vpop.f32.mrb[4].mxu1 }
 0x3d6   :  { %v2488_v28 = vpop.f32.mrb[5].mxu1 }
 0x3d9   :  { %v4169_v29 = vpop.f32.mrb[6].mxu1 }
 0x3da   :  { %v2493_v30 = vpop.f32.mrb[7].mxu1 }
 0x3db   :  { %3796 = dma.done.wait [#allocation3], 16 }
 0x3dc   :  { %3797 = vsyncadd [#allocation3], 4294967280 }
 0x3dd   :  { %3798 = dma.done.wait [#allocation3 + $0x1], 16 }
 0x3de   :  { %3799 = vsyncadd [#allocation3 + $0x1], 4294967280  ;;  %2526 = vmatprep.mubr.msk.f32.mxu0 %vm3823_vm0, %v3822_v1  ;;  %2561 = vmatprep.mubr.msk.f32.mxu1 %vm3823_vm0, %v3822_v1  ;;  %v3826_v31 = vmov 0.0|0.0   ;;  %v578_v32 = vld [vmem:[#allocation8] sm:$0xff]  ;;  %v579_v33 = vld [vmem:[#allocation8 + $0x8] sm:$0xff]  ;;  %vm887_vm3 = vcmask 1041409  }
 0x3df   :  { %2914 = vmatprep.subr.bf16.mxu0 %v3826_v31  ;;  %2938 = vmatprep.subr.bf16.mxu1 %v3826_v31  ;;  %v672_v34 = vld [vmem:[#allocation8 + $0x80] sm:$0xff]  ;;  %v2915_v35 = vpack.c.bf16 %v579_v33, %v578_v32  ;;  %v673_v36 = vld [vmem:[#allocation8 + $0x88] sm:$0xff]  ;;  %v580_v37 = vld [vmem:[#allocation8 + $0x10] sm:$0xff]  ;;  %s3827_s17 = smov [#allocation26]  }
 0x3e0   :  { %v581_v38 = vld [vmem:[#allocation8 + $0x18] sm:$0xff]  ;;  %v2939_v39 = vpack.c.bf16 %v673_v36, %v672_v34  ;;  %v674_v40 = vld [vmem:[#allocation8 + $0x90] sm:$0xff]  ;;  %v582_v44 = vld [vmem:[#allocation8 + $0x20] sm:$0xff]  ;;  %s2199_s5 = sshll.u32 %s3827_s17, 4  ;;  %s2200_s5 = int_to_ptr.vmem [resolvable:$true] %s2199_s5 }
 0x3e1   :  { %v675_v41 = vld [vmem:[#allocation8 + $0x98] sm:$0xff]  ;;  %2916 = vmatpush3.bf16.msra.mxu0 %v2915_v35  ;;  %v2918_v42 = vpack.c.bf16 %v581_v38, %v580_v37  ;;  %v583_v45 = vld [vmem:[#allocation8 + $0x28] sm:$0xff]  ;;  %v676_v46 = vld [vmem:[#allocation8 + $0xa0] sm:$0xff]  ;;  %s3758_s2 = scalar_lea.vmem %s2200_s5, 64  ;;  %p3763_p0 = scmp.lt.s32.totalorder %s2200_s5, %s2200_s5 }
 0x3e2   :  { %2940 = vmatpush3.bf16.msra.mxu1 %v2939_v39  ;;  %2917 = vmatprep.subr.bf16.mxu0 %v3826_v31  ;;  %v2942_v43 = vpack.c.bf16 %v675_v41, %v674_v40  ;;  %v677_v47 = vld [vmem:[#allocation8 + $0xa8] sm:$0xff]  ;;  %v2921_v48 = vpack.c.bf16 %v583_v45, %v582_v44  ;;  %v584_v50 = vld [vmem:[#allocation8 + $0x30] sm:$0xff]  ;;  %v585_v51 = vld [vmem:[#allocation8 + $0x38] sm:$0xff]  ;;  %p3759_p13 = scmp.ne.s32.totalorder %s2200_s5, %s3758_s2  ;;  %p3764_p1 = scmp.lt.s32.totalorder %s3758_s2, %s3758_s2 }
 0x3e3   :  { %2941 = vmatprep.subr.bf16.mxu1 %v3826_v31  ;;  %v2945_v49 = vpack.c.bf16 %v677_v47, %v676_v46  ;;  %v678_v52 = vld [vmem:[#allocation8 + $0xb0] sm:$0xff]  ;;  %v679_v53 = vld [vmem:[#allocation8 + $0xb8] sm:$0xff]  ;;  %v2924_v54 = vpack.c.bf16 %v585_v51, %v584_v50  ;;  %v586_v56 = vld [vmem:[#allocation8 + $0x40] sm:$0xff] }
 0x3e4   :  { %v2948_v55 = vpack.c.bf16 %v679_v53, %v678_v52  ;;  %v587_v57 = vld [vmem:[#allocation8 + $0x48] sm:$0xff]  ;;  %v680_v58 = vld [vmem:[#allocation8 + $0xc0] sm:$0xff]  ;;  %v588_v62 = vld [vmem:[#allocation8 + $0x50] sm:$0xff]  ;;  %p3765_p2 = por %p3764_p1, %p3763_p0 }
 0x3e5   :  { %2919 = vmatpush3.bf16.msra.mxu0 %v2918_v42  ;;  %v681_v59 = vld [vmem:[#allocation8 + $0xc8] sm:$0xff]  ;;  %v2927_v60 = vpack.c.bf16 %v587_v57, %v586_v56  ;;  %v589_v63 = vld [vmem:[#allocation8 + $0x58] sm:$0xff]  ;;  %v682_v0 = vld [vmem:[#allocation8 + $0xd0] sm:$0xff] }
 0x3e6   :  { %2943 = vmatpush3.bf16.msra.mxu1 %v2942_v43  ;;  %2920 = vmatprep.subr.bf16.mxu0 %v3826_v31  ;;  %v2951_v61 = vpack.c.bf16 %v681_v59, %v680_v58  ;;  %v683_v3 = vld [vmem:[#allocation8 + $0xd8] sm:$0xff]  ;;  %v2930_v5 = vpack.c.bf16 %v589_v63, %v588_v62  ;;  %v590_v7 = vld [vmem:[#allocation8 + $0x60] sm:$0xff]  ;;  %v591_v8 = vld [vmem:[#allocation8 + $0x68] sm:$0xff]  ;;  %p3766_p3 = pnand %p3765_p2, %p3759_p13 }
 0x3e7   :  { %2944 = vmatprep.subr.bf16.mxu1 %v3826_v31  ;;  %v2954_v6 = vpack.c.bf16 %v683_v3, %v682_v0  ;;  %v684_v9 = vld [vmem:[#allocation8 + $0xe0] sm:$0xff]  ;;  %v685_v10 = vld [vmem:[#allocation8 + $0xe8] sm:$0xff]  ;;  %v2933_v11 = vpack.c.bf16 %v591_v8, %v590_v7  ;;  %v592_v13 = vld [vmem:[#allocation8 + $0x70] sm:$0xff] }
 0x3e8   :  { %v2957_v12 = vpack.c.bf16 %v685_v10, %v684_v9  ;;  %v593_v14 = vld [vmem:[#allocation8 + $0x78] sm:$0xff]  ;;  %v686_v15 = vld [vmem:[#allocation8 + $0xf0] sm:$0xff]  ;;  %v767_v19 = vld [vmem:[#allocation8 + $0x100] sm:$0xff] }
 0x3e9   :  { %2922 = vmatpush3.bf16.msra.mxu0 %v2921_v48  ;;  %v687_v16 = vld [vmem:[#allocation8 + $0xf8] sm:$0xff]  ;;  %v2936_v17 = vpack.c.bf16 %v593_v14, %v592_v13  ;;  %v768_v20 = vld [vmem:[#allocation8 + $0x108] sm:$0xff]  ;;  %v961_v21 = vld [vmem:[#allocation9 + $0x80] sm:$0xff] }
 0x3ea   :  { %2946 = vmatpush3.bf16.msra.mxu1 %v2945_v49  ;;  %2923 = vmatprep.subr.bf16.mxu0 %v3826_v31  ;;  %v2960_v18 = vpack.c.bf16 %v687_v16, %v686_v15  ;;  %v962_v22 = vld [vmem:[#allocation9 + $0x88] sm:$0xff]  ;;  %v4191_v23 = vld [vmem:[#allocation2] sm:$0x3]  ;;  %v2963_v24 = vpack.c.bf16 %v768_v20, %v767_v19  ;;  %v769_v26 = vld [vmem:[#allocation8 + $0x110] sm:$0xff] }
 0x3eb   :  { %2947 = vmatprep.subr.bf16.mxu1 %v3826_v31  ;;  %v3011_v25 = vpack.c.bf16 %v962_v22, %v961_v21  ;;  %v770_v28 = vld [vmem:[#allocation8 + $0x118] sm:$0xff]  ;;  %v963_v30 = vld [vmem:[#allocation9 + $0x90] sm:$0xff]  ;;  %v771_v35 = vld [vmem:[#allocation8 + $0x120] sm:$0xff] }
 0x3ec   :  { %v964_v32 = vld [vmem:[#allocation9 + $0x98] sm:$0xff]  ;;  %v2966_v33 = vpack.c.bf16 %v770_v28, %v769_v26  ;;  %v772_v36 = vld [vmem:[#allocation8 + $0x128] sm:$0xff]  ;;  %v965_v37 = vld [vmem:[#allocation9 + $0xa0] sm:$0xff] }
 0x3ed   :  { %2925 = vmatpush3.bf16.msra.mxu0 %v2924_v54  ;;  %v3014_v34 = vpack.c.bf16 %v964_v32, %v963_v30  ;;  %v966_v38 = vld [vmem:[#allocation9 + $0xa8] sm:$0xff]  ;;  %v2969_v39 = vpack.c.bf16 %v772_v36, %v771_v35  ;;  %v773_v41 = vld [vmem:[#allocation8 + $0x130] sm:$0xff]  ;;  %v774_v42 = vld [vmem:[#allocation8 + $0x138] sm:$0xff] }
 0x3ee   :  { %2949 = vmatpush3.bf16.msra.mxu1 %v2948_v55  ;;  %2926 = vmatprep.subr.bf16.mxu0 %v3826_v31  ;;  %v3017_v40 = vpack.c.bf16 %v966_v38, %v965_v37  ;;  %v967_v43 = vld [vmem:[#allocation9 + $0xb0] sm:$0xff]  ;;  %v968_v44 = vld [vmem:[#allocation9 + $0xb8] sm:$0xff]  ;;  %v2972_v45 = vpack.c.bf16 %v774_v42, %v773_v41  ;;  %v775_v47 = vld [vmem:[#allocation8 + $0x140] sm:$0xff] }
 0x3ef   :  { %2950 = vmatprep.subr.bf16.mxu1 %v3826_v31  ;;  %v3020_v46 = vpack.c.bf16 %v968_v44, %v967_v43  ;;  %v776_v48 = vld [vmem:[#allocation8 + $0x148] sm:$0xff]  ;;  %v969_v49 = vld [vmem:[#allocation9 + $0xc0] sm:$0xff]  ;;  %v777_v53 = vld [vmem:[#allocation8 + $0x150] sm:$0xff] }
 0x3f0   :  { %v970_v50 = vld [vmem:[#allocation9 + $0xc8] sm:$0xff]  ;;  %v2975_v51 = vpack.c.bf16 %v776_v48, %v775_v47  ;;  %v778_v54 = vld [vmem:[#allocation8 + $0x158] sm:$0xff]  ;;  %v971_v55 = vld [vmem:[#allocation9 + $0xd0] sm:$0xff] }
 0x3f1   :  { %2928 = vmatpush3.bf16.msra.mxu0 %v2927_v60  ;;  %v3023_v52 = vpack.c.bf16 %v970_v50, %v969_v49  ;;  %v972_v56 = vld [vmem:[#allocation9 + $0xd8] sm:$0xff]  ;;  %v2978_v57 = vpack.c.bf16 %v778_v54, %v777_v53  ;;  %v779_v59 = vld [vmem:[#allocation8 + $0x160] sm:$0xff]  ;;  %v780_v60 = vld [vmem:[#allocation8 + $0x168] sm:$0xff] }
 0x3f2   :  { %2952 = vmatpush3.bf16.msra.mxu1 %v2951_v61  ;;  %2929 = vmatprep.subr.bf16.mxu0 %v3826_v31  ;;  %v3026_v58 = vpack.c.bf16 %v972_v56, %v971_v55  ;;  %v973_v61 = vld [vmem:[#allocation9 + $0xe0] sm:$0xff]  ;;  %v974_v62 = vld [vmem:[#allocation9 + $0xe8] sm:$0xff]  ;;  %v2981_v63 = vpack.c.bf16 %v780_v60, %v779_v59  ;;  %v781_v3 = vld [vmem:[#allocation8 + $0x170] sm:$0xff] }
 0x3f3   :  { %2953 = vmatprep.subr.bf16.mxu1 %v3826_v31  ;;  %v3029_v0 = vpack.c.bf16 %v974_v62, %v973_v61  ;;  %v975_v7 = vld [vmem:[#allocation9 + $0xf0] sm:$0xff]  ;;  %v976_v8 = vld [vmem:[#allocation9 + $0xf8] sm:$0xff]  ;;  %v861_v13 = vld [vmem:[#allocation9] sm:$0xff] }
 0x3f4   :  { %v3032_v10 = vpack.c.bf16 %v976_v8, %v975_v7  ;;  %v862_v14 = vld [vmem:[#allocation9 + $0x8] sm:$0xff]  ;;  %v1059_v19 = vld [vmem:[#allocation9 + $0x118] sm:$0xff]  ;;  %v865_v21 = vld [vmem:[#allocation9 + $0x20] sm:$0xff] }
 0x3f5   :  { %2931 = vmatpush3.bf16.msra.mxu0 %v2930_v5  ;;  %v782_v5 = vld [vmem:[#allocation8 + $0x178] sm:$0xff]  ;;  %v2987_v15 = vpack.c.bf16 %v862_v14, %v861_v13  ;;  %v866_v22 = vld [vmem:[#allocation9 + $0x28] sm:$0xff]  ;;  %v867_v28 = vld [vmem:[#allocation9 + $0x30] sm:$0xff] }
 0x3f6   :  { %2955 = vmatpush3.bf16.msra.mxu1 %v2954_v6  ;;  %2932 = vmatprep.subr.bf16.mxu0 %v3826_v31  ;;  %v4214_v6 = vadd.f32 %v4169_v29, %v4130_v4  ;;  %v2984_v9 = vpack.c.bf16 %v782_v5, %v781_v3  ;;  %v1056_v4 = vld [vmem:[#allocation9 + $0x100] sm:$0xff]  ;;  %v1057_v29 = vld [vmem:[#allocation9 + $0x108] sm:$0xff]  ;;  %v868_v30 = vld [vmem:[#allocation9 + $0x38] sm:$0xff] }
 0x3f7   :  { %2956 = vmatprep.subr.bf16.mxu1 %v3826_v31  ;;  %v1061_v26 = vld [vmem:[#allocation9 + $0x128] sm:$0xff]  ;;  %v2996_v35 = vpack.c.bf16 %v868_v30, %v867_v28  ;;  %v869_v36 = vld [vmem:[#allocation9 + $0x40] sm:$0xff]  ;;  %v871_v42 = vld [vmem:[#allocation9 + $0x50] sm:$0xff] }
 0x3f8   :  { %v870_v37 = vld [vmem:[#allocation9 + $0x48] sm:$0xff]  ;;  %v872_v43 = vld [vmem:[#allocation9 + $0x58] sm:$0xff]  ;;  %v873_v48 = vld [vmem:[#allocation9 + $0x60] sm:$0xff] }
 0x3f9   :  { %2934 = vmatpush3.bf16.msra.mxu0 %v2933_v11  ;;  %v4220_v11 = vadd.f32 %v4167_v27, %v4118_v2  ;;  %v863_v2 = vld [vmem:[#allocation9 + $0x10] sm:$0xff]  ;;  %v864_v27 = vld [vmem:[#allocation9 + $0x18] sm:$0xff]  ;;  %v2999_v41 = vpack.c.bf16 %v870_v37, %v869_v36  ;;  %v3002_v47 = vpack.c.bf16 %v872_v43, %v871_v42  ;;  %v874_v49 = vld [vmem:[#allocation9 + $0x68] sm:$0xff] }
 0x3fa   :  { %2958 = vmatpush3.bf16.msra.mxu1 %v2957_v12  ;;  %2935 = vmatprep.subr.bf16.mxu0 %v3826_v31  ;;  %v886_v12 = vrot.slane %v4214_v6, 7  ;;  %v2990_v20 = vpack.c.bf16 %v864_v27, %v863_v2  ;;  %v3005_v53 = vpack.c.bf16 %v874_v49, %v873_v48  ;;  %v875_v54 = vld [vmem:[#allocation9 + $0x70] sm:$0xff]  ;;  %v876_v55 = vld [vmem:[#allocation9 + $0x78] sm:$0xff]  ;;  %v1172_v61 = vld [vmem:[#allocation14] sm:$0xff] }
 0x3fb   :  { %2959 = vmatprep.subr.bf16.mxu1 %v3826_v31  ;;  %v3008_v59 = vpack.c.bf16 %v876_v55, %v875_v54  ;;  %v1173_v62 = vld [vmem:[#allocation14 + $0x8] sm:$0xff]  ;;  %v1174_v7 = vld [vmem:[#allocation14 + $0x10] sm:$0xff]  ;;  %v1175_v8 = vld [vmem:[#allocation14 + $0x18] sm:$0xff] }
 0x3fc   :  { %v4227_v16 = vsel %vm887_vm3, %v886_v12, %v4220_v11  ;;  %v1267_v3 = vld [vmem:[#allocation14 + $0x88] sm:$0xff]  ;;  %v1269_v12 = vld [vmem:[#allocation14 + $0x98] sm:$0xff]  ;;  %v1176_v13 = vld [vmem:[#allocation14 + $0x20] sm:$0xff] }
 0x3fd   :  { %2937 = vmatpush3.bf16.msra.mxu0 %v2936_v17  ;;  %v3035_v17 = vpack.c.bf16 %v1057_v29, %v1056_v4  ;;  %v1177_v14 = vld [vmem:[#allocation14 + $0x28] sm:$0xff]  ;;  %v1270_v29 = vld [vmem:[#allocation14 + $0xa0] sm:$0xff]  ;;  %v1277_v36 = vld [vmem:[#allocation14 + $0xd8] sm:$0xff] }
 0x3fe   :  { %2961 = vmatpush3.bf16.msra.mxu1 %v2960_v18  ;;  %2962 = vmatprep.subr.bf16.mxu0 %v3826_v31  ;;  %v1058_v18 = vld [vmem:[#allocation9 + $0x110] sm:$0xff]  ;;  %v3065_v2 = vpack.c.bf16 %v1177_v14, %v1176_v13  ;;  %v1184_v37 = vld [vmem:[#allocation14 + $0x60] sm:$0xff]  ;;  %v2244_v54 = vld [vmem:[#allocation11] ss:$0 sm:$0xff] }
 0x3ff   :  { %3010 = vmatprep.subr.bf16.mxu1 %v3826_v31  ;;  %v1275_v28 = vld [vmem:[#allocation14 + $0xc8] sm:$0xff]  ;;  %v2247_v55 = vld [vmem:[#allocation12] ss:$0 sm:$0xff] }
 0x400   :  { %2527 = vmatmul.mubr.f32.vlgmr.msra.gmra.mrb[0].mxu0 %v4191_v23 }
 0x401   :  { %2562 = vmatmul.mubr.f32.vlgmr.msra.gmra.mrb[8].mxu1 %v4191_v23  ;;  %2964 = vmatpush3.bf16.msra.mxu0 %v2963_v24  ;;  %v3038_v24 = vpack.c.bf16 %v1059_v19, %v1058_v18  ;;  %v1179_v18 = vld [vmem:[#allocation14 + $0x38] sm:$0xff]  ;;  %v1272_v19 = vld [vmem:[#allocation14 + $0xb0] sm:$0xff] }
 0x402   :  { %3012 = vmatpush3.bf16.msra.mxu1 %v3011_v25  ;;  %2965 = vmatprep.subr.bf16.mxu0 %v3826_v31  ;;  %v1060_v25 = vld [vmem:[#allocation9 + $0x120] sm:$0xff] }
 0x403   :  { %3013 = vmatprep.subr.bf16.mxu1 %v3826_v31  ;;  %2596 = vmatprep.mubr.msk.f32.mxu0 %vm3823_vm0, %v3822_v1  ;;  %v3041_v32 = vpack.c.bf16 %v1061_v26, %v1060_v25  ;;  %v1181_v25 = vld [vmem:[#allocation14 + $0x48] sm:$0xff]  ;;  %v1274_v26 = vld [vmem:[#allocation14 + $0xc0] sm:$0xff] }
 0x404   :  { %2666 = vmatprep.mubr.msk.f32.mxu1 %vm3823_vm0, %v3822_v1  ;;  %v3095_v30 = vpack.c.bf16 %v1275_v28, %v1274_v26 }
 0x405   :  { %2967 = vmatpush3.bf16.msra.mxu0 %v2966_v33  ;;  %v1062_v33 = vld [vmem:[#allocation9 + $0x130] sm:$0xff] }
 0x406   :  { %3015 = vmatpush3.bf16.msra.mxu1 %v3014_v34  ;;  %2968 = vmatprep.subr.bf16.mxu0 %v3826_v31  ;;  %v1063_v34 = vld [vmem:[#allocation9 + $0x138] sm:$0xff] }
 0x407   :  { %3016 = vmatprep.subr.bf16.mxu1 %v3826_v31  ;;  %v3044_v38 = vpack.c.bf16 %v1063_v34, %v1062_v33  ;;  %v1183_v33 = vld [vmem:[#allocation14 + $0x58] sm:$0xff]  ;;  %v1276_v34 = vld [vmem:[#allocation14 + $0xd0] sm:$0xff] }
 0x409   :  { %2970 = vmatpush3.bf16.msra.mxu0 %v2969_v39  ;;  %v1064_v39 = vld [vmem:[#allocation9 + $0x140] sm:$0xff] }
 0x40a   :  { %3018 = vmatpush3.bf16.msra.mxu1 %v3017_v40  ;;  %2971 = vmatprep.subr.bf16.mxu0 %v3826_v31  ;;  %v1065_v40 = vld [vmem:[#allocation9 + $0x148] sm:$0xff] }
 0x40b   :  { %3019 = vmatprep.subr.bf16.mxu1 %v3826_v31  ;;  %v3047_v44 = vpack.c.bf16 %v1065_v40, %v1064_v39  ;;  %v3098_v39 = vpack.c.bf16 %v1277_v36, %v1276_v34  ;;  %v1278_v40 = vld [vmem:[#allocation14 + $0xe0] sm:$0xff]  ;;  %v1554_v34 = vld [vmem:[#allocation15 + $0x90] sm:$0xff] }
 0x40d   :  { %2973 = vmatpush3.bf16.msra.mxu0 %v2972_v45  ;;  %v1066_v45 = vld [vmem:[#allocation9 + $0x150] sm:$0xff] }
 0x40e   :  { %3021 = vmatpush3.bf16.msra.mxu1 %v3020_v46  ;;  %2974 = vmatprep.subr.bf16.mxu0 %v3826_v31  ;;  %v1067_v46 = vld [vmem:[#allocation9 + $0x158] sm:$0xff] }
 0x40f   :  { %3022 = vmatprep.subr.bf16.mxu1 %v3826_v31  ;;  %v3050_v50 = vpack.c.bf16 %v1067_v46, %v1066_v45  ;;  %v1187_v45 = vld [vmem:[#allocation14 + $0x78] sm:$0xff]  ;;  %v1280_v46 = vld [vmem:[#allocation14 + $0xf0] sm:$0xff] }
 0x411   :  { %2976 = vmatpush3.bf16.msra.mxu0 %v2975_v51  ;;  %v1068_v51 = vld [vmem:[#allocation9 + $0x160] sm:$0xff] }
 0x412   :  { %3024 = vmatpush3.bf16.msra.mxu1 %v3023_v52  ;;  %2977 = vmatprep.subr.bf16.mxu0 %v3826_v31  ;;  %v1069_v52 = vld [vmem:[#allocation9 + $0x168] sm:$0xff] }
 0x413   :  { %3025 = vmatprep.subr.bf16.mxu1 %v3826_v31  ;;  %v3053_v56 = vpack.c.bf16 %v1069_v52, %v1068_v51 }
 0x415   :  { %2979 = vmatpush3.bf16.msra.mxu0 %v2978_v57  ;;  %v1070_v57 = vld [vmem:[#allocation9 + $0x170] sm:$0xff] }
 0x416   :  { %3027 = vmatpush3.bf16.msra.mxu1 %v3026_v58  ;;  %2980 = vmatprep.subr.bf16.mxu0 %v3826_v31  ;;  %v1071_v58 = vld [vmem:[#allocation9 + $0x178] sm:$0xff] }
 0x417   :  { %3028 = vmatprep.subr.bf16.mxu1 %v3826_v31  ;;  %v3056_v60 = vpack.c.bf16 %v1071_v58, %v1070_v57  ;;  %v2248_v57 = vld [vmem:[#allocation12 + $0x1] ss:$0 sm:$0xff]  ;;  %v3362_v58 = vadd.f32 %v2247_v55, %v2244_v54  ;;  %v1371_v55 = vld [vmem:[#allocation14 + $0x150] sm:$0xff] }
 0x419   :  { %2982 = vmatpush3.bf16.msra.mxu0 %v2981_v63  ;;  %v1266_v63 = vld [vmem:[#allocation14 + $0x80] sm:$0xff] }
 0x41a   :  { %3030 = vmatpush3.bf16.msra.mxu1 %v3029_v0  ;;  %2983 = vmatprep.subr.bf16.mxu0 %v3826_v31  ;;  %v3059_v0 = vpack.c.bf16 %v1173_v62, %v1172_v61  ;;  %v3083_v5 = vpack.c.bf16 %v1267_v3, %v1266_v63 }
 0x41b   :  { %3031 = vmatprep.subr.bf16.mxu1 %v3826_v31 }
 0x41d   :  { %2985 = vmatpush3.bf16.msra.mxu0 %v2984_v9  ;;  %v1268_v9 = vld [vmem:[#allocation14 + $0x90] sm:$0xff] }
 0x41e   :  { %3033 = vmatpush3.bf16.msra.mxu1 %v3032_v10  ;;  %2986 = vmatprep.subr.bf16.mxu0 %v3826_v31  ;;  %v3062_v10 = vpack.c.bf16 %v1175_v8, %v1174_v7  ;;  %v3086_v4 = vpack.c.bf16 %v1269_v12, %v1268_v9  ;;  %v2249_v12 = vld [vmem:[#allocation12 + $0x2] ss:$0 sm:$0xff] }
 0x41f   :  { %3034 = vmatprep.subr.bf16.mxu1 %v3826_v31 }
 0x420   :  { %2597 = vmatmul.mubr.f32.vlgmr.msra.gmra.mrb[2].mxu0 %v4191_v23  ;;  %v2993_v23 = vpack.c.bf16 %v866_v22, %v865_v21  ;;  %v1273_v21 = vld [vmem:[#allocation14 + $0xb8] sm:$0xff] }
 0x421   :  { %2667 = vmatmul.mubr.f32.vlgmr.msra.gmra.mrb[8].mxu1 %v4227_v16  ;;  %2988 = vmatpush3.bf16.msra.mxu0 %v2987_v15  ;;  %v1271_v15 = vld [vmem:[#allocation14 + $0xa8] sm:$0xff]  ;;  %v3092_v22 = vpack.c.bf16 %v1273_v21, %v1272_v19  ;;  %v1552_v21 = vld [vmem:[#allocation15 + $0x80] sm:$0xff] }
 0x422   :  { %2989 = vmatprep.subr.bf16.mxu0 %v3826_v31  ;;  %3036 = vmatpush3.bf16.msra.mxu1 %v3035_v17  ;;  %v3089_v27 = vpack.c.bf16 %v1271_v15, %v1270_v29  ;;  %v1178_v17 = vld [vmem:[#allocation14 + $0x30] sm:$0xff] }
 0x423   :  { %3037 = vmatprep.subr.bf16.mxu1 %v3826_v31  ;;  %2631 = vmatprep.mubr.msk.f32.mxu0 %vm3823_vm0, %v3822_v1 }
 0x424   :  { %2701 = vmatprep.mubr.msk.f32.mxu1 %vm3823_vm0, %v3822_v1 }
 0x425   :  { %2991 = vmatpush3.bf16.msra.mxu0 %v2990_v20  ;;  %v3068_v20 = vpack.c.bf16 %v1179_v18, %v1178_v17  ;;  %v1361_v18 = vld [vmem:[#allocation14 + $0x100] sm:$0xff] }
 0x426   :  { %2992 = vmatprep.subr.bf16.mxu0 %v3826_v31  ;;  %3039 = vmatpush3.bf16.msra.mxu1 %v3038_v24  ;;  %v1180_v24 = vld [vmem:[#allocation14 + $0x40] sm:$0xff] }
 0x427   :  { %3040 = vmatprep.subr.bf16.mxu1 %v3826_v31 }
 0x429   :  { %2994 = vmatpush3.bf16.msra.mxu0 %v2993_v23  ;;  %v3071_v23 = vpack.c.bf16 %v1181_v25, %v1180_v24 }
 0x42a   :  { %2995 = vmatprep.subr.bf16.mxu0 %v3826_v31  ;;  %3042 = vmatpush3.bf16.msra.mxu1 %v3041_v32  ;;  %v1182_v32 = vld [vmem:[#allocation14 + $0x50] sm:$0xff] }
 0x42b   :  { %3043 = vmatprep.subr.bf16.mxu1 %v3826_v31 }
 0x42d   :  { %2997 = vmatpush3.bf16.msra.mxu0 %v2996_v35  ;;  %v3074_v35 = vpack.c.bf16 %v1183_v33, %v1182_v32  ;;  %v1364_v33 = vld [vmem:[#allocation14 + $0x118] sm:$0xff] }
 0x42e   :  { %2998 = vmatprep.subr.bf16.mxu0 %v3826_v31  ;;  %3045 = vmatpush3.bf16.msra.mxu1 %v3044_v38  ;;  %v1185_v38 = vld [vmem:[#allocation14 + $0x68] sm:$0xff] }
 0x42f   :  { %3046 = vmatprep.subr.bf16.mxu1 %v3826_v31  ;;  %v3077_v42 = vpack.c.bf16 %v1185_v38, %v1184_v37  ;;  %v1365_v38 = vld [vmem:[#allocation14 + $0x120] sm:$0xff] }
 0x431   :  { %3000 = vmatpush3.bf16.msra.mxu0 %v2999_v41  ;;  %v1279_v41 = vld [vmem:[#allocation14 + $0xe8] sm:$0xff] }
 0x432   :  { %3001 = vmatprep.subr.bf16.mxu0 %v3826_v31  ;;  %3048 = vmatpush3.bf16.msra.mxu1 %v3047_v44  ;;  %v3101_v43 = vpack.c.bf16 %v1279_v41, %v1278_v40  ;;  %v1186_v44 = vld [vmem:[#allocation14 + $0x70] sm:$0xff]  ;;  %v1557_v40 = vld [vmem:[#allocation15 + $0xa8] sm:$0xff] }
 0x433   :  { %3049 = vmatprep.subr.bf16.mxu1 %v3826_v31  ;;  %v3080_v48 = vpack.c.bf16 %v1187_v45, %v1186_v44  ;;  %v1368_v44 = vld [vmem:[#allocation14 + $0x138] sm:$0xff]  ;;  %v1558_v45 = vld [vmem:[#allocation15 + $0xb0] sm:$0xff] }
 0x435   :  { %3003 = vmatpush3.bf16.msra.mxu0 %v3002_v47  ;;  %v1281_v47 = vld [vmem:[#allocation14 + $0xf8] sm:$0xff] }
 0x436   :  { %3004 = vmatprep.subr.bf16.mxu0 %v3826_v31  ;;  %3051 = vmatpush3.bf16.msra.mxu1 %v3050_v50  ;;  %v3104_v49 = vpack.c.bf16 %v1281_v47, %v1280_v46  ;;  %v1559_v46 = vld [vmem:[#allocation15 + $0xb8] sm:$0xff] }
 0x437   :  { %3052 = vmatprep.subr.bf16.mxu1 %v3826_v31 }
 0x439   :  { %3006 = vmatpush3.bf16.msra.mxu0 %v3005_v53 }
 0x43a   :  { %3007 = vmatprep.subr.bf16.mxu0 %v3826_v31  ;;  %3054 = vmatpush3.bf16.msra.mxu1 %v3053_v56  ;;  %v2245_v56 = vld [vmem:[#allocation11 + $0x1] ss:$0 sm:$0xff] }
 0x43b   :  { %3055 = vmatprep.subr.bf16.mxu1 %v3826_v31 }
 0x43d   :  { %3009 = vmatpush3.bf16.msra.mxu0 %v3008_v59  ;;  %v3364_v59 = vadd.f32 %v2248_v57, %v2245_v56  ;;  %v1372_v56 = vld [vmem:[#allocation14 + $0x158] sm:$0xff]  ;;  %v1562_v57 = vld [vmem:[#allocation15 + $0xd0] sm:$0xff] }
 0x43e   :  { %3057 = vmatpush3.bf16.msra.mxu1 %v3056_v60  ;;  %3058 = vmatprep.subr.bf16.mxu0 %v3826_v31 }
 0x43f   :  { %3082 = vmatprep.subr.bf16.mxu1 %v3826_v31 }
 0x440   :  { %2632 = vmatmul.mubr.f32.vlgmr.msra.gmra.mrb[0].mxu0 %v4227_v16 }
 0x441   :  { %2702 = vmatmul.mubr.f32.vlgmr.msra.gmra.mrb[10].mxu1 %v4227_v16  ;;  %2736 = vmatprep.mubr.msk.f32.mxu0 %vm3823_vm0, %v3822_v1 }
 0x442   :  { %2771 = vmatprep.mubr.msk.f32.mxu1 %vm3823_vm0, %v3822_v1  ;;  %3060 = vmatpush3.bf16.msra.mxu0 %v3059_v0 }
 0x443   :  { %3084 = vmatpush3.bf16.msra.mxu1 %v3083_v5  ;;  %3061 = vmatprep.subr.bf16.mxu0 %v3826_v31 }
 0x444   :  { %3085 = vmatprep.subr.bf16.mxu1 %v3826_v31 }
 0x446   :  { %3063 = vmatpush3.bf16.msra.mxu0 %v3062_v10 }
 0x447   :  { %3087 = vmatpush3.bf16.msra.mxu1 %v3086_v4  ;;  %3064 = vmatprep.subr.bf16.mxu0 %v3826_v31  ;;  %v2246_v4 = vld [vmem:[#allocation11 + $0x2] ss:$0 sm:$0xff] }
 0x448   :  { %3088 = vmatprep.subr.bf16.mxu1 %v3826_v31 }
 0x44a   :  { %3066 = vmatpush3.bf16.msra.mxu0 %v3065_v2 }
 0x44b   :  { %3090 = vmatpush3.bf16.msra.mxu1 %v3089_v27  ;;  %3067 = vmatprep.subr.bf16.mxu0 %v3826_v31 }
 0x44c   :  { %3091 = vmatprep.subr.bf16.mxu1 %v3826_v31 }
 0x44e   :  { %3069 = vmatpush3.bf16.msra.mxu0 %v3068_v20  ;;  %v1362_v20 = vld [vmem:[#allocation14 + $0x108] sm:$0xff] }
 0x44f   :  { %3093 = vmatpush3.bf16.msra.mxu1 %v3092_v22  ;;  %3070 = vmatprep.subr.bf16.mxu0 %v3826_v31  ;;  %v1553_v22 = vld [vmem:[#allocation15 + $0x88] sm:$0xff] }
 0x450   :  { %3094 = vmatprep.subr.bf16.mxu1 %v3826_v31  ;;  %v3155_v28 = vpack.c.bf16 %v1553_v22, %v1552_v21  ;;  %v1650_v21 = vld [vmem:[#allocation15 + $0x118] sm:$0xff] }
 0x452   :  { %3072 = vmatpush3.bf16.msra.mxu0 %v3071_v23  ;;  %v3107_v23 = vpack.c.bf16 %v1362_v20, %v1361_v18  ;;  %v1457_v18 = vld [vmem:[#allocation15 + $0x10] sm:$0xff] }
 0x453   :  { %3096 = vmatpush3.bf16.msra.mxu1 %v3095_v30  ;;  %3073 = vmatprep.subr.bf16.mxu0 %v3826_v31  ;;  %v1363_v30 = vld [vmem:[#allocation14 + $0x110] sm:$0xff] }
 0x454   :  { %3097 = vmatprep.subr.bf16.mxu1 %v3826_v31  ;;  %v3110_v36 = vpack.c.bf16 %v1364_v33, %v1363_v30  ;;  %v1649_v20 = vld [vmem:[#allocation15 + $0x110] sm:$0xff]  ;;  %v1462_v33 = vld [vmem:[#allocation15 + $0x38] sm:$0xff] }
 0x455   :  { %v1461_v30 = vld [vmem:[#allocation15 + $0x30] sm:$0xff] }
 0x456   :  { %3075 = vmatpush3.bf16.msra.mxu0 %v3074_v35  ;;  %v1555_v35 = vld [vmem:[#allocation15 + $0x98] sm:$0xff] }
 0x457   :  { %3099 = vmatpush3.bf16.msra.mxu1 %v3098_v39  ;;  %3076 = vmatprep.subr.bf16.mxu0 %v3826_v31  ;;  %v3158_v37 = vpack.c.bf16 %v1555_v35, %v1554_v34  ;;  %v1556_v39 = vld [vmem:[#allocation15 + $0xa0] sm:$0xff]  ;;  %v1653_v34 = vld [vmem:[#allocation15 + $0x130] sm:$0xff]  ;;  %v1654_v35 = vld [vmem:[#allocation15 + $0x138] sm:$0xff] }
 0x458   :  { %3100 = vmatprep.subr.bf16.mxu1 %v3826_v31 }
 0x45a   :  { %3078 = vmatpush3.bf16.msra.mxu0 %v3077_v42  ;;  %v3161_v42 = vpack.c.bf16 %v1557_v40, %v1556_v39  ;;  %v1655_v39 = vld [vmem:[#allocation15 + $0x140] sm:$0xff]  ;;  %v1656_v40 = vld [vmem:[#allocation15 + $0x148] sm:$0xff] }
 0x45b   :  { %3102 = vmatpush3.bf16.msra.mxu1 %v3101_v43  ;;  %3079 = vmatprep.subr.bf16.mxu0 %v3826_v31  ;;  %v1367_v43 = vld [vmem:[#allocation14 + $0x130] sm:$0xff] }
 0x45c   :  { %3103 = vmatprep.subr.bf16.mxu1 %v3826_v31  ;;  %v3116_v47 = vpack.c.bf16 %v1368_v44, %v1367_v43  ;;  %v3191_v43 = vpack.c.bf16 %v1656_v40, %v1655_v39  ;;  %v1466_v44 = vld [vmem:[#allocation15 + $0x58] sm:$0xff]  ;;  %v1793_v39 = vld [vmem:[#allocation20 + $0xe8] sm:$0xff]  ;;  %v1795_v40 = vld [vmem:[#allocation20 + $0xf8] sm:$0xff] }
 0x45e   :  { %3081 = vmatpush3.bf16.msra.mxu0 %v3080_v48  ;;  %v3164_v48 = vpack.c.bf16 %v1559_v46, %v1558_v45  ;;  %v1657_v45 = vld [vmem:[#allocation15 + $0x150] sm:$0xff]  ;;  %v1658_v46 = vld [vmem:[#allocation15 + $0x158] sm:$0xff] }
 0x45f   :  { %3105 = vmatpush3.bf16.msra.mxu1 %v3104_v49  ;;  %3106 = vmatprep.subr.bf16.mxu0 %v3826_v31  ;;  %v1369_v49 = vld [vmem:[#allocation14 + $0x140] sm:$0xff] }
 0x460   :  { %3154 = vmatprep.subr.bf16.mxu1 %v3826_v31 }
 0x4f3   :  { %v857_v50 = vpop.f32.mrb[2].mxu0 }
 0x4f4   :  { %v1051_v51 = vpop.f32.mrb[8].mxu1  ;;  %v2598_v52 = vpop.f32.mrb[3].mxu0  ;;  %v858_v15 = vadd.f32 %v2246_v4, %v857_v50  ;;  %v1370_v50 = vld [vmem:[#allocation14 + $0x148] sm:$0xff]  ;;  %v1455_v4 = vld [vmem:[#allocation15] sm:$0xff] }
 0x4f5   :  { %v2668_v53 = vpop.f32.mrb[9].mxu1  ;;  %v3365_v5 = vadd.f32 %v3364_v59, %v1051_v51  ;;  %v1560_v51 = vld [vmem:[#allocation15 + $0xc0] sm:$0xff]  ;;  %v1561_v52 = vld [vmem:[#allocation15 + $0xc8] sm:$0xff]  ;;  %v3122_v59 = vpack.c.bf16 %v1372_v56, %v1371_v55  ;;  %v1470_v56 = vld [vmem:[#allocation15 + $0x78] sm:$0xff] }
 0x4f6   :  { %v3119_v53 = vpack.c.bf16 %v1370_v50, %v1369_v49  ;;  %v3167_v54 = vpack.c.bf16 %v1561_v52, %v1560_v51  ;;  %v3194_v49 = vpack.c.bf16 %v1658_v46, %v1657_v45  ;;  %v1468_v50 = vld [vmem:[#allocation15 + $0x68] sm:$0xff]  ;;  %v1659_v51 = vld [vmem:[#allocation15 + $0x160] sm:$0xff]  ;;  %v1880_v46 = vld [vmem:[#allocation23 + $0x8] sm:$0xff] }
 0x4f7   :  { %v2251_v7 = vmul.f32 -1.442695, %v3365_v5  ;;  %v1660_v52 = vld [vmem:[#allocation15 + $0x168] sm:$0xff] }
 0x4f8   :  { %v3197_v55 = vpack.c.bf16 %v1660_v52, %v1659_v51  ;;  %v1879_v51 = vld [vmem:[#allocation23] sm:$0xff] }
 0x4f9   :  { %v1883_v52 = vld [vmem:[#allocation23 + $0x20] sm:$0xff] }
 0x513   :  { %v956_v60 = vpop.f32.mrb[0].mxu0 }
 0x514   :  { %v3363_v61 = vadd.f32 %v3362_v58, %v956_v60  ;;  %v2633_v62 = vpop.f32.mrb[1].mxu0  ;;  %v1146_v63 = vpop.f32.mrb[10].mxu1  ;;  %v1563_v58 = vld [vmem:[#allocation15 + $0xd8] sm:$0xff] }
 0x515   :  { %v2703_v0 = vpop.f32.mrb[11].mxu1  ;;  %v1147_v14 = vadd.f32 %v2249_v12, %v1146_v63  ;;  %v3170_v60 = vpack.c.bf16 %v1563_v58, %v1562_v57  ;;  %v1374_v62 = vld [vmem:[#allocation14 + $0x168] sm:$0xff]  ;;  %v1564_v63 = vld [vmem:[#allocation15 + $0xe0] sm:$0xff]  ;;  %v1661_v57 = vld [vmem:[#allocation15 + $0x170] sm:$0xff] }
 0x516   :  { %v2250_v3 = vmul.f32 -1.442695, %v3363_v61  ;;  %v1373_v61 = vld [vmem:[#allocation14 + $0x160] sm:$0xff]  ;;  %v1565_v0 = vld [vmem:[#allocation15 + $0xe8] sm:$0xff]  ;;  %v1662_v58 = vld [vmem:[#allocation15 + $0x178] sm:$0xff] }
 0x517   :  { %v3173_v5 = vpack.c.bf16 %v1565_v0, %v1564_v63  ;;  %v1764_v0 = vld [vmem:[#allocation20] sm:$0xff] }
 0x518   :  { %3414 = vpow2.f32 %v2250_v3  ;;  %v3125_v3 = vpack.c.bf16 %v1374_v62, %v1373_v61  ;;  %v1765_v61 = vld [vmem:[#allocation20 + $0x8] sm:$0xff]  ;;  %v1767_v62 = vld [vmem:[#allocation20 + $0x18] sm:$0xff] }
 0x519   :  { %3416 = vpow2.f32 %v2251_v7  ;;  %v1375_v7 = vld [vmem:[#allocation14 + $0x170] sm:$0xff]  ;;  %v3202_v63 = vpack.c.bf16 %v1767_v62, %v1765_v61 }
 0x51a   :  { %v1896_v61 = vld [vmem:[#allocation23 + $0x88] sm:$0xff] }
 0x51b   :  { %v1900_v62 = vld [vmem:[#allocation23 + $0xa8] sm:$0xff] }
 0x522   :  { %v3415_v8 = vpop.eup %3414 }
 0x523   :  { %v1154_v9 = vadd.f32 1.0, %v3415_v8  ;;  %v3417_v10 = vpop.eup %3416  ;;  %v1376_v8 = vld [vmem:[#allocation14 + $0x178] sm:$0xff] }
 0x524   :  { %v1161_v13 = vadd.f32 1.0, %v3417_v10  ;;  %v1567_v10 = vld [vmem:[#allocation15 + $0xf8] sm:$0xff]  ;;  %v3128_v12 = vpack.c.bf16 %v1376_v8, %v1375_v7  ;;  %v1769_v7 = vld [vmem:[#allocation20 + $0x28] sm:$0xff]  ;;  %v1771_v8 = vld [vmem:[#allocation20 + $0x38] sm:$0xff] }
 0x525   :  { %3418 = vrcp.f32 %v1154_v9  ;;  %v1566_v9 = vld [vmem:[#allocation15 + $0xf0] sm:$0xff] }
 0x526   :  { %3420 = vrcp.f32 %v1161_v13  ;;  %v3176_v13 = vpack.c.bf16 %v1567_v10, %v1566_v9  ;;  %v3206_v9 = vpack.c.bf16 %v1771_v8, %v1769_v7  ;;  %v1770_v10 = vld [vmem:[#allocation20 + $0x30] sm:$0xff] }
 0x527   :  { %v1904_v7 = vld [vmem:[#allocation23 + $0xc8] sm:$0xff] }
 0x528   :  { %v1908_v8 = vld [vmem:[#allocation23 + $0xe8] sm:$0xff] }
 0x52f   :  { %v3419_v29 = vpop.eup %3418 }
 0x530   :  { %v1164_v2 = vmul.f32 %v3419_v29, %v1147_v14  ;;  %v3421_v17 = vpop.eup %3420  ;;  %v1478_v14 = vrot.slane %v4220_v11, 1  ;;  %v1456_v29 = vld [vmem:[#allocation15 + $0x8] sm:$0xff]  ;;  %v1458_v11 = vld [vmem:[#allocation15 + $0x18] sm:$0xff] }
 0x531   :  { %v1167_v19 = vsub.f32 1.0, %v3421_v17  ;;  %v1169_v26 = vmul.f32 %v3421_v17, %v4227_v16  ;;  %v1366_v16 = vld [vmem:[#allocation14 + $0x128] sm:$0xff]  ;;  %v3131_v17 = vpack.c.bf16 %v1456_v29, %v1455_v4  ;;  %v3134_v22 = vpack.c.bf16 %v1458_v11, %v1457_v18  ;;  %v1774_v29 = vld [vmem:[#allocation20 + $0x50] sm:$0xff] }
 0x532   :  { %v1165_v27 = vadd.f32 %v1164_v2, %v858_v15  ;;  %v3113_v41 = vpack.c.bf16 %v1366_v16, %v1365_v38  ;;  %v1647_v15 = vld [vmem:[#allocation15 + $0x100] sm:$0xff]  ;;  %v1648_v2 = vld [vmem:[#allocation15 + $0x108] sm:$0xff]  ;;  %v3188_v38 = vpack.c.bf16 %v1654_v35, %v1653_v34  ;;  %v1778_v11 = vld [vmem:[#allocation20 + $0x70] sm:$0xff] }
 0x533   :  { %v1464_v16 = vld [vmem:[#allocation15 + $0x48] sm:$0xff]  ;;  %v1789_v34 = vld [vmem:[#allocation20 + $0xc8] sm:$0xff]  ;;  %v1791_v35 = vld [vmem:[#allocation20 + $0xd8] sm:$0xff] }
 0x534   :  { %3422 = vtanh.f32 %v1165_v27  ;;  %v4301_v27 = vsel %vm887_vm3, %v4214_v6, %v1478_v14  ;;  %v3182_v6 = vpack.c.bf16 %v1650_v21, %v1649_v20  ;;  %v1775_v14 = vld [vmem:[#allocation20 + $0x58] sm:$0xff]  ;;  %v1781_v21 = vld [vmem:[#allocation20 + $0x88] sm:$0xff] }
 0x53e   :  { %v3423_v24 = vpop.eup %3422 }
 0x53f   :  { %v1168_v25 = vmul.f32 %v3423_v24, %v1167_v19  ;;  %v3179_v19 = vpack.c.bf16 %v1648_v2, %v1647_v15  ;;  %v1459_v24 = vld [vmem:[#allocation15 + $0x20] sm:$0xff]  ;;  %v1777_v2 = vld [vmem:[#allocation20 + $0x68] sm:$0xff] }
 0x541   :  { %v4275_v32 = vadd.f32 %v1169_v26, %v1168_v25  ;;  %v1460_v25 = vld [vmem:[#allocation15 + $0x28] sm:$0xff]  ;;  %v1651_v26 = vld [vmem:[#allocation15 + $0x120] sm:$0xff] }
 0x543   :  { %2737 = vmatmul.mubr.f32.vlgmr.msra.gmra.mrb[4].mxu0 %v4275_v32  ;;  %1171 = vst [vmem:[#allocation26] sm:$0x3] %v4275_v32  ;;  %2772 = vmatmul.mubr.f32.vlgmr.msra.gmra.mrb[12].mxu1 %v4275_v32 }
 0x544   :  { %3108 = vmatpush3.bf16.msra.mxu0 %v3107_v23  ;;  %3156 = vmatpush3.bf16.msra.mxu1 %v3155_v28  ;;  %v1652_v23 = vld [vmem:[#allocation15 + $0x128] sm:$0xff]  ;;  %v3137_v28 = vpack.c.bf16 %v1460_v25, %v1459_v24  ;;  %v1782_v25 = vld [vmem:[#allocation20 + $0x90] sm:$0xff] }
 0x545   :  { %3109 = vmatprep.subr.bf16.mxu0 %v3826_v31  ;;  %3157 = vmatprep.subr.bf16.mxu1 %v3826_v31 }
 0x546   :  { %2806 = vmatprep.mubr.msk.f32.mxu0 %vm3823_vm0, %v3822_v1  ;;  %2876 = vmatprep.mubr.msk.f32.mxu1 %vm3823_vm0, %v3822_v1 }
 0x548   :  { %3111 = vmatpush3.bf16.msra.mxu0 %v3110_v36  ;;  %3159 = vmatpush3.bf16.msra.mxu1 %v3158_v37  ;;  %v3140_v36 = vpack.c.bf16 %v1462_v33, %v1461_v30  ;;  %v1463_v37 = vld [vmem:[#allocation15 + $0x40] sm:$0xff]  ;;  %v1784_v30 = vld [vmem:[#allocation20 + $0xa0] sm:$0xff]  ;;  %v1786_v33 = vld [vmem:[#allocation20 + $0xb0] sm:$0xff] }
 0x549   :  { %3112 = vmatprep.subr.bf16.mxu0 %v3826_v31  ;;  %3160 = vmatprep.subr.bf16.mxu1 %v3826_v31 }
 0x54c   :  { %3114 = vmatpush3.bf16.msra.mxu0 %v3113_v41  ;;  %3162 = vmatpush3.bf16.msra.mxu1 %v3161_v42  ;;  %v3143_v41 = vpack.c.bf16 %v1464_v16, %v1463_v37  ;;  %v1465_v42 = vld [vmem:[#allocation15 + $0x50] sm:$0xff]  ;;  %v3226_v37 = vpack.c.bf16 %v1791_v35, %v1789_v34  ;;  %v1790_v16 = vld [vmem:[#allocation20 + $0xd0] sm:$0xff] }
 0x54d   :  { %3115 = vmatprep.subr.bf16.mxu0 %v3826_v31  ;;  %3163 = vmatprep.subr.bf16.mxu1 %v3826_v31  ;;  %v1944_v35 = vld [vmem:[#allocation23 + $0x208] sm:$0xff] }
 0x550   :  { %3117 = vmatpush3.bf16.msra.mxu0 %v3116_v47  ;;  %3165 = vmatpush3.bf16.msra.mxu1 %v3164_v48  ;;  %v3146_v47 = vpack.c.bf16 %v1466_v44, %v1465_v42  ;;  %v1467_v48 = vld [vmem:[#allocation15 + $0x60] sm:$0xff]  ;;  %v3230_v42 = vpack.c.bf16 %v1795_v40, %v1793_v39  ;;  %v1794_v44 = vld [vmem:[#allocation20 + $0xf0] sm:$0xff] }
 0x551   :  { %3118 = vmatprep.subr.bf16.mxu0 %v3826_v31  ;;  %3166 = vmatprep.subr.bf16.mxu1 %v3826_v31  ;;  %v1952_v40 = vld [vmem:[#allocation23 + $0x248] sm:$0xff] }
 0x554   :  { %3120 = vmatpush3.bf16.msra.mxu0 %v3119_v53  ;;  %3168 = vmatpush3.bf16.msra.mxu1 %v3167_v54  ;;  %v3149_v53 = vpack.c.bf16 %v1468_v50, %v1467_v48  ;;  %v1469_v54 = vld [vmem:[#allocation15 + $0x70] sm:$0xff]  ;;  %v1882_v48 = vld [vmem:[#allocation23 + $0x18] sm:$0xff] }
 0x555   :  { %3121 = vmatprep.subr.bf16.mxu0 %v3826_v31  ;;  %3169 = vmatprep.subr.bf16.mxu1 %v3826_v31  ;;  %v1886_v50 = vld [vmem:[#allocation23 + $0x38] sm:$0xff] }
 0x558   :  { %3123 = vmatpush3.bf16.msra.mxu0 %v3122_v59  ;;  %3171 = vmatpush3.bf16.msra.mxu1 %v3170_v60  ;;  %v3152_v59 = vpack.c.bf16 %v1470_v56, %v1469_v54  ;;  %v3200_v60 = vpack.c.bf16 %v1662_v58, %v1661_v57  ;;  %v3236_v54 = vpack.c.bf16 %v1883_v52, %v1879_v51  ;;  %v1892_v56 = vld [vmem:[#allocation23 + $0x68] sm:$0xff]  ;;  %v1887_v58 = vld [vmem:[#allocation23 + $0x40] sm:$0xff] }
 0x559   :  { %3124 = vmatprep.subr.bf16.mxu0 %v3826_v31  ;;  %3172 = vmatprep.subr.bf16.mxu1 %v3826_v31  ;;  %v1968_v52 = vld [vmem:[#allocation23 + $0x2c8] sm:$0xff] }
 0x55c   :  { %3126 = vmatpush3.bf16.msra.mxu0 %v3125_v3  ;;  %3174 = vmatpush3.bf16.msra.mxu1 %v3173_v5  ;;  %v1766_v3 = vld [vmem:[#allocation20 + $0x10] sm:$0xff] }
 0x55d   :  { %3127 = vmatprep.subr.bf16.mxu0 %v3826_v31  ;;  %3175 = vmatprep.subr.bf16.mxu1 %v3826_v31  ;;  %v3204_v5 = vpack.c.bf16 %v1766_v3, %v1764_v0  ;;  %v1895_v0 = vld [vmem:[#allocation23 + $0x80] sm:$0xff] }
 0x55e   :  { %v1899_v3 = vld [vmem:[#allocation23 + $0xa0] sm:$0xff] }
 0x560   :  { %3129 = vmatpush3.bf16.msra.mxu0 %v3128_v12  ;;  %3177 = vmatpush3.bf16.msra.mxu1 %v3176_v13  ;;  %v1773_v12 = vld [vmem:[#allocation20 + $0x48] sm:$0xff] }
 0x561   :  { %3130 = vmatprep.subr.bf16.mxu0 %v3826_v31  ;;  %3178 = vmatprep.subr.bf16.mxu1 %v3826_v31  ;;  %v3210_v4 = vpack.c.bf16 %v1775_v14, %v1773_v12  ;;  %v1916_v14 = vld [vmem:[#allocation23 + $0x128] sm:$0xff] }
 0x563   :  { %2807 = vmatmul.mubr.f32.vlgmr.msra.gmra.mrb[6].mxu0 %v4275_v32  ;;  %2877 = vmatmul.mubr.f32.vlgmr.msra.gmra.mrb[12].mxu1 %v4301_v27  ;;  %v3185_v32 = vpack.c.bf16 %v1652_v23, %v1651_v26  ;;  %v1785_v23 = vld [vmem:[#allocation20 + $0xa8] sm:$0xff] }
 0x564   :  { %3132 = vmatpush3.bf16.msra.mxu0 %v3131_v17  ;;  %3180 = vmatpush3.bf16.msra.mxu1 %v3179_v19  ;;  %v1779_v17 = vld [vmem:[#allocation20 + $0x78] sm:$0xff]  ;;  %v1776_v19 = vld [vmem:[#allocation20 + $0x60] sm:$0xff] }
 0x565   :  { %3133 = vmatprep.subr.bf16.mxu0 %v3826_v31  ;;  %3181 = vmatprep.subr.bf16.mxu1 %v3826_v31  ;;  %v3214_v18 = vpack.c.bf16 %v1779_v17, %v1777_v2  ;;  %v3216_v20 = vpack.c.bf16 %v1778_v11, %v1776_v19  ;;  %v1920_v2 = vld [vmem:[#allocation23 + $0x148] sm:$0xff]  ;;  %v1919_v19 = vld [vmem:[#allocation23 + $0x140] sm:$0xff] }
 0x566   :  { %2841 = vmatprep.mubr.msk.f32.mxu0 %vm3823_vm0, %v3822_v1  ;;  %2911 = vmatprep.mubr.msk.f32.mxu1 %vm3823_vm0, %v3822_v1  ;;  %v1924_v17 = vld [vmem:[#allocation23 + $0x168] sm:$0xff]  ;;  %v1923_v11 = vld [vmem:[#allocation23 + $0x160] sm:$0xff] }
 0x568   :  { %3135 = vmatpush3.bf16.msra.mxu0 %v3134_v22  ;;  %3183 = vmatpush3.bf16.msra.mxu1 %v3182_v6  ;;  %v1783_v22 = vld [vmem:[#allocation20 + $0x98] sm:$0xff]  ;;  %v1780_v6 = vld [vmem:[#allocation20 + $0x80] sm:$0xff] }
 0x569   :  { %3136 = vmatprep.subr.bf16.mxu0 %v3826_v31  ;;  %3184 = vmatprep.subr.bf16.mxu1 %v3826_v31  ;;  %v3218_v24 = vpack.c.bf16 %v1783_v22, %v1781_v21  ;;  %v3220_v26 = vpack.c.bf16 %v1782_v25, %v1780_v6  ;;  %v1928_v21 = vld [vmem:[#allocation23 + $0x188] sm:$0xff]  ;;  %v1927_v6 = vld [vmem:[#allocation23 + $0x180] sm:$0xff] }
 0x56a   :  { %v1932_v22 = vld [vmem:[#allocation23 + $0x1a8] sm:$0xff]  ;;  %v1931_v25 = vld [vmem:[#allocation23 + $0x1a0] sm:$0xff] }
 0x56c   :  { %3138 = vmatpush3.bf16.msra.mxu0 %v3137_v28  ;;  %3186 = vmatpush3.bf16.msra.mxu1 %v3185_v32  ;;  %v1787_v28 = vld [vmem:[#allocation20 + $0xb8] sm:$0xff] }
 0x56d   :  { %3139 = vmatprep.subr.bf16.mxu0 %v3826_v31  ;;  %3187 = vmatprep.subr.bf16.mxu1 %v3826_v31  ;;  %v3222_v32 = vpack.c.bf16 %v1787_v28, %v1785_v23  ;;  %v1936_v23 = vld [vmem:[#allocation23 + $0x1c8] sm:$0xff] }
 0x56e   :  { %v1940_v28 = vld [vmem:[#allocation23 + $0x1e8] sm:$0xff] }
 0x570   :  { %3141 = vmatpush3.bf16.msra.mxu0 %v3140_v36  ;;  %3189 = vmatpush3.bf16.msra.mxu1 %v3188_v38  ;;  %v3224_v36 = vpack.c.bf16 %v1786_v33, %v1784_v30  ;;  %v1788_v38 = vld [vmem:[#allocation20 + $0xc0] sm:$0xff]  ;;  %v3262_v30 = vpack.c.bf16 %v1940_v28, %v1936_v23 }
 0x571   :  { %3142 = vmatprep.subr.bf16.mxu0 %v3826_v31  ;;  %3190 = vmatprep.subr.bf16.mxu1 %v3826_v31  ;;  %v1939_v33 = vld [vmem:[#allocation23 + $0x1e0] sm:$0xff] }
 0x574   :  { %3144 = vmatpush3.bf16.msra.mxu0 %v3143_v41  ;;  %3192 = vmatpush3.bf16.msra.mxu1 %v3191_v43  ;;  %v3228_v41 = vpack.c.bf16 %v1790_v16, %v1788_v38  ;;  %v1792_v43 = vld [vmem:[#allocation20 + $0xe0] sm:$0xff] }
 0x575   :  { %3145 = vmatprep.subr.bf16.mxu0 %v3826_v31  ;;  %3193 = vmatprep.subr.bf16.mxu1 %v3826_v31  ;;  %v3232_v45 = vpack.c.bf16 %v1794_v44, %v1792_v43  ;;  %v1943_v38 = vld [vmem:[#allocation23 + $0x200] sm:$0xff] }
 0x576   :  { %v1947_v16 = vld [vmem:[#allocation23 + $0x220] sm:$0xff] }
 0x577   :  { %v3268_v39 = vpack.c.bf16 %v1947_v16, %v1943_v38  ;;  %v1951_v43 = vld [vmem:[#allocation23 + $0x240] sm:$0xff]  ;;  %v2254_v38 = vld [vmem:[#allocation17 + $0x2] ss:$0 sm:$0xff] }
 0x578   :  { %3147 = vmatpush3.bf16.msra.mxu0 %v3146_v47  ;;  %3195 = vmatpush3.bf16.msra.mxu1 %v3194_v49  ;;  %v1884_v47 = vld [vmem:[#allocation23 + $0x28] sm:$0xff]  ;;  %v1955_v44 = vld [vmem:[#allocation23 + $0x260] sm:$0xff] }
 0x579   :  { %3148 = vmatprep.subr.bf16.mxu0 %v3826_v31  ;;  %3196 = vmatprep.subr.bf16.mxu1 %v3826_v31  ;;  %v3234_v49 = vpack.c.bf16 %v1884_v47, %v1880_v46  ;;  %v1960_v46 = vld [vmem:[#allocation23 + $0x288] sm:$0xff] }
 0x57a   :  { %v1964_v47 = vld [vmem:[#allocation23 + $0x2a8] sm:$0xff] }
 0x57c   :  { %3150 = vmatpush3.bf16.msra.mxu0 %v3149_v53  ;;  %3198 = vmatpush3.bf16.msra.mxu1 %v3197_v55  ;;  %v3298_v53 = vpack.c.bf16 %v1886_v50, %v1882_v48  ;;  %v1888_v55 = vld [vmem:[#allocation23 + $0x48] sm:$0xff]  ;;  %v3274_v48 = vpack.c.bf16 %v1964_v47, %v1960_v46  ;;  %v1963_v50 = vld [vmem:[#allocation23 + $0x2a0] sm:$0xff]  ;;  %v1890_v47 = vld [vmem:[#allocation23 + $0x58] sm:$0xff] }
 0x57d   :  { %3151 = vmatprep.subr.bf16.mxu0 %v3826_v31  ;;  %3199 = vmatprep.subr.bf16.mxu1 %v3826_v31  ;;  %v1768_v31 = vld [vmem:[#allocation20 + $0x20] sm:$0xff]  ;;  %v3238_v57 = vpack.c.bf16 %v1892_v56, %v1888_v55 }
 0x57e   :  { %v3208_v13 = vpack.c.bf16 %v1770_v10, %v1768_v31  ;;  %v1903_v31 = vld [vmem:[#allocation23 + $0xc0] sm:$0xff] }
 0x57f   :  { %v1907_v10 = vld [vmem:[#allocation23 + $0xe0] sm:$0xff] }
 0x580   :  { %3153 = vmatpush3.bf16.msra.mxu0 %v3152_v59  ;;  %3201 = vmatpush3.bf16.msra.mxu1 %v3200_v60  ;;  %v1891_v59 = vld [vmem:[#allocation23 + $0x60] sm:$0xff]  ;;  %v3248_v12 = vpack.c.bf16 %v1907_v10, %v1903_v31 }
 0x581   :  { %3203 = vmatprep.subr.bf16.mxu0 %v3202_v63  ;;  %3235 = vmatprep.subr.bf16.mxu1 %v3234_v49  ;;  %v3240_v60 = vpack.c.bf16 %v1891_v59, %v1887_v58  ;;  %v3242_v63 = vpack.c.bf16 %v1900_v62, %v1896_v61  ;;  %v1959_v49 = vld [vmem:[#allocation23 + $0x280] sm:$0xff]  ;;  %v1976_v58 = vld [vmem:[#allocation23 + $0x308] sm:$0xff] }
 0x582   :  { %v3276_v51 = vpack.c.bf16 %v1963_v50, %v1959_v49  ;;  %v1967_v55 = vld [vmem:[#allocation23 + $0x2c0] sm:$0xff]  ;;  %v1980_v59 = vld [vmem:[#allocation23 + $0x328] sm:$0xff] }
 0x583   :  { %2842 = vmatmul.mubr.f32.vlgmr.msra.gmra.mrb[4].mxu0 %v4301_v27  ;;  %2912 = vmatmul.mubr.f32.vlgmr.msra.gmra.mrb[14].mxu1 %v4301_v27  ;;  %v1971_v56 = vld [vmem:[#allocation23 + $0x2e0] sm:$0xff] }
 0x584   :  { %1872 = vmatprep.mubr.f32.mxu0 %v3822_v1  ;;  %3205 = vmatpush1.bf16.msra.mxu0 %v3204_v5  ;;  %v1772_v1 = vld [vmem:[#allocation20 + $0x40] sm:$0xff]  ;;  %v3244_v5 = vpack.c.bf16 %v1899_v3, %v1895_v0 }
 0x585   :  { %3207 = vmatprep.subr.bf16.mxu0 %v3206_v9  ;;  %v3212_v15 = vpack.c.bf16 %v1774_v29, %v1772_v1  ;;  %3237 = vmatpush1.bf16.msra.mxu1 %v3236_v54  ;;  %v3246_v9 = vpack.c.bf16 %v1908_v8, %v1904_v7  ;;  %v1911_v1 = vld [vmem:[#allocation23 + $0x100] sm:$0xff]  ;;  %v1984_v8 = vld [vmem:[#allocation23 + $0x348] sm:$0xff] }
 0x586   :  { %3239 = vmatprep.subr.bf16.mxu1 %v3238_v57  ;;  %v1915_v29 = vld [vmem:[#allocation23 + $0x120] sm:$0xff]  ;;  %v3280_v57 = vpack.c.bf16 %v1971_v56, %v1967_v55  ;;  %v1893_v55 = vld [vmem:[#allocation23 + $0x70] sm:$0xff]  ;;  %v1898_v56 = vld [vmem:[#allocation23 + $0x98] sm:$0xff] }
 0x587   :  { %v1975_v61 = vld [vmem:[#allocation23 + $0x300] sm:$0xff] }
 0x588   :  { %3209 = vmatpush1.bf16.msra.mxu0 %v3208_v13  ;;  %v1912_v13 = vld [vmem:[#allocation23 + $0x108] sm:$0xff]  ;;  %v1979_v62 = vld [vmem:[#allocation23 + $0x320] sm:$0xff] }
 0x589   :  { %3211 = vmatprep.subr.bf16.mxu0 %v3210_v4  ;;  %3241 = vmatpush1.bf16.msra.mxu1 %v3240_v60  ;;  %v3250_v4 = vpack.c.bf16 %v1916_v14, %v1912_v13  ;;  %v3282_v60 = vpack.c.bf16 %v1980_v59, %v1976_v58  ;;  %v3284_v3 = vpack.c.bf16 %v1979_v62, %v1975_v61  ;;  %v1983_v10 = vld [vmem:[#allocation23 + $0x340] sm:$0xff]  ;;  %v1992_v14 = vld [vmem:[#allocation23 + $0x388] sm:$0xff]  ;;  %v1901_v61 = vld [vmem:[#allocation23 + $0xb0] sm:$0xff] }
 0x58a   :  { %3243 = vmatprep.subr.bf16.mxu1 %v3242_v63  ;;  %v1906_v62 = vld [vmem:[#allocation23 + $0xd8] sm:$0xff] }
 0x58c   :  { %3213 = vmatpush1.bf16.msra.mxu0 %v3212_v15  ;;  %v3252_v15 = vpack.c.bf16 %v1915_v29, %v1911_v1  ;;  %v1991_v29 = vld [vmem:[#allocation23 + $0x380] sm:$0xff] }
 0x58d   :  { %3215 = vmatprep.subr.bf16.mxu0 %v3214_v18  ;;  %3245 = vmatpush1.bf16.msra.mxu1 %v3244_v5  ;;  %v3254_v18 = vpack.c.bf16 %v1924_v17, %v1920_v2  ;;  %v2252_v17 = vld [vmem:[#allocation17] ss:$0 sm:$0xff] }
 0x58e   :  { %3247 = vmatprep.subr.bf16.mxu1 %v3246_v9  ;;  %v1988_v9 = vld [vmem:[#allocation23 + $0x368] sm:$0xff] }
 0x58f   :  { %v3286_v31 = vpack.c.bf16 %v1988_v9, %v1984_v8  ;;  %v1918_v8 = vld [vmem:[#allocation23 + $0x138] sm:$0xff] }
 0x590   :  { %3217 = vmatpush1.bf16.msra.mxu0 %v3216_v20  ;;  %v3256_v20 = vpack.c.bf16 %v1923_v11, %v1919_v19  ;;  %v2253_v19 = vld [vmem:[#allocation17 + $0x1] ss:$0 sm:$0xff]  ;;  %v2256_v11 = vld [vmem:[#allocation18 + $0x1] ss:$0 sm:$0xff] }
 0x591   :  { %3219 = vmatprep.subr.bf16.mxu0 %v3218_v24  ;;  %3249 = vmatpush1.bf16.msra.mxu1 %v3248_v12  ;;  %v3258_v24 = vpack.c.bf16 %v1932_v22, %v1928_v21  ;;  %v1987_v12 = vld [vmem:[#allocation23 + $0x360] sm:$0xff]  ;;  %v3368_v21 = vadd.f32 %v2256_v11, %v2253_v19  ;;  %v1929_v11 = vld [vmem:[#allocation23 + $0x190] sm:$0xff] }
 0x592   :  { %3251 = vmatprep.subr.bf16.mxu1 %v3250_v4  ;;  %v3288_v13 = vpack.c.bf16 %v1987_v12, %v1983_v10  ;;  %v1996_v4 = vld [vmem:[#allocation23 + $0x3a8] sm:$0xff]  ;;  %v1913_v10 = vld [vmem:[#allocation23 + $0x110] sm:$0xff] }
 0x593   :  { %v3290_v1 = vpack.c.bf16 %v1996_v4, %v1992_v14  ;;  %v1917_v12 = vld [vmem:[#allocation23 + $0x130] sm:$0xff]  ;;  %v1926_v14 = vld [vmem:[#allocation23 + $0x178] sm:$0xff] }
 0x594   :  { %3221 = vmatpush1.bf16.msra.mxu0 %v3220_v26  ;;  %v3260_v26 = vpack.c.bf16 %v1931_v25, %v1927_v6  ;;  %v3316_v4 = vpack.c.bf16 %v1917_v12, %v1913_v10  ;;  %v2004_v10 = vld [vmem:[#allocation23 + $0x3e8] sm:$0xff]  ;;  %v2002_v12 = vld [vmem:[#allocation23 + $0x3d8] sm:$0xff] }
 0x595   :  { %3223 = vmatprep.subr.bf16.mxu0 %v3222_v32  ;;  %3253 = vmatpush1.bf16.msra.mxu1 %v3252_v15  ;;  %v1935_v32 = vld [vmem:[#allocation23 + $0x1c0] sm:$0xff] }
 0x596   :  { %3255 = vmatprep.subr.bf16.mxu1 %v3254_v18  ;;  %v3264_v34 = vpack.c.bf16 %v1939_v33, %v1935_v32  ;;  %v1995_v15 = vld [vmem:[#allocation23 + $0x3a0] sm:$0xff]  ;;  %v2255_v18 = vld [vmem:[#allocation18] ss:$0 sm:$0xff] }
 0x597   :  { %v3292_v2 = vpack.c.bf16 %v1995_v15, %v1991_v29  ;;  %v1921_v29 = vld [vmem:[#allocation23 + $0x150] sm:$0xff] }
 0x598   :  { %3225 = vmatpush1.bf16.msra.mxu0 %v3224_v36  ;;  %v1948_v36 = vld [vmem:[#allocation23 + $0x228] sm:$0xff]  ;;  %v1925_v15 = vld [vmem:[#allocation23 + $0x170] sm:$0xff] }
 0x599   :  { %3227 = vmatprep.subr.bf16.mxu0 %v3226_v37  ;;  %3257 = vmatpush1.bf16.msra.mxu1 %v3256_v20  ;;  %v3266_v37 = vpack.c.bf16 %v1948_v36, %v1944_v35  ;;  %v3366_v20 = vadd.f32 %v2255_v18, %v2252_v17  ;;  %v2257_v35 = vld [vmem:[#allocation18 + $0x2] ss:$0 sm:$0xff]  ;;  %v3320_v18 = vpack.c.bf16 %v1925_v15, %v1921_v29 }
 0x59a   :  { %3259 = vmatprep.subr.bf16.mxu1 %v3258_v24  ;;  %v1934_v17 = vld [vmem:[#allocation23 + $0x1b8] sm:$0xff] }
 0x59c   :  { %3229 = vmatpush1.bf16.msra.mxu0 %v3228_v41  ;;  %v1956_v41 = vld [vmem:[#allocation23 + $0x268] sm:$0xff] }
 0x59d   :  { %3231 = vmatprep.subr.bf16.mxu0 %v3230_v42  ;;  %3261 = vmatpush1.bf16.msra.mxu1 %v3260_v26  ;;  %v3270_v42 = vpack.c.bf16 %v1956_v41, %v1952_v40 }
 0x59e   :  { %3263 = vmatprep.subr.bf16.mxu1 %v3262_v30 }
 0x5a0   :  { %3233 = vmatpush1.bf16.msra.mxu0 %v3232_v45  ;;  %v3272_v45 = vpack.c.bf16 %v1955_v44, %v1951_v43  ;;  %v1881_v44 = vld [vmem:[#allocation23 + $0x10] sm:$0xff] }
 0x5a1   :  { %3299 = vmatprep.subr.bf16.mxu0 %v3298_v53  ;;  %3265 = vmatpush1.bf16.msra.mxu1 %v3264_v34  ;;  %v1972_v53 = vld [vmem:[#allocation23 + $0x2e8] sm:$0xff] }
 0x5a2   :  { %3267 = vmatprep.subr.bf16.mxu1 %v3266_v37  ;;  %v3278_v54 = vpack.c.bf16 %v1972_v53, %v1968_v52 }
 0x5a5   :  { %3269 = vmatpush1.bf16.msra.mxu1 %v3268_v39 }
 0x5a6   :  { %3271 = vmatprep.subr.bf16.mxu1 %v3270_v42 }
 0x5a9   :  { %3273 = vmatpush1.bf16.msra.mxu1 %v3272_v45  ;;  %v1885_v45 = vld [vmem:[#allocation23 + $0x30] sm:$0xff] }
 0x5aa   :  { %3275 = vmatprep.subr.bf16.mxu1 %v3274_v48  ;;  %v1894_v48 = vld [vmem:[#allocation23 + $0x78] sm:$0xff] }
 0x5ab   :  { %v3302_v53 = vpack.c.bf16 %v1894_v48, %v1890_v47  ;;  %v1974_v47 = vld [vmem:[#allocation23 + $0x2f8] sm:$0xff] }
 0x5ad   :  { %3277 = vmatpush1.bf16.msra.mxu1 %v3276_v51  ;;  %v3300_v51 = vpack.c.bf16 %v1885_v45, %v1881_v44  ;;  %v1961_v44 = vld [vmem:[#allocation23 + $0x290] sm:$0xff] }
 0x5ae   :  { %3279 = vmatprep.subr.bf16.mxu1 %v3278_v54  ;;  %v1889_v54 = vld [vmem:[#allocation23 + $0x50] sm:$0xff] }
 0x5af   :  { %v3304_v58 = vpack.c.bf16 %v1893_v55, %v1889_v54  ;;  %v1965_v45 = vld [vmem:[#allocation23 + $0x2b0] sm:$0xff] }
 0x5b0   :  { %v3340_v48 = vpack.c.bf16 %v1965_v45, %v1961_v44 }
 0x5b1   :  { %3281 = vmatpush1.bf16.msra.mxu1 %v3280_v57  ;;  %v1902_v57 = vld [vmem:[#allocation23 + $0xb8] sm:$0xff] }
 0x5b2   :  { %3283 = vmatprep.subr.bf16.mxu1 %v3282_v60  ;;  %v3306_v59 = vpack.c.bf16 %v1902_v57, %v1898_v56  ;;  %v1897_v60 = vld [vmem:[#allocation23 + $0x90] sm:$0xff] }
 0x5b3   :  { %v1977_v56 = vld [vmem:[#allocation23 + $0x310] sm:$0xff] }
 0x5b4   :  { %v1981_v57 = vld [vmem:[#allocation23 + $0x330] sm:$0xff] }
 0x5b5   :  { %3285 = vmatpush1.bf16.msra.mxu1 %v3284_v3  ;;  %v1905_v3 = vld [vmem:[#allocation23 + $0xd0] sm:$0xff] }
 0x5b6   :  { %3287 = vmatprep.subr.bf16.mxu1 %v3286_v31 }
 0x5b9   :  { %3289 = vmatpush1.bf16.msra.mxu1 %v3288_v13  ;;  %v1922_v13 = vld [vmem:[#allocation23 + $0x158] sm:$0xff] }
 0x5ba   :  { %3291 = vmatprep.subr.bf16.mxu1 %v3290_v1  ;;  %v3318_v1 = vpack.c.bf16 %v1926_v14, %v1922_v13  ;;  %v2006_v14 = vld [vmem:[#allocation23 + $0x3f8] sm:$0xff] }
 0x5bb   :  { %v3358_v29 = vpack.c.bf16 %v2006_v14, %v2002_v12 }
 0x5bd   :  { %3293 = vmatpush1.bf16.msra.mxu1 %v3292_v2  ;;  %v1930_v2 = vld [vmem:[#allocation23 + $0x198] sm:$0xff] }
 0x5be   :  { %v3322_v19 = vpack.c.bf16 %v1934_v17, %v1930_v2  ;;  %v2001_v2 = vld [vmem:[#allocation23 + $0x3d0] sm:$0xff] }
 0x5bf   :  { %v2005_v17 = vld [vmem:[#allocation23 + $0x3f0] sm:$0xff] }
 0x636   :  { %v1451_v63 = vpop.f32.mrb[6].mxu0  ;;  %v1642_v0 = vpop.f32.mrb[12].mxu1 }
 0x637   :  { %v2808_v5 = vpop.f32.mrb[7].mxu0  ;;  %v2878_v7 = vpop.f32.mrb[13].mxu1  ;;  %v3369_v28 = vadd.f32 %v3368_v21, %v1642_v0  ;;  %v1452_v39 = vadd.f32 %v2254_v38, %v1451_v63  ;;  %v1910_v63 = vld [vmem:[#allocation23 + $0xf8] sm:$0xff]  ;;  %v3308_v0 = vpack.c.bf16 %v1901_v61, %v1897_v60  ;;  %v3348_v60 = vpack.c.bf16 %v1981_v57, %v1977_v56 }
 0x638   :  { %v1909_v5 = vld [vmem:[#allocation23 + $0xf0] sm:$0xff]  ;;  %v1914_v7 = vld [vmem:[#allocation23 + $0x118] sm:$0xff] }
 0x639   :  { %v2259_v30 = vmul.f32 -1.442695, %v3369_v28  ;;  %v3312_v9 = vpack.c.bf16 %v1909_v5, %v1905_v3  ;;  %v3314_v31 = vpack.c.bf16 %v1918_v8, %v1914_v7  ;;  %v1938_v21 = vld [vmem:[#allocation23 + $0x1d8] sm:$0xff]  ;;  %v1993_v7 = vld [vmem:[#allocation23 + $0x390] sm:$0xff] }
 0x63a   :  { %v1950_v28 = vld [vmem:[#allocation23 + $0x238] sm:$0xff]  ;;  %v1997_v8 = vld [vmem:[#allocation23 + $0x3b0] sm:$0xff] }
 0x656   :  { %v1547_v22 = vpop.f32.mrb[4].mxu0  ;;  %v1737_v24 = vpop.f32.mrb[14].mxu1 }
 0x657   :  { %v3367_v6 = vadd.f32 %v3366_v20, %v1547_v22  ;;  %v2843_v25 = vpop.f32.mrb[5].mxu0  ;;  %v2913_v26 = vpop.f32.mrb[15].mxu1  ;;  %v1738_v37 = vadd.f32 %v2257_v35, %v1737_v24  ;;  %v1933_v20 = vld [vmem:[#allocation23 + $0x1b0] sm:$0xff]  ;;  %v1942_v22 = vld [vmem:[#allocation23 + $0x1f8] sm:$0xff] }
 0x658   :  { %v3324_v24 = vpack.c.bf16 %v1933_v20, %v1929_v11  ;;  %v1937_v25 = vld [vmem:[#allocation23 + $0x1d0] sm:$0xff]  ;;  %v1954_v35 = vld [vmem:[#allocation23 + $0x258] sm:$0xff] }
 0x659   :  { %v2258_v23 = vmul.f32 -1.442695, %v3367_v6  ;;  %v3326_v6 = vpack.c.bf16 %v1942_v22, %v1938_v21  ;;  %v1941_v26 = vld [vmem:[#allocation23 + $0x1f0] sm:$0xff]  ;;  %v1796_v21 = vld [vmem:[#allocation21] sm:$0x3] }
 0x65b   :  { %3424 = vpow2.f32 %v2258_v23  ;;  %v1946_v23 = vld [vmem:[#allocation23 + $0x218] sm:$0xff] }
 0x65c   :  { %3426 = vpow2.f32 %v2259_v30  ;;  %v3328_v30 = vpack.c.bf16 %v1941_v26, %v1937_v25 }
 0x665   :  { %v3425_v32 = vpop.eup %3424 }
 0x666   :  { %v1745_v33 = vadd.f32 1.0, %v3425_v32  ;;  %v3427_v34 = vpop.eup %3426  ;;  %v3330_v32 = vpack.c.bf16 %v1950_v28, %v1946_v23 }
 0x667   :  { %v1752_v36 = vadd.f32 1.0, %v3427_v34  ;;  %v1949_v34 = vld [vmem:[#allocation23 + $0x230] sm:$0xff] }
 0x668   :  { %3428 = vrcp.f32 %v1745_v33  ;;  %v1945_v33 = vld [vmem:[#allocation23 + $0x210] sm:$0xff] }
 0x669   :  { %3430 = vrcp.f32 %v1752_v36  ;;  %v1958_v36 = vld [vmem:[#allocation23 + $0x278] sm:$0xff] }
 0x66a   :  { %v3334_v38 = vpack.c.bf16 %v1958_v36, %v1954_v35 }
 0x672   :  { %v3429_v16 = vpop.eup %3428 }
 0x673   :  { %v1755_v40 = vmul.f32 %v3429_v16, %v1738_v37  ;;  %v3431_v42 = vpop.eup %3430  ;;  %v3332_v37 = vpack.c.bf16 %v1949_v34, %v1945_v33  ;;  %v1953_v16 = vld [vmem:[#allocation23 + $0x250] sm:$0xff] }
 0x674   :  { %v1758_v43 = vsub.f32 1.0, %v3431_v42  ;;  %v1760_v50 = vmul.f32 %v3431_v42, %v4301_v27  ;;  %v3310_v27 = vpack.c.bf16 %v1910_v63, %v1906_v62  ;;  %v1985_v62 = vld [vmem:[#allocation23 + $0x350] sm:$0xff] }
 0x675   :  { %v1756_v41 = vadd.f32 %v1755_v40, %v1452_v39  ;;  %v1957_v39 = vld [vmem:[#allocation23 + $0x270] sm:$0xff]  ;;  %v1962_v40 = vld [vmem:[#allocation23 + $0x298] sm:$0xff] }
 0x676   :  { %v3336_v42 = vpack.c.bf16 %v1957_v39, %v1953_v16  ;;  %v1989_v63 = vld [vmem:[#allocation23 + $0x370] sm:$0xff] }
 0x677   :  { %3432 = vtanh.f32 %v1756_v41  ;;  %v1966_v41 = vld [vmem:[#allocation23 + $0x2b8] sm:$0xff]  ;;  %v3352_v3 = vpack.c.bf16 %v1989_v63, %v1985_v62 }
 0x681   :  { %v3433_v46 = vpop.eup %3432 }
 0x682   :  { %v1759_v49 = vmul.f32 %v3433_v46, %v1758_v43  ;;  %v3338_v43 = vpack.c.bf16 %v1966_v41, %v1962_v40  ;;  %v1970_v46 = vld [vmem:[#allocation23 + $0x2d8] sm:$0xff] }
 0x684   :  { %v1761_v52 = vadd.f32 %v1760_v50, %v1759_v49  ;;  %v3342_v49 = vpack.c.bf16 %v1974_v47, %v1970_v46  ;;  %v1969_v50 = vld [vmem:[#allocation23 + $0x2d0] sm:$0xff] }
 0x686   :  { %1873 = vmatmul.mubr.f32.vlgmr.msra.gmra.mrb[8].mxu0 %v1761_v52  ;;  %1763 = vst [vmem:[#allocation26 + $0x2] sm:$0x3] %v1761_v52  ;;  %v1978_v52 = vld [vmem:[#allocation23 + $0x318] sm:$0xff] }
 0x687   :  { %3301 = vmatpush1.bf16.msra.mxu0 %v3300_v51  ;;  %v1973_v51 = vld [vmem:[#allocation23 + $0x2f0] sm:$0xff] }
 0x688   :  { %3303 = vmatprep.subr.bf16.mxu0 %v3302_v53  ;;  %v1982_v53 = vld [vmem:[#allocation23 + $0x338] sm:$0xff]  ;;  %v3344_v54 = vpack.c.bf16 %v1973_v51, %v1969_v50 }
 0x689   :  { %v3346_v55 = vpack.c.bf16 %v1982_v53, %v1978_v52 }
 0x68b   :  { %3305 = vmatpush1.bf16.msra.mxu0 %v3304_v58  ;;  %v1986_v58 = vld [vmem:[#allocation23 + $0x358] sm:$0xff] }
 0x68c   :  { %3307 = vmatprep.subr.bf16.mxu0 %v3306_v59  ;;  %v1990_v59 = vld [vmem:[#allocation23 + $0x378] sm:$0xff] }
 0x68d   :  { %v3350_v61 = vpack.c.bf16 %v1990_v59, %v1986_v58 }
 0x68f   :  { %3309 = vmatpush1.bf16.msra.mxu0 %v3308_v0  ;;  %v1994_v0 = vld [vmem:[#allocation23 + $0x398] sm:$0xff] }
 0x690   :  { %3311 = vmatprep.subr.bf16.mxu0 %v3310_v27  ;;  %v1998_v27 = vld [vmem:[#allocation23 + $0x3b8] sm:$0xff] }
 0x691   :  { %v3354_v5 = vpack.c.bf16 %v1998_v27, %v1994_v0 }
 0x693   :  { %3313 = vmatpush1.bf16.msra.mxu0 %v3312_v9  ;;  %v3356_v9 = vpack.c.bf16 %v1997_v8, %v1993_v7 }
 0x694   :  { %3315 = vmatprep.subr.bf16.mxu0 %v3314_v31  ;;  %v2000_v31 = vld [vmem:[#allocation23 + $0x3c8] sm:$0xff] }
 0x695   :  { %v3294_v13 = vpack.c.bf16 %v2004_v10, %v2000_v31 }
 0x697   :  { %3317 = vmatpush1.bf16.msra.mxu0 %v3316_v4  ;;  %v1999_v4 = vld [vmem:[#allocation23 + $0x3c0] sm:$0xff]  ;;  %3295 = vmatprep.subr.bf16.mxu1 %v3294_v13 }
 0x698   :  { %3319 = vmatprep.subr.bf16.mxu0 %v3318_v1  ;;  %v2003_v1 = vld [vmem:[#allocation23 + $0x3e0] sm:$0xff] }
 0x699   :  { %v3296_v15 = vpack.c.bf16 %v2003_v1, %v1999_v4 }
 0x69b   :  { %3321 = vmatpush1.bf16.msra.mxu0 %v3320_v18  ;;  %v3360_v18 = vpack.c.bf16 %v2005_v17, %v2001_v2  ;;  %3297 = vmatpush1.bf16.msra.mxu1 %v3296_v15 }
 0x69c   :  { %3323 = vmatprep.subr.bf16.mxu0 %v3322_v19  ;;  %v1798_v19 = vlaneseq }
 0x69e   :  { %v1799_v11 = vshrl.u32 %v1798_v19, 7 }
 0x69f   :  { %3325 = vmatpush1.bf16.msra.mxu0 %v3324_v24 }
 0x6a0   :  { %3327 = vmatprep.subr.bf16.mxu0 %v3326_v6  ;;  %v1804_v20 = vsub.s32 1, %v1799_v11  ;;  %v1800_v22 = vsub.s32 0, %v1799_v11 }
 0x6a2   :  { %v1805_v24 = vrot.slane %v1796_v21, %v1804_v20  ;;  %v1801_v6 = vrot.slane %v1796_v21, %v1800_v22 }
 0x6a3   :  { %3329 = vmatpush1.bf16.msra.mxu0 %v3328_v30 }
 0x6a4   :  { %3331 = vmatprep.subr.bf16.mxu0 %v3330_v32 }
 0x6a7   :  { %3333 = vmatpush1.bf16.msra.mxu0 %v3332_v37 }
 0x6a8   :  { %3335 = vmatprep.subr.bf16.mxu0 %v3334_v38 }
 0x6ab   :  { %3337 = vmatpush1.bf16.msra.mxu0 %v3336_v42 }
 0x6ac   :  { %3339 = vmatprep.subr.bf16.mxu0 %v3338_v43 }
 0x6af   :  { %3341 = vmatpush1.bf16.msra.mxu0 %v3340_v48 }
 0x6b0   :  { %3343 = vmatprep.subr.bf16.mxu0 %v3342_v49 }
 0x6b3   :  { %3345 = vmatpush1.bf16.msra.mxu0 %v3344_v54 }
 0x6b4   :  { %3347 = vmatprep.subr.bf16.mxu0 %v3346_v55 }
 0x6b7   :  { %3349 = vmatpush1.bf16.msra.mxu0 %v3348_v60 }
 0x6b8   :  { %3351 = vmatprep.subr.bf16.mxu0 %v3350_v61 }
 0x6bb   :  { %3353 = vmatpush1.bf16.msra.mxu0 %v3352_v3 }
 0x6bc   :  { %3355 = vmatprep.subr.bf16.mxu0 %v3354_v5 }
 0x6bf   :  { %3357 = vmatpush1.bf16.msra.mxu0 %v3356_v9 }
 0x6c0   :  { %3359 = vmatprep.subr.bf16.mxu0 %v3358_v29 }
 0x6c3   :  { %3361 = vmatpush1.bf16.msra.mxu0 %v3360_v18 }
 0x759   :  { %v1874_v25 = vpop.f32.mrb[8].mxu0 }
 0x75a   :  { %v1876_v26 = vpop.f32.mrb[9].mxu0  ;;  %v1875_v28 = vadd.f32 %v1874_v25, %v1801_v6 }
 0x75b   :  { %v1877_v23 = vadd.f32 %v1876_v26, %v1805_v24 }
 0x75d   :  { %2093 = vmatprep.mubr.f32.mxu1 %v1877_v23  ;;  %2164 = vmatprep.mubr.f32.mxu0 %v1877_v23 }
 0x75e   :  { %2094 = vmatmul.mubr.f32.vlgmr.msra.gmra.mrb[16].mxu1 %v1875_v28  ;;  %2165 = vmatmul.mubr.f32.vlgmr.msra.gmra.mrb[10].mxu0 %v1875_v28 }
 0x75f   :  { %3769 = shalt.err (!%p3766_p3)
}
 0x760   :  { %s3770_s11 = scalar_lea.hbm %s4362_s16, 64 }
 0x761   :  { %p3771_p4 = scmp.ne.s32.totalorder %s4362_s16, %s3770_s11  ;;  %p3774_p5 = scmp.lt.u32.totalorder %s3770_s11, %s4362_s16 }
 0x763   :  { %p3776_p6 = pnand %p3774_p5, %p3771_p4 }
 0x765   :  { %3779 = shalt.err (!%p3776_p6)
}
 0x766   :  { %s3828_s9 = smov 2   ;;  %v2019_v30 = vsub.s32 2, %v1799_v11  ;;  %v2007_v32 = vld [vmem:[#allocation24] sm:$0xf]  ;;  %v3829_v33 = vmov 1983009808  }
 0x767   :  { %2205 = dma.vmem_to_hbm [thread:$0]  %s2200_s5, 64, %s4362_s16, [#allocation6], %s3820_s21, %s3820_s21, %s3828_s9   ;;  %v2178_v34 = vunpack.c.l.s4 %v3829_v33  ;;  %v2023_v35 = vsub.s32 3, %v1799_v11  ;;  %v2012_v36 = vrot.slane %v2007_v32, %v1800_v22  ;;  %v2016_v38 = vrot.slane %v2007_v32, %v1804_v20 }
 0x768   :  { %v2020_v37 = vrot.slane %v2007_v32, %v2019_v30  ;;  %s4370_s25 = sld [smem:[#allocation46_spill]] }
 0x769   :  { %v2179_v16 = vunpack.c.0.s8 %v2178_v34  ;;  %v2024_v39 = vrot.slane %v2007_v32, %v2023_v35 }
 0x76b   :  { %v2182_v47 = vsub.s32 %v2179_v16, %v1799_v11 }
 0x831   :  { %v2095_v40 = vpop.f32.mrb[16].mxu1  ;;  %v2166_v41 = vpop.f32.mrb[10].mxu0 }
 0x832   :  { %v2096_v42 = vadd.f32 %v2095_v40, %v2012_v36  ;;  %v2167_v43 = vadd.f32 %v2166_v41, %v2020_v37  ;;  %v2097_v44 = vpop.f32.mrb[17].mxu1  ;;  %v2168_v45 = vpop.f32.mrb[11].mxu0 }
 0x833   :  { %v2098_v46 = vadd.f32 %v2097_v44, %v2016_v38  ;;  %v2169_v48 = vadd.f32 %v2168_v45, %v2024_v39 }
 0x835   :  { %v2175_v49 = vcombine.low %v2096_v42, %v2098_v46  ;;  %v2176_v50 = vcombine.low %v2167_v43, %v2169_v48 }
 0x837   :  { %v2183_v51 = vrot.slane %v2175_v49, %v2182_v47  ;;  %v2190_v52 = vrot.slane %v2176_v50, %v2182_v47 }
 0x839   :  { %v2191_v53 = vcombine.low %v2183_v51, %v2190_v52 }
 0x83b   :  { %2193 = vst [vmem:[%s4370_s25] sm:$0xff] %v2191_v53 }
 0x83c   :  { %3800 = dma.done.wait [#allocation6], 64  }
 0x83d   :  { %3801 = vsyncadd [#allocation6], 4294967232 }
 0x83e   :  { %2213 = vsyncpa [#allocation5], 1 }
 0x83f   :  { %2214 = vsyncpa [#allocation10], 1 }
 0x840   :  { %2215 = vsyncpa [#allocation13], 1 }
 0x841   :  { %2216 = vsyncpa [#allocation16], 1 }
 0x842   :  { %2217 = vsyncpa [#allocation19], 1 }
 0x843   :  { %2218 = vsyncpa [#allocation22], 1 }
 0x844   :  { %2219 = vsyncpa [#allocation25], 1 }
 0x845   :  { %2220 = vsyncpa [#allocation6], 1 }
 0x846   :  { %2221 = vsyncpa [#allocation7], 1 }
 0x847   :  { %2222 = vsyncmov [#allocation3] }
 0x84a   :  { %s2223_s26 = vpop.sfrf %2222 }
 0x84b   :  { %p2260_p7 = scmp.ne.s32.totalorder %s2223_s26, 0 }
 0x84d   :  { %2227 = shalt.err (%p2260_p7)  }
 0x84e   :  { %2229 = vsyncmov [#allocation3 + $0x1] }
 0x851   :  { %s2230_s0 = vpop.sfrf %2229 }
 0x852   :  { %p2261_p8 = scmp.ne.s32.totalorder %s2230_s0, 0 }
 0x854   :  { %2234 = shalt.err (%p2261_p8)  }

</bundles_post_ra>
